<compile_context>
chip_gen: v5e
topology: v5e:2x2
jax: 0.10.0
libtpu: 0.0.40
codegen_flags: <defaults>
</compile_context>

<pallas_src>
import jax
import jax.numpy as jnp
from jax import lax
from jax.experimental import pallas as pl
from jax.experimental.pallas import tpu as pltpu

NUM_MODULES = 3
C_IN = 2 * NUM_MODULES + 1     # 7
C1 = 32
C2 = 64
TO_LINEAR = C2                 # actual flatten size (H=W=1)
N_OUT = 3
BN_EPS = 1e-5


def _batchnorm_train(h):
    # BatchNorm2d(affine=False) in training mode: per-channel batch statistics
    # over (N, H, W); here H=W=1 so stats are over the batch axis. Biased var.
    mu = jnp.mean(h, axis=0, keepdims=True)
    c = h - mu
    var = jnp.mean(c * c, axis=0, keepdims=True)
    return c * lax.rsqrt(var + BN_EPS)


def _bn_relu_blocked(h, gb, b):
    """h: (gb*b, C) with gb fused forwards of batch b. Per-forward training-mode
    BatchNorm2d(affine=False) stats (reduce over the b axis) + ReLU."""
    c_dim = h.shape[-1]
    h3 = h.reshape(gb, b, c_dim)
    mu = jnp.mean(h3, axis=1, keepdims=True)
    c = h3 - mu                                   # hoist centered term
    var = jnp.mean(c * c, axis=1, keepdims=True)  # biased variance (PyTorch norm)
    out = jnp.maximum(c * lax.rsqrt(var + BN_EPS), 0.0)
    return out.reshape(gb * b, c_dim)


def cnn_kernel(x_ref,
               w1_ref, w2_ref,
               w3_ref, b3_ref,
               w4_ref, b4_ref,
               out_ref):
    # x_ref block: (GB, B, C_IN) -> GB independent forward passes per grid step.
    gb, b, _ = x_ref.shape
    rows = gb * b

    # conv1 (1x1 conv == dense): all GB forwards fused into one MXU matmul.
    # Bias omitted: cancelled exactly by the mean subtraction in affine-free BN.
    x = x_ref[...].reshape(rows, C_IN)
    h = jnp.dot(x, w1_ref[...], preferred_element_type=jnp.float32)
    h = _bn_relu_blocked(h, gb, b)

    # conv2 (1x1 conv == dense) + bn2 + relu, fused the same way. Bias omitted.
    h = jnp.dot(h, w2_ref[...], preferred_element_type=jnp.float32)
    h = _bn_relu_blocked(h, gb, b)

    # forward() only returns x[0] of each forward; batch stats were only needed
    # through bn2, so fc1/fc2 run on row 0 of every forward, batched over GB.
    h0 = h.reshape(gb, b, C2)[:, 0, :]                             # (gb, C2)
    h0 = jnp.dot(h0, w3_ref[...], preferred_element_type=jnp.float32) + b3_ref[...]
    h0 = jnp.maximum(h0, 0.0)
    h0 = jnp.dot(h0, w4_ref[...], preferred_element_type=jnp.float32) + b4_ref[...]

    out_ref[...] = h0.astype(out_ref.dtype)        # one (gb, N_OUT) store per step


def _choose_gb(G, B):
    """Forwards per grid step. Target ~256 fused MXU rows (v6e/v7x M tile, also a
    multiple of v5e's 128); keep >=2 grid steps when G allows (v7x: 2 TCs); keep
    the output block sublane-aligned (multiple of 8) when it is not the full G."""
    gb = max(1, 256 // max(B, 1))
    if G <= gb:
        return G                      # single grid step: block == full G extent
    return max(8, (gb // 8) * 8)      # multi-step: sublane-aligned output block


def cnn_forward_batched(x_stack, params, gb=None):
    """x_stack: (G, B, C_IN, 1, 1) float32 — G independent forward passes
    (e.g. one per module / env / timestep) in a single pallas_call.
    Returns (G, N_OUT): logits[0] of each forward."""
    G, B = x_stack.shape[0], x_stack.shape[1]
    x = x_stack.reshape(G, B, C_IN).astype(jnp.float32)   # squeeze H=W=1

    if gb is None:
        gb = _choose_gb(G, B)
    n_steps = pl.cdiv(G, gb)
    G_pad = n_steps * gb
    if G_pad != G:
        # Zero-padded forwards are harmless (BN of zeros stays zero) and sliced off.
        x = jnp.concatenate([x, jnp.zeros((G_pad - G, B, C_IN), x.dtype)], axis=0)

    w1, w2 = params["w1"], params["w2"]
    w3, b3 = params["w3"], params["b3"]
    w4, b4 = params["w4"], params["b4"]

    def resident(a):
        # Weights stay VMEM-resident across the whole grid (same block index).
        return pl.BlockSpec(a.shape, lambda g, _nd=a.ndim: (0,) * _nd)

    out = pl.pallas_call(
        cnn_kernel,
        out_shape=jax.ShapeDtypeStruct((G_pad, N_OUT), jnp.float32),
        grid=(n_steps,),
        in_specs=[pl.BlockSpec((gb, B, C_IN), lambda g: (g, 0, 0)),
                  resident(w1), resident(w2),
                  resident(w3), resident(b3),
                  resident(w4), resident(b4)],
        out_specs=pl.BlockSpec((gb, N_OUT), lambda g: (g, 0)),
        compiler_params=pltpu.CompilerParams(
            dimension_semantics=("parallel",)),
    )(x, w1, w2, w3, b3, w4, b4)
    return out[:G]


def cnn_forward(x_nchw, params):
    """Single forward: x_nchw (B, C_IN, 1, 1) -> logits[0] of shape (3,)."""
    B = x_nchw.shape[0]
    out = cnn_forward_batched(x_nchw.reshape(1, B, C_IN, 1, 1), params)
    return out[0]


def init_params(key):
    """Deterministic PyTorch-style uniform(-1/sqrt(fan_in), 1/sqrt(fan_in)) init.
    Weights are stored as (in, out) so the kernel does x @ W.
    b1/b2 are kept to mirror the PyTorch module's parameters but are NOT passed
    to the kernel: affine-free training-mode BatchNorm cancels them exactly."""
    def dense(key, fan_in, fan_out):
        kw, kb = jax.random.split(key)
        bound = 1.0 / jnp.sqrt(fan_in)
        w = jax.random.uniform(kw, (fan_in, fan_out), jnp.float32, -bound, bound)
        b = jax.random.uniform(kb, (1, fan_out), jnp.float32, -bound, bound)
        return w, b

    k1, k2, k3, k4 = jax.random.split(key, 4)
    w1, b1 = dense(k1, C_IN, C1)              # conv1 (1x1)
    w2, b2 = dense(k2, C1, C2)                # conv2 (1x1)
    w3, b3 = dense(k3, TO_LINEAR, TO_LINEAR)  # fc1
    w4, b4 = dense(k4, TO_LINEAR, N_OUT)      # fc2
    return dict(w1=w1, b1=b1, w2=w2, b2=b2, w3=w3, b3=b3, w4=w4, b4=b4)


def reference_forward(x_nchw, params):
    # Pure-JAX reference of the original module math, INCLUDING the conv biases
    # and the full-batch fc1/fc2 — proves the kernel's optimizations (dropped
    # b1/b2, row-0-only fc path, fused per-forward BN) are output-identical.
    x = x_nchw.reshape(x_nchw.shape[0], C_IN).astype(jnp.float32)
    h = x @ params["w1"] + params["b1"]
    h = _batchnorm_train(h); h = jnp.maximum(h, 0.0)
    h = h @ params["w2"] + params["b2"]
    h = _batchnorm_train(h); h = jnp.maximum(h, 0.0)
    h = h @ params["w3"] + params["b3"]; h = jnp.maximum(h, 0.0)
    h = h @ params["w4"] + params["b4"]
    return h[0]


if __name__ == "__main__":
    # Keep the pure-JAX reference matmuls at full f32 accuracy for comparison.
    jax.config.update("jax_default_matmul_precision", "highest")

    key = jax.random.PRNGKey(0)
    k_param, k_x, k_x2 = jax.random.split(key, 3)
    params = init_params(k_param)

    ref_batched = jax.vmap(lambda xg: reference_forward(xg, params))

    # 1) Aligned case: G=64 forwards of batch B=8 -> GB=32, 2 grid steps, M=256.
    G, B = 64, 8
    x_stack = jax.random.uniform(k_x, (G, B, C_IN, 1, 1), jnp.float32)
    out_batched = jax.block_until_ready(cnn_forward_batched(x_stack, params))
    assert out_batched.shape == (G, N_OUT)
    ref = ref_batched(x_stack)
    assert jnp.allclose(out_batched, ref, atol=1e-4, rtol=1e-4), (out_batched, ref)

    # 2) Ragged case (G not a multiple of the block): exercises the padding path.
    G2 = 5
    x_small = jax.random.uniform(k_x2, (G2, B, C_IN, 1, 1), jnp.float32)
    out_small = jax.block_until_ready(cnn_forward_batched(x_small, params))
    assert out_small.shape == (G2, N_OUT)
    assert jnp.allclose(out_small, ref_batched(x_small), atol=1e-4, rtol=1e-4)

    # 3) Single forward (module semantics: returns x[0] of shape (3,)).
    out_single = jax.block_until_ready(cnn_forward(x_stack[0], params))
    ref_single = reference_forward(x_stack[0], params)
    assert out_single.shape == (N_OUT,)
    assert jnp.allclose(out_single, ref_single, atol=1e-4, rtol=1e-4), \
        (out_single, ref_single)

    print("KERNEL_OK")
</pallas_src>

<mosaic_0001>
module attributes {stable_mosaic.version = 11 : i64} {
  func.func @cnn_kernel(%arg0: i32, %arg1: memref<32x8x7xf32, #tpu.memory_space<vmem>>, %arg2: memref<7x32xf32, #tpu.memory_space<vmem>>, %arg3: memref<32x64xf32, #tpu.memory_space<vmem>>, %arg4: memref<64x64xf32, #tpu.memory_space<vmem>>, %arg5: memref<1x64xf32, #tpu.memory_space<vmem>>, %arg6: memref<64x3xf32, #tpu.memory_space<vmem>>, %arg7: memref<1x3xf32, #tpu.memory_space<vmem>>, %arg8: memref<32x3xf32, #tpu.memory_space<vmem>>) attributes {dimension_semantics = [#tpu.dimension_semantics<parallel>], iteration_bounds = array<i64: 2>, scalar_prefetch = 0 : i64, scratch_operands = 0 : i64, tpu.core_type = #tpu.core_type<tc>, window_params = [{transform_indices = @transform_0, window_bounds = array<i64: 32, 8, 7>}, {pipeline_mode = #tpu.pipeline_mode<synchronous>, transform_indices = @transform_1, window_bounds = array<i64: 7, 32>}, {pipeline_mode = #tpu.pipeline_mode<synchronous>, transform_indices = @transform_2, window_bounds = array<i64: 32, 64>}, {pipeline_mode = #tpu.pipeline_mode<synchronous>, transform_indices = @transform_3, window_bounds = array<i64: 64, 64>}, {pipeline_mode = #tpu.pipeline_mode<synchronous>, transform_indices = @transform_4, window_bounds = array<i64: 1, 64>}, {pipeline_mode = #tpu.pipeline_mode<synchronous>, transform_indices = @transform_5, window_bounds = array<i64: 64, 3>}, {pipeline_mode = #tpu.pipeline_mode<synchronous>, transform_indices = @transform_6, window_bounds = array<i64: 1, 3>}, {transform_indices = @transform_7, window_bounds = array<i64: 32, 3>}]} {
    %c0 = arith.constant 0 : index
    %c0_0 = arith.constant 0 : index
    %c0_1 = arith.constant 0 : index
    %0 = vector.load %arg1[%c0, %c0_0, %c0_1] : memref<32x8x7xf32, #tpu.memory_space<vmem>>, vector<32x8x7xf32>
    %1 = vector.shape_cast %0 : vector<32x8x7xf32> to vector<256x7xf32>
    %c0_2 = arith.constant 0 : index
    %c0_3 = arith.constant 0 : index
    %2 = vector.load %arg2[%c0_2, %c0_3] : memref<7x32xf32, #tpu.memory_space<vmem>>, vector<7x32xf32>
    %cst = arith.constant dense<0.000000e+00> : vector<256x32xf32>
    %3 = tpu.matmul %1, %2, %cst {dimension_numbers = #tpu.dot_dimension_numbers<[1], [0], [0], [1], [0, 0, 1, 1], [], []>, precision = #tpu.contract_precision<fp32>} : vector<256x7xf32>, vector<7x32xf32>, vector<256x32xf32> -> vector<256x32xf32>
    %4 = vector.shape_cast %3 : vector<256x32xf32> to vector<32x8x32xf32>
    %cst_4 = arith.constant dense<0.000000e+00> : vector<32x32xf32>
    %5 = vector.multi_reduction <add>, %4, %cst_4 [1] : vector<32x8x32xf32> to vector<32x32xf32>
    %6 = vector.shape_cast %5 : vector<32x32xf32> to vector<32x1x32xf32>
    %cst_5 = arith.constant 8.000000e+00 : f32
    %7 = vector.broadcast %cst_5 : f32 to vector<32x1x32xf32>
    %8 = arith.divf %6, %7 : vector<32x1x32xf32>
    %9 = vector.broadcast %8 : vector<32x1x32xf32> to vector<32x8x32xf32>
    %10 = arith.subf %4, %9 : vector<32x8x32xf32>
    %11 = arith.mulf %10, %10 : vector<32x8x32xf32>
    %cst_6 = arith.constant dense<0.000000e+00> : vector<32x32xf32>
    %12 = vector.multi_reduction <add>, %11, %cst_6 [1] : vector<32x8x32xf32> to vector<32x32xf32>
    %13 = vector.shape_cast %12 : vector<32x32xf32> to vector<32x1x32xf32>
    %cst_7 = arith.constant 8.000000e+00 : f32
    %14 = vector.broadcast %cst_7 : f32 to vector<32x1x32xf32>
    %15 = arith.divf %13, %14 : vector<32x1x32xf32>
    %cst_8 = arith.constant 9.99999974E-6 : f32
    %16 = vector.broadcast %cst_8 : f32 to vector<32x1x32xf32>
    %17 = arith.addf %15, %16 : vector<32x1x32xf32>
    %18 = math.rsqrt %17 : vector<32x1x32xf32>
    %19 = vector.broadcast %18 : vector<32x1x32xf32> to vector<32x8x32xf32>
    %20 = arith.mulf %10, %19 : vector<32x8x32xf32>
    %cst_9 = arith.constant 0.000000e+00 : f32
    %21 = vector.broadcast %cst_9 : f32 to vector<32x8x32xf32>
    %22 = arith.maximumf %20, %21 : vector<32x8x32xf32>
    %23 = vector.shape_cast %22 : vector<32x8x32xf32> to vector<256x32xf32>
    %c0_10 = arith.constant 0 : index
    %c0_11 = arith.constant 0 : index
    %24 = vector.load %arg3[%c0_10, %c0_11] : memref<32x64xf32, #tpu.memory_space<vmem>>, vector<32x64xf32>
    %cst_12 = arith.constant dense<0.000000e+00> : vector<256x64xf32>
    %25 = tpu.matmul %23, %24, %cst_12 {dimension_numbers = #tpu.dot_dimension_numbers<[1], [0], [0], [1], [0, 0, 1, 1], [], []>, precision = #tpu.contract_precision<fp32>} : vector<256x32xf32>, vector<32x64xf32>, vector<256x64xf32> -> vector<256x64xf32>
    %26 = vector.shape_cast %25 : vector<256x64xf32> to vector<32x8x64xf32>
    %cst_13 = arith.constant dense<0.000000e+00> : vector<32x64xf32>
    %27 = vector.multi_reduction <add>, %26, %cst_13 [1] : vector<32x8x64xf32> to vector<32x64xf32>
    %28 = vector.shape_cast %27 : vector<32x64xf32> to vector<32x1x64xf32>
    %cst_14 = arith.constant 8.000000e+00 : f32
    %29 = vector.broadcast %cst_14 : f32 to vector<32x1x64xf32>
    %30 = arith.divf %28, %29 : vector<32x1x64xf32>
    %31 = vector.broadcast %30 : vector<32x1x64xf32> to vector<32x8x64xf32>
    %32 = arith.subf %26, %31 : vector<32x8x64xf32>
    %33 = arith.mulf %32, %32 : vector<32x8x64xf32>
    %cst_15 = arith.constant dense<0.000000e+00> : vector<32x64xf32>
    %34 = vector.multi_reduction <add>, %33, %cst_15 [1] : vector<32x8x64xf32> to vector<32x64xf32>
    %35 = vector.shape_cast %34 : vector<32x64xf32> to vector<32x1x64xf32>
    %cst_16 = arith.constant 8.000000e+00 : f32
    %36 = vector.broadcast %cst_16 : f32 to vector<32x1x64xf32>
    %37 = arith.divf %35, %36 : vector<32x1x64xf32>
    %cst_17 = arith.constant 9.99999974E-6 : f32
    %38 = vector.broadcast %cst_17 : f32 to vector<32x1x64xf32>
    %39 = arith.addf %37, %38 : vector<32x1x64xf32>
    %40 = math.rsqrt %39 : vector<32x1x64xf32>
    %41 = vector.broadcast %40 : vector<32x1x64xf32> to vector<32x8x64xf32>
    %42 = arith.mulf %32, %41 : vector<32x8x64xf32>
    %cst_18 = arith.constant 0.000000e+00 : f32
    %43 = vector.broadcast %cst_18 : f32 to vector<32x8x64xf32>
    %44 = arith.maximumf %42, %43 : vector<32x8x64xf32>
    %45 = vector.shape_cast %44 : vector<32x8x64xf32> to vector<256x64xf32>
    %46 = vector.shape_cast %45 : vector<256x64xf32> to vector<32x8x64xf32>
    %47 = vector.extract_strided_slice %46 {offsets = [0, 0, 0], sizes = [32, 1, 64], strides = [1, 1, 1]} : vector<32x8x64xf32> to vector<32x1x64xf32>
    %48 = vector.shape_cast %47 : vector<32x1x64xf32> to vector<32x64xf32>
    %c0_19 = arith.constant 0 : index
    %c0_20 = arith.constant 0 : index
    %49 = vector.load %arg4[%c0_19, %c0_20] : memref<64x64xf32, #tpu.memory_space<vmem>>, vector<64x64xf32>
    %cst_21 = arith.constant dense<0.000000e+00> : vector<32x64xf32>
    %50 = tpu.matmul %48, %49, %cst_21 {dimension_numbers = #tpu.dot_dimension_numbers<[1], [0], [0], [1], [0, 0, 1, 1], [], []>, precision = #tpu.contract_precision<fp32>} : vector<32x64xf32>, vector<64x64xf32>, vector<32x64xf32> -> vector<32x64xf32>
    %c0_22 = arith.constant 0 : index
    %c0_23 = arith.constant 0 : index
    %51 = vector.load %arg5[%c0_22, %c0_23] : memref<1x64xf32, #tpu.memory_space<vmem>>, vector<1x64xf32>
    %52 = vector.broadcast %51 : vector<1x64xf32> to vector<32x64xf32>
    %53 = arith.addf %50, %52 : vector<32x64xf32>
    %cst_24 = arith.constant 0.000000e+00 : f32
    %54 = vector.broadcast %cst_24 : f32 to vector<32x64xf32>
    %55 = arith.maximumf %53, %54 : vector<32x64xf32>
    %c0_25 = arith.constant 0 : index
    %c0_26 = arith.constant 0 : index
    %56 = vector.load %arg6[%c0_25, %c0_26] : memref<64x3xf32, #tpu.memory_space<vmem>>, vector<64x3xf32>
    %cst_27 = arith.constant dense<0.000000e+00> : vector<32x3xf32>
    %57 = tpu.matmul %55, %56, %cst_27 {dimension_numbers = #tpu.dot_dimension_numbers<[1], [0], [0], [1], [0, 0, 1, 1], [], []>, precision = #tpu.contract_precision<fp32>} : vector<32x64xf32>, vector<64x3xf32>, vector<32x3xf32> -> vector<32x3xf32>
    %c0_28 = arith.constant 0 : index
    %c0_29 = arith.constant 0 : index
    %58 = vector.load %arg7[%c0_28, %c0_29] : memref<1x3xf32, #tpu.memory_space<vmem>>, vector<1x3xf32>
    %59 = vector.broadcast %58 : vector<1x3xf32> to vector<32x3xf32>
    %60 = arith.addf %57, %59 : vector<32x3xf32>
    %c0_30 = arith.constant 0 : index
    %c0_31 = arith.constant 0 : index
    %61 = vector.load %arg8[%c0_30, %c0_31] : memref<32x3xf32, #tpu.memory_space<vmem>>, vector<32x3xf32>
    tpu.vector_store %arg8[%c0_30, %c0_31], %60 {strides = array<i32>} : memref<32x3xf32, #tpu.memory_space<vmem>>, vector<32x3xf32>,
    return
  }
  func.func @transform_0(%arg0: i32) -> (i32, i32, i32) {
    %c0_i32 = arith.constant 0 : i32
    %c0_i32_0 = arith.constant 0 : i32
    %c0_i32_1 = arith.constant 0 : i32
    return %arg0, %c0_i32, %c0_i32_0 : i32, i32, i32
  }
  func.func @transform_1(%arg0: i32) -> (i32, i32) {
    %c0_i32 = arith.constant 0 : i32
    %c0_i32_0 = arith.constant 0 : i32
    %c0_i32_1 = arith.constant 0 : i32
    return %c0_i32, %c0_i32_0 : i32, i32
  }
  func.func @transform_2(%arg0: i32) -> (i32, i32) {
    %c0_i32 = arith.constant 0 : i32
    %c0_i32_0 = arith.constant 0 : i32
    %c0_i32_1 = arith.constant 0 : i32
    return %c0_i32, %c0_i32_0 : i32, i32
  }
  func.func @transform_3(%arg0: i32) -> (i32, i32) {
    %c0_i32 = arith.constant 0 : i32
    %c0_i32_0 = arith.constant 0 : i32
    %c0_i32_1 = arith.constant 0 : i32
    return %c0_i32, %c0_i32_0 : i32, i32
  }
  func.func @transform_4(%arg0: i32) -> (i32, i32) {
    %c0_i32 = arith.constant 0 : i32
    %c0_i32_0 = arith.constant 0 : i32
    %c0_i32_1 = arith.constant 0 : i32
    return %c0_i32, %c0_i32_0 : i32, i32
  }
  func.func @transform_5(%arg0: i32) -> (i32, i32) {
    %c0_i32 = arith.constant 0 : i32
    %c0_i32_0 = arith.constant 0 : i32
    %c0_i32_1 = arith.constant 0 : i32
    return %c0_i32, %c0_i32_0 : i32, i32
  }
  func.func @transform_6(%arg0: i32) -> (i32, i32) {
    %c0_i32 = arith.constant 0 : i32
    %c0_i32_0 = arith.constant 0 : i32
    %c0_i32_1 = arith.constant 0 : i32
    return %c0_i32, %c0_i32_0 : i32, i32
  }
  func.func @transform_7(%arg0: i32) -> (i32, i32) {
    %c0_i32 = arith.constant 0 : i32
    %c0_i32_0 = arith.constant 0 : i32
    return %arg0, %c0_i32 : i32, i32
  }
}

</mosaic_0001>

<bundles_post_ra>
// kernel: tpu_custom_call.1
= control target key start
LH: loop header
LB: loop body
LE: loop exit
PB: predicated region body
PF: predicated region fallthrough
CT: control target
= control target key end

     0   :  { %s5827_s24 = smov 0   ;;  %s9765_s0 = inlined_call_operand.vmem [shape: f32[64,8,7], index: 0, kind: input, shape index: {}]   ;;  %s9766_s1 = inlined_call_operand.vmem [shape: f32[7,32], index: 1, kind: input, shape index: {}]   ;;  %s9767_s2 = inlined_call_operand.vmem [shape: f32[32,64], index: 2, kind: input, shape index: {}]   ;;  %s9768_s3 = inlined_call_operand.vmem [shape: f32[64,64], index: 3, kind: input, shape index: {}]   ;;  %s9769_s4 = inlined_call_operand.vmem [shape: f32[1,64], index: 4, kind: input, shape index: {}]   ;;  %s9770_s5 = inlined_call_operand.vmem [shape: f32[64,3], index: 5, kind: input, shape index: {}]   ;;  %s9771_s6 = inlined_call_operand.vmem [shape: f32[1,3], index: 6, kind: input, shape index: {}]   ;;  %s9772_s7 = inlined_call_operand.vmem [shape: f32[64,3], index: 7, kind: output, shape index: {}]  }
   0x1 LB: > { %s5626_s25 = sadd.s32 4294967295, %s5784_s24   ;;  %p5630_p0 = scmp.ge.s32.totalorder %s5784_s24, 1  ;;  %s5784_s24 = sphi %s5827_s24, %s17_s24  }
   0x2   : > { %p238_p1 = scmp.lt.s32.totalorder %s5784_s24, 3 }
   0x4   : > { %p239_p2 = pnand %p5630_p0, %p238_p1 }
   0x6   : > { %242 = sbr.rel (%p239_p2) target bundleno = 1631 (0x65f), region = 48 }
   0xb   : > { %v314_v0 = vld [vmem:[%s9766_s1] sm:$0x7f]  ;;  %vm412_vm0 = vcmask 1046528   ;;  %s5631_s28 = sshll.u32 %s5626_s25, 5  ;;  %vm315_vm1 = vcmask 56320   ;;  %vm1523_vm2 = vcmask 261120  }
   0xc   : > { %v414_v1 = vsel %vm412_vm0, %v314_v0, 0  ;;  %p271_p3 = scmp.lt.s32.totalorder %s5631_s28, 63  ;;  %s5633_s12 = sshll.u32 %s5626_s25, 2 }
   0xd   : > { %v431_v2 = vand.u32 4294901760, %v414_v1  ;;  %p277_p4 = scmp.lt.s32.totalorder %s5633_s12, 7 }
   0xe   : > { %s10215_s28 = smov (!%p271_p3, %s5631_s28), 63 }
   0xf   : > { %v706_v3 = vsub.f32 %v414_v1, %v431_v2  ;;  %1035 = vmatpush.msra.mxu3 %v431_v2  ;;  %432 = vmatpush.msra.mxu0 %v431_v2  ;;  %s5632_s29 = sshll.u32 %s10215_s28, 3  ;;  %s10217_s12 = smov (!%p277_p4, %s5633_s12), 7 }
  0x10   : > { %s5843_s9 = scalar_lea.vmem %s9765_s0, %s5632_s29  ;;  %s5634_s13 = sshll.u32 %s10217_s12, 3 }
  0x11   : > { %v707_v4 = vand.u32 4294901760, %v706_v3  ;;  %857 = vmatpush.msra.mxu2 %v706_v3  ;;  %v282_v5 = vld [vmem:[%s5843_s9] sm:$0xff]  ;;  %v283_v6 = vld [vmem:[%s5843_s9 + $0x8] sm:$0xff]  ;;  %v284_v12 = vld [vmem:[%s5843_s9 + $0x10] sm:$0xff]  ;;  %s9752_s16 = scalar_lea.vmem %s9772_s7, %s5634_s13 }
  0x12   : > { %v317_v8 = vsel %vm315_vm1, %v282_v5, 0  ;;  %v320_v9 = vsel %vm315_vm1, %v283_v6, 0  ;;  %v323_v16 = vsel %vm315_vm1, %v284_v12, 0  ;;  %v285_v22 = vld [vmem:[%s5843_s9 + $0x18] sm:$0xff]  ;;  %v286_v29 = vld [vmem:[%s5843_s9 + $0x20] sm:$0xff]  ;;  %v287_v36 = vld [vmem:[%s5843_s9 + $0x28] sm:$0xff] }
  0x13   : > { %v708_v7 = vsub.f32 %v706_v3, %v707_v4  ;;  %1247 = vmatpush.msrb.mxu0 %v707_v4  ;;  %v5849_v10 = vand.u32 4294901760, %v317_v8  ;;  %v5851_v11 = vand.u32 4294901760, %v320_v9  ;;  %v5858_v20 = vand.u32 4294901760, %v323_v16  ;;  %v288_v43 = vld [vmem:[%s5843_s9 + $0x30] sm:$0xff]  ;;  %v289_v50 = vld [vmem:[%s5843_s9 + $0x38] sm:$0xff]  ;;  %v290_v57 = vld [vmem:[%s5843_s9 + $0x40] sm:$0xff] }
  0x14   : > { %v326_v25 = vsel %vm315_vm1, %v285_v22, 0  ;;  %v329_v32 = vsel %vm315_vm1, %v286_v29, 0  ;;  %v332_v39 = vsel %vm315_vm1, %v287_v36, 0  ;;  %v335_v46 = vsel %vm315_vm1, %v288_v43, 0  ;;  %v291_v0 = vld [vmem:[%s5843_s9 + $0x48] sm:$0xff] }
  0x15   : > { %v709_v13 = vand.u32 4294901760, %v708_v7  ;;  %v434_v14 = vsub.f32 %v317_v8, %v5849_v10  ;;  %v442_v15 = vsub.f32 %v320_v9, %v5851_v11  ;;  %v450_v24 = vsub.f32 %v323_v16, %v5858_v20  ;;  %v292_v7 = vld [vmem:[%s5843_s9 + $0x50] sm:$0xff]  ;;  %v293_v16 = vld [vmem:[%s5843_s9 + $0x58] sm:$0xff] }
  0x16   : > { %v5864_v28 = vand.u32 4294901760, %v326_v25  ;;  %v5870_v35 = vand.u32 4294901760, %v329_v32  ;;  %v5876_v42 = vand.u32 4294901760, %v332_v39  ;;  %v5882_v49 = vand.u32 4294901760, %v335_v46 }
  0x17   : > { %710 = vmatpush.msra.mxu1 %v709_v13  ;;  %860 = vmatmul.f32.vlgmr.msra.gmra.mxu2 %v434_v14  ;;  %v435_v17 = vand.u32 4294901760, %v434_v14  ;;  %v443_v19 = vand.u32 4294901760, %v442_v15  ;;  %v451_v27 = vand.u32 4294901760, %v450_v24  ;;  %v338_v53 = vsel %vm315_vm1, %v289_v50, 0 }
  0x18   : > { %712 = vmatmul.f32.vlgmr.msra.gmra.mxu1 %v5849_v10  ;;  %v458_v31 = vsub.f32 %v326_v25, %v5864_v28  ;;  %v466_v38 = vsub.f32 %v329_v32, %v5870_v35  ;;  %v474_v45 = vsub.f32 %v332_v39, %v5876_v42  ;;  %v482_v52 = vsub.f32 %v335_v46, %v5882_v49  ;;  %v295_v32 = vld [vmem:[%s5843_s9 + $0x68] sm:$0xff] }
  0x19   : > { %1393 = vmatpush.msrb.mxu1 %v431_v2  ;;  %1039 = vmatmul.f32.vlgmr.msra.gmra.mxu3 %v435_v17  ;;  %v436_v18 = vsub.f32 %v434_v14, %v435_v17  ;;  %v444_v23 = vsub.f32 %v442_v15, %v443_v19  ;;  %v452_v30 = vsub.f32 %v450_v24, %v451_v27  ;;  %v5888_v56 = vand.u32 4294901760, %v338_v53 }
  0x1a   : > { %v459_v34 = vand.u32 4294901760, %v458_v31  ;;  %v467_v41 = vand.u32 4294901760, %v466_v38  ;;  %v475_v48 = vand.u32 4294901760, %v474_v45  ;;  %v483_v55 = vand.u32 4294901760, %v482_v52 }
  0x1b   : > { %v437_v21 = vand.u32 4294901760, %v436_v18  ;;  %v445_v26 = vand.u32 4294901760, %v444_v23  ;;  %v453_v33 = vand.u32 4294901760, %v452_v30  ;;  %v490_v59 = vsub.f32 %v338_v53, %v5888_v56 }
  0x1c   : > { %v460_v37 = vsub.f32 %v458_v31, %v459_v34  ;;  %v468_v44 = vsub.f32 %v466_v38, %v467_v41  ;;  %v476_v51 = vsub.f32 %v474_v45, %v475_v48  ;;  %v484_v58 = vsub.f32 %v482_v52, %v483_v55 }
  0x1d   : > { %438 = vmatmul.f32.vlgmr.msra.gmra.mxu0 %v437_v21  ;;  %v341_v60 = vsel %vm315_vm1, %v290_v57, 0  ;;  %v491_v62 = vand.u32 4294901760, %v490_v59  ;;  %v344_v3 = vsel %vm315_vm1, %v291_v0, 0  ;;  %v347_v12 = vsel %vm315_vm1, %v292_v7, 0  ;;  %v298_v57 = vld [vmem:[%s5843_s9 + $0x80] sm:$0xff] }
  0x1e   : > { %v461_v40 = vand.u32 4294901760, %v460_v37  ;;  %v469_v47 = vand.u32 4294901760, %v468_v44  ;;  %v477_v54 = vand.u32 4294901760, %v476_v51  ;;  %v485_v61 = vand.u32 4294901760, %v484_v58 }
  0x1f   : > { %865 = vmatmul.f32.gmra.mxu2 %v442_v15  ;;  %v5894_v63 = vand.u32 4294901760, %v341_v60  ;;  %v492_v1 = vsub.f32 %v490_v59, %v491_v62  ;;  %v5900_v6 = vand.u32 4294901760, %v344_v3  ;;  %v5906_v15 = vand.u32 4294901760, %v347_v12 }
  0x20   : > { %716 = vmatmul.f32.gmra.mxu1 %v5851_v11  ;;  %v356_v36 = vsel %vm315_vm1, %v295_v32, 0 }
  0x21   : > { %1045 = vmatmul.f32.gmra.mxu3 %v443_v19  ;;  %v498_v2 = vsub.f32 %v341_v60, %v5894_v63  ;;  %v493_v4 = vand.u32 4294901760, %v492_v1  ;;  %v506_v9 = vsub.f32 %v344_v3, %v5900_v6  ;;  %v514_v18 = vsub.f32 %v347_v12, %v5906_v15  ;;  %v299_v1 = vld [vmem:[%s5843_s9 + $0x88] sm:$0xff] }
  0x22   : > { %v350_v19 = vsel %vm315_vm1, %v293_v16, 0  ;;  %v5924_v39 = vand.u32 4294901760, %v356_v36  ;;  %v365_v60 = vsel %vm315_vm1, %v298_v57, 0 }
  0x23   : > { %v499_v5 = vand.u32 4294901760, %v498_v2  ;;  %v507_v14 = vand.u32 4294901760, %v506_v9  ;;  %v515_v22 = vand.u32 4294901760, %v514_v18  ;;  %v5912_v23 = vand.u32 4294901760, %v350_v19 }
  0x24   : > { %v538_v43 = vsub.f32 %v356_v36, %v5924_v39  ;;  %v5942_v0 = vand.u32 4294901760, %v365_v60 }
  0x25   : > { %446 = vmatmul.f32.gmra.mxu0 %v445_v26  ;;  %v500_v8 = vsub.f32 %v498_v2, %v499_v5  ;;  %v508_v17 = vsub.f32 %v506_v9, %v507_v14  ;;  %v516_v25 = vsub.f32 %v514_v18, %v515_v22  ;;  %v522_v26 = vsub.f32 %v350_v19, %v5912_v23 }
  0x26   : > { %v539_v46 = vand.u32 4294901760, %v538_v43  ;;  %v562_v3 = vsub.f32 %v365_v60, %v5942_v0 }
  0x27   : > { %870 = vmatmul.f32.gmra.mxu2 %v450_v24  ;;  %v501_v13 = vand.u32 4294901760, %v500_v8  ;;  %v509_v21 = vand.u32 4294901760, %v508_v17  ;;  %v294_v24 = vld [vmem:[%s5843_s9 + $0x60] sm:$0xff]  ;;  %v517_v29 = vand.u32 4294901760, %v516_v25  ;;  %v523_v30 = vand.u32 4294901760, %v522_v26  ;;  %v301_v25 = vld [vmem:[%s5843_s9 + $0x98] sm:$0xff] }
  0x28   : > { %720 = vmatmul.f32.gmra.mxu1 %v5858_v20  ;;  %v540_v50 = vsub.f32 %v538_v43, %v539_v46  ;;  %v563_v7 = vand.u32 4294901760, %v562_v3 }
  0x29   : > { %1051 = vmatmul.f32.gmra.mxu3 %v451_v27  ;;  %v353_v27 = vsel %vm315_vm1, %v294_v24, 0 }
  0x2a   : > { %v541_v53 = vand.u32 4294901760, %v540_v50 }
  0x2d   : > { %454 = vmatmul.f32.gmra.mxu0 %v453_v33  ;;  %v524_v33 = vsub.f32 %v522_v26, %v523_v30 }
  0x2f   : > { %875 = vmatmul.f32.gmra.mxu2 %v458_v31  ;;  %v5918_v31 = vand.u32 4294901760, %v353_v27  ;;  %v525_v37 = vand.u32 4294901760, %v524_v33  ;;  %v374_v33 = vsel %vm315_vm1, %v301_v25, 0 }
  0x30   : > { %724 = vmatmul.f32.gmra.mxu1 %v5864_v28 }
  0x31   : > { %1057 = vmatmul.f32.gmra.mxu3 %v459_v34  ;;  %v530_v34 = vsub.f32 %v353_v27, %v5918_v31 }
  0x35   : > { %462 = vmatmul.f32.gmra.mxu0 %v461_v40  ;;  %v296_v40 = vld [vmem:[%s5843_s9 + $0x70] sm:$0xff] }
  0x36   : > { %v359_v44 = vsel %vm315_vm1, %v296_v40, 0 }
  0x37   : > { %880 = vmatmul.f32.gmra.mxu2 %v466_v38  ;;  %v531_v38 = vand.u32 4294901760, %v530_v34 }
  0x38   : > { %728 = vmatmul.f32.gmra.mxu1 %v5870_v35 }
  0x39   : > { %1063 = vmatmul.f32.gmra.mxu3 %v467_v41  ;;  %v532_v41 = vsub.f32 %v530_v34, %v531_v38 }
  0x3d   : > { %470 = vmatmul.f32.gmra.mxu0 %v469_v47  ;;  %v5930_v47 = vand.u32 4294901760, %v359_v44 }
  0x3f   : > { %885 = vmatmul.f32.gmra.mxu2 %v474_v45  ;;  %v533_v45 = vand.u32 4294901760, %v532_v41  ;;  %v546_v51 = vsub.f32 %v359_v44, %v5930_v47  ;;  %v302_v44 = vld [vmem:[%s5843_s9 + $0xa0] sm:$0xff] }
  0x40   : > { %732 = vmatmul.f32.gmra.mxu1 %v5876_v42 }
  0x41   : > { %1069 = vmatmul.f32.gmra.mxu3 %v475_v48  ;;  %v297_v48 = vld [vmem:[%s5843_s9 + $0x78] sm:$0xff] }
  0x45   : > { %478 = vmatmul.f32.gmra.mxu0 %v477_v54  ;;  %v547_v54 = vand.u32 4294901760, %v546_v51 }
  0x47   : > { %890 = vmatmul.f32.gmra.mxu2 %v482_v52  ;;  %v362_v52 = vsel %vm315_vm1, %v297_v48, 0  ;;  %v548_v58 = vsub.f32 %v546_v51, %v547_v54 }
  0x48   : > { %736 = vmatmul.f32.gmra.mxu1 %v5882_v49 }
  0x49   : > { %1075 = vmatmul.f32.gmra.mxu3 %v483_v55  ;;  %v5936_v55 = vand.u32 4294901760, %v362_v52 }
  0x4d   : > { %486 = vmatmul.f32.gmra.mxu0 %v485_v61  ;;  %v549_v61 = vand.u32 4294901760, %v548_v58 }
  0x4f   : > { %895 = vmatmul.f32.gmra.mxu2 %v490_v59  ;;  %v554_v59 = vsub.f32 %v362_v52, %v5936_v55  ;;  %v377_v52 = vsel %vm315_vm1, %v302_v44, 0 }
  0x50   : > { %740 = vmatmul.f32.gmra.mxu1 %v5888_v56  ;;  %v5970_v58 = vand.u32 4294901760, %v377_v52 }
  0x51   : > { %1081 = vmatmul.f32.gmra.mxu3 %v491_v62  ;;  %v555_v62 = vand.u32 4294901760, %v554_v59 }
  0x55   : > { %494 = vmatmul.f32.gmra.mxu0 %v493_v4  ;;  %v368_v4 = vsel %vm315_vm1, %v299_v1, 0 }
  0x56   : > { %v5948_v8 = vand.u32 4294901760, %v368_v4 }
  0x57   : > { %900 = vmatmul.f32.gmra.mxu2 %v498_v2  ;;  %v556_v2 = vsub.f32 %v554_v59, %v555_v62 }
  0x58   : > { %744 = vmatmul.f32.gmra.mxu1 %v5894_v63 }
  0x59   : > { %1087 = vmatmul.f32.gmra.mxu3 %v499_v5  ;;  %v557_v5 = vand.u32 4294901760, %v556_v2 }
  0x5d   : > { %502 = vmatmul.f32.gmra.mxu0 %v501_v13  ;;  %v564_v13 = vsub.f32 %v562_v3, %v563_v7 }
  0x5f   : > { %905 = vmatmul.f32.gmra.mxu2 %v506_v9  ;;  %v300_v9 = vld [vmem:[%s5843_s9 + $0x90] sm:$0xff]  ;;  %v565_v17 = vand.u32 4294901760, %v564_v13 }
  0x60   : > { %748 = vmatmul.f32.gmra.mxu1 %v5900_v6  ;;  %v371_v16 = vsel %vm315_vm1, %v300_v9, 0 }
  0x61   : > { %1093 = vmatmul.f32.gmra.mxu3 %v507_v14  ;;  %v570_v14 = vsub.f32 %v368_v4, %v5948_v8  ;;  %v5954_v19 = vand.u32 4294901760, %v371_v16 }
  0x63   : > { %v578_v32 = vsub.f32 %v371_v16, %v5954_v19 }
  0x65   : > { %510 = vmatmul.f32.gmra.mxu0 %v509_v21 }
  0x67   : > { %910 = vmatmul.f32.gmra.mxu2 %v514_v18  ;;  %v571_v18 = vand.u32 4294901760, %v570_v14 }
  0x68   : > { %752 = vmatmul.f32.gmra.mxu1 %v5906_v15 }
  0x69   : > { %1099 = vmatmul.f32.gmra.mxu3 %v515_v22 }
  0x6d   : > { %518 = vmatmul.f32.gmra.mxu0 %v517_v29 }
  0x6f   : > { %915 = vmatmul.f32.gmra.mxu2 %v522_v26 }
  0x70   : > { %756 = vmatmul.f32.gmra.mxu1 %v5912_v23 }
  0x71   : > { %1105 = vmatmul.f32.gmra.mxu3 %v523_v30  ;;  %v572_v30 = vsub.f32 %v570_v14, %v571_v18 }
  0x73   : > { %v573_v36 = vand.u32 4294901760, %v572_v30 }
  0x75   : > { %526 = vmatmul.f32.gmra.mxu0 %v525_v37  ;;  %v579_v37 = vand.u32 4294901760, %v578_v32 }
  0x77   : > { %920 = vmatmul.f32.gmra.mxu2 %v530_v34  ;;  %v580_v50 = vsub.f32 %v578_v32, %v579_v37 }
  0x78   : > { %760 = vmatmul.f32.gmra.mxu1 %v5918_v31 }
  0x79   : > { %1111 = vmatmul.f32.gmra.mxu3 %v531_v38  ;;  %v5962_v38 = vand.u32 4294901760, %v374_v33 }
  0x7d   : > { %534 = vmatmul.f32.gmra.mxu0 %v533_v45 }
  0x7f   : > { %925 = vmatmul.f32.gmra.mxu2 %v538_v43 }
  0x80   : > { %764 = vmatmul.f32.gmra.mxu1 %v5924_v39 }
  0x81   : > { %1117 = vmatmul.f32.gmra.mxu3 %v539_v46 }
  0x85   : > { %542 = vmatmul.f32.gmra.mxu0 %v541_v53 }
  0x87   : > { %930 = vmatmul.f32.gmra.mxu2 %v546_v51  ;;  %v586_v51 = vsub.f32 %v374_v33, %v5962_v38 }
  0x88   : > { %768 = vmatmul.f32.gmra.mxu1 %v5930_v47 }
  0x89   : > { %1123 = vmatmul.f32.gmra.mxu3 %v547_v54  ;;  %v581_v54 = vand.u32 4294901760, %v580_v50  ;;  %v587_v57 = vand.u32 4294901760, %v586_v51 }
  0x8b   : > { %v588_v4 = vsub.f32 %v586_v51, %v587_v57 }
  0x8d   : > { %550 = vmatmul.f32.gmra.mxu0 %v549_v61 }
  0x8f   : > { %935 = vmatmul.f32.gmra.mxu2 %v554_v59 }
  0x90   : > { %772 = vmatmul.f32.gmra.mxu1 %v5936_v55 }
  0x91   : > { %1129 = vmatmul.f32.gmra.mxu3 %v555_v62  ;;  %v303_v62 = vld [vmem:[%s5843_s9 + $0xa8] sm:$0xff] }
  0x95   : > { %v713_v12 = vpop.f32.mrf.mxu1  ;;  %558 = vmatmul.f32.gmra.mxu0 %v557_v5  ;;  %v594_v5 = vsub.f32 %v377_v52, %v5970_v58 }
  0x97   : > { %940 = vmatmul.f32.gmra.mxu2 %v562_v3  ;;  %v595_v13 = vand.u32 4294901760, %v594_v5 }
  0x98   : > { %776 = vmatmul.f32.gmra.mxu1 %v5942_v0 }
  0x99   : > { %1135 = vmatmul.f32.gmra.mxu3 %v563_v7  ;;  %v380_v7 = vsel %vm315_vm1, %v303_v62, 0 }
  0x9a   : > { %v439_v21 = vpop.f32.mrf.mxu0  ;;  %v861_v22 = vpop.f32.mrf.mxu2 }
  0x9b   : > { %v714_v24 = vadd.f32 %v713_v12, %v439_v21  ;;  %v589_v12 = vand.u32 4294901760, %v588_v4  ;;  %v304_v21 = vld [vmem:[%s5843_s9 + $0xb0] sm:$0xff] }
  0x9c   : > { %v1040_v27 = vpop.f32.mrf.mxu3 }
  0x9d   : > { %v717_v26 = vpop.f32.mrf.mxu1  ;;  %v862_v29 = vadd.f32 %v861_v22, %v714_v24  ;;  %566 = vmatmul.f32.gmra.mxu0 %v565_v17 }
  0x9f   : > { %v5959_v34 = vadd.f32 %v1040_v27, %v862_v29  ;;  %945 = vmatmul.f32.gmra.mxu2 %v570_v14  ;;  %v5978_v14 = vand.u32 4294901760, %v380_v7  ;;  %v383_v29 = vsel %vm315_vm1, %v304_v21, 0 }
  0xa0   : > { %780 = vmatmul.f32.gmra.mxu1 %v5948_v8 }
  0xa1   : > { %1141 = vmatmul.f32.gmra.mxu3 %v571_v18  ;;  %9880 = vst [vmem:[#allocation2_spill] sm:$0xff] %v5978_v14  ;;  %v602_v27 = vsub.f32 %v380_v7, %v5978_v14 }
  0xa2   : > { %v447_v40 = vpop.f32.mrf.mxu0  ;;  %v866_v41 = vpop.f32.mrf.mxu2 }
  0xa3   : > { %v718_v43 = vadd.f32 %v717_v26, %v447_v40  ;;  %v596_v26 = vsub.f32 %v594_v5, %v595_v13  ;;  %v603_v33 = vand.u32 4294901760, %v602_v27 }
  0xa4   : > { %v1046_v46 = vpop.f32.mrf.mxu3 }
  0xa5   : > { %v721_v45 = vpop.f32.mrf.mxu1  ;;  %v867_v48 = vadd.f32 %v866_v41, %v718_v43  ;;  %574 = vmatmul.f32.gmra.mxu0 %v573_v36  ;;  %v5986_v36 = vand.u32 4294901760, %v383_v29  ;;  %v305_v43 = vld [vmem:[%s5843_s9 + $0xb8] sm:$0xff] }
  0xa7   : > { %v5967_v53 = vadd.f32 %v1046_v46, %v867_v48  ;;  %950 = vmatmul.f32.gmra.mxu2 %v578_v32  ;;  %v597_v32 = vand.u32 4294901760, %v596_v26  ;;  %9881 = vst [vmem:[#allocation3_spill] sm:$0xff] %v5986_v36  ;;  %v604_v48 = vsub.f32 %v602_v27, %v603_v33  ;;  %v610_v50 = vsub.f32 %v383_v29, %v5986_v36 }
  0xa8   : > { %784 = vmatmul.f32.gmra.mxu1 %v5954_v19 }
  0xa9   : > { %1147 = vmatmul.f32.gmra.mxu3 %v579_v37 }
  0xaa   : > { %v455_v59 = vpop.f32.mrf.mxu0  ;;  %v871_v60 = vpop.f32.mrf.mxu2 }
  0xab   : > { %v722_v61 = vadd.f32 %v721_v45, %v455_v59 }
  0xac   : > { %v1052_v2 = vpop.f32.mrf.mxu3 }
  0xad   : > { %v725_v1 = vpop.f32.mrf.mxu1  ;;  %v872_v3 = vadd.f32 %v871_v60, %v722_v61  ;;  %582 = vmatmul.f32.gmra.mxu0 %v581_v54  ;;  %v605_v54 = vand.u32 4294901760, %v604_v48 }
  0xaf   : > { %v5975_v9 = vadd.f32 %v1052_v2, %v872_v3  ;;  %955 = vmatmul.f32.gmra.mxu2 %v586_v51  ;;  %v386_v51 = vsel %vm315_vm1, %v305_v43, 0 }
  0xb0   : > { %788 = vmatmul.f32.gmra.mxu1 %v5962_v38  ;;  %v5994_v59 = vand.u32 4294901760, %v386_v51 }
  0xb1   : > { %1153 = vmatmul.f32.gmra.mxu3 %v587_v57  ;;  %v611_v57 = vand.u32 4294901760, %v610_v50 }
  0xb2   : > { %v463_v16 = vpop.f32.mrf.mxu0  ;;  %v876_v17 = vpop.f32.mrf.mxu2  ;;  %9883 = vst [vmem:[#allocation5_spill] sm:$0xff] %v5994_v59  ;;  %v618_v7 = vsub.f32 %v386_v51, %v5994_v59 }
  0xb3   : > { %v726_v18 = vadd.f32 %v725_v1, %v463_v16  ;;  %v306_v1 = vld [vmem:[%s5843_s9 + $0xc0] sm:$0xff] }
  0xb4   : > { %v1058_v24 = vpop.f32.mrf.mxu3 }
  0xb5   : > { %v729_v22 = vpop.f32.mrf.mxu1  ;;  %v877_v25 = vadd.f32 %v876_v17, %v726_v18  ;;  %590 = vmatmul.f32.gmra.mxu0 %v589_v12  ;;  %v2526_v12 = vld [vmem:[%s9767_s2 + $0x18] sm:$0xff] }
  0xb6   : > { %v6002_v16 = vand.u32 4294901760, %v2526_v12 }
  0xb7   : > { %v5983_v30 = vadd.f32 %v1058_v24, %v877_v25  ;;  %960 = vmatmul.f32.gmra.mxu2 %v594_v5  ;;  %v612_v5 = vsub.f32 %v610_v50, %v611_v57 }
  0xb8   : > { %792 = vmatmul.f32.gmra.mxu1 %v5970_v58  ;;  %9884 = vst [vmem:[#allocation6_spill] sm:$0xff] %v6002_v16  ;;  %2636 = vmatpush.msrb.mxu2 %v6002_v16  ;;  %v6009_v18 = vsub.f32 %v2526_v12, %v6002_v16 }
  0xb9   : > { %1159 = vmatmul.f32.gmra.mxu3 %v595_v13  ;;  %v389_v13 = vsel %vm315_vm1, %v306_v1, 0  ;;  %3263 = vmatpush.msra.mxu1 %v6002_v16  ;;  %v613_v21 = vand.u32 4294901760, %v612_v5 }
  0xba   : > { %v471_v37 = vpop.f32.mrf.mxu0  ;;  %v881_v40 = vpop.f32.mrf.mxu2  ;;  %v6012_v24 = vand.u32 4294901760, %v389_v13  ;;  %3079 = vmatpush.msra.mxu0 %v6009_v18 }
  0xbb   : > { %v730_v41 = vadd.f32 %v729_v22, %v471_v37  ;;  %v619_v22 = vand.u32 4294901760, %v618_v7 }
  0xbc   : > { %v1064_v45 = vpop.f32.mrf.mxu3  ;;  %9886 = vst [vmem:[#allocation8_spill] sm:$0xff] %v6012_v24 }
  0xbd   : > { %v733_v44 = vpop.f32.mrf.mxu1  ;;  %v882_v46 = vadd.f32 %v881_v40, %v730_v41  ;;  %598 = vmatmul.f32.gmra.mxu0 %v597_v32  ;;  %v307_v32 = vld [vmem:[%s5843_s9 + $0xc8] sm:$0xff]  ;;  %v620_v43 = vsub.f32 %v618_v7, %v619_v22 }
  0xbf   : > { %v5991_v52 = vadd.f32 %v1064_v45, %v882_v46  ;;  %965 = vmatmul.f32.gmra.mxu2 %v602_v27  ;;  %v9773_v27 = vand.u32 4294901760, %v6009_v18  ;;  %v392_v45 = vsel %vm315_vm1, %v307_v32, 0 }
  0xc0   : > { %796 = vmatmul.f32.gmra.mxu1 %v5978_v14 }
  0xc1   : > { %9882 = vst [vmem:[#allocation4_spill] sm:$0xff] %v5991_v52  ;;  %1165 = vmatmul.f32.gmra.mxu3 %v603_v33  ;;  %v2915_v40 = vsub.f32 %v6009_v18, %v9773_v27 }
  0xc2   : > { %v479_v60 = vpop.f32.mrf.mxu0  ;;  %v886_v61 = vpop.f32.mrf.mxu2 }
  0xc3   : > { %v734_v62 = vadd.f32 %v733_v44, %v479_v60  ;;  %v626_v44 = vsub.f32 %v389_v13, %v6012_v24  ;;  %v2916_v46 = vand.u32 4294901760, %v2915_v40 }
  0xc4   : > { %v1070_v3 = vpop.f32.mrf.mxu3 }
  0xc5   : > { %v737_v2 = vpop.f32.mrf.mxu1  ;;  %v887_v4 = vadd.f32 %v886_v61, %v734_v62  ;;  %606 = vmatmul.f32.gmra.mxu0 %v605_v54  ;;  %2917 = vmatpush.msrb.mxu3 %v2916_v46  ;;  %v627_v51 = vand.u32 4294901760, %v626_v44  ;;  %v6025_v54 = vand.u32 4294901760, %v392_v45  ;;  %v308_v62 = vld [vmem:[%s5843_s9 + $0xd0] sm:$0xff] }
  0xc7   : > { %v6004_v17 = vadd.f32 %v1070_v3, %v887_v4  ;;  %970 = vmatmul.f32.gmra.mxu2 %v610_v50  ;;  %v621_v50 = vand.u32 4294901760, %v620_v43  ;;  %9888 = vst [vmem:[#allocation10_spill] sm:$0xff] %v6025_v54  ;;  %v628_v4 = vsub.f32 %v626_v44, %v627_v51  ;;  %v634_v5 = vsub.f32 %v392_v45, %v6025_v54  ;;  %v310_v45 = vld [vmem:[%s5843_s9 + $0xe0] sm:$0xff] }
  0xc8   : > { %800 = vmatmul.f32.gmra.mxu1 %v5986_v36 }
  0xc9   : > { %9885 = vst [vmem:[#allocation7_spill] sm:$0xff] %v6004_v17  ;;  %1171 = vmatmul.f32.gmra.mxu3 %v611_v57  ;;  %v629_v13 = vand.u32 4294901760, %v628_v4 }
  0xca   : > { %v487_v25 = vpop.f32.mrf.mxu0  ;;  %v891_v26 = vpop.f32.mrf.mxu2 }
  0xcb   : > { %v738_v29 = vadd.f32 %v737_v2, %v487_v25 }
  0xcc   : > { %v1076_v37 = vpop.f32.mrf.mxu3 }
  0xcd   : > { %v741_v33 = vpop.f32.mrf.mxu1  ;;  %v892_v41 = vadd.f32 %v891_v26, %v738_v29  ;;  %614 = vmatmul.f32.gmra.mxu0 %v613_v21  ;;  %v635_v21 = vand.u32 4294901760, %v634_v5  ;;  %v309_v26 = vld [vmem:[%s5843_s9 + $0xd8] sm:$0xff] }
  0xcf   : > { %v6022_v48 = vadd.f32 %v1076_v37, %v892_v41  ;;  %975 = vmatmul.f32.gmra.mxu2 %v618_v7  ;;  %v395_v7 = vsel %vm315_vm1, %v308_v62, 0  ;;  %v636_v32 = vsub.f32 %v634_v5, %v635_v21  ;;  %v398_v37 = vsel %vm315_vm1, %v309_v26, 0 }
  0xd0   : > { %804 = vmatmul.f32.gmra.mxu1 %v5994_v59  ;;  %v6045_v43 = vand.u32 4294901760, %v398_v37 }
  0xd1   : > { %9887 = vst [vmem:[#allocation9_spill] sm:$0xff] %v6022_v48  ;;  %1177 = vmatmul.f32.gmra.mxu3 %v619_v22  ;;  %v6035_v22 = vand.u32 4294901760, %v395_v7  ;;  %v637_v40 = vand.u32 4294901760, %v636_v32 }
  0xd2   : > { %v495_v57 = vpop.f32.mrf.mxu0  ;;  %v896_v60 = vpop.f32.mrf.mxu2  ;;  %9891 = vst [vmem:[#allocation13_spill] sm:$0xff] %v6045_v43 }
  0xd3   : > { %v742_v61 = vadd.f32 %v741_v33, %v495_v57  ;;  %9890 = vst [vmem:[#allocation12_spill] sm:$0xff] %v6035_v22  ;;  %v642_v33 = vsub.f32 %v395_v7, %v6035_v22  ;;  %v401_v57 = vsel %vm315_vm1, %v310_v45, 0 }
  0xd4   : > { %v1082_v2 = vpop.f32.mrf.mxu3  ;;  %v6055_v62 = vand.u32 4294901760, %v401_v57 }
  0xd5   : > { %v6028_v1 = vpop.f32.mrf.mxu1  ;;  %v897_v3 = vadd.f32 %v896_v60, %v742_v61  ;;  %622 = vmatmul.f32.gmra.mxu0 %v621_v50  ;;  %v643_v41 = vand.u32 4294901760, %v642_v33 }
  0xd6   : > { %9892 = vst [vmem:[#allocation14_spill] sm:$0xff] %v6055_v62  ;;  %v658_v7 = vsub.f32 %v401_v57, %v6055_v62 }
  0xd7   : > { %v6032_v12 = vadd.f32 %v1082_v2, %v897_v3  ;;  %980 = vmatmul.f32.gmra.mxu2 %v626_v44  ;;  %v644_v50 = vsub.f32 %v642_v33, %v643_v41  ;;  %v311_v3 = vld [vmem:[%s5843_s9 + $0xe8] sm:$0xff] }
  0xd8   : > { %808 = vmatmul.f32.gmra.mxu1 %v6012_v24  ;;  %v659_v26 = vand.u32 4294901760, %v658_v7 }
  0xd9   : > { %9889 = vst [vmem:[#allocation11_spill] sm:$0xff] %v6032_v12  ;;  %1183 = vmatmul.f32.gmra.mxu3 %v627_v51  ;;  %v650_v51 = vsub.f32 %v398_v37, %v6045_v43  ;;  %v645_v60 = vand.u32 4294901760, %v644_v50  ;;  %v312_v37 = vld [vmem:[%s5843_s9 + $0xf0] sm:$0xff] }
  0xda   : > { %v6037_v25 = vpop.f32.mrf.mxu0  ;;  %v407_v50 = vsel %vm315_vm1, %v312_v37, 0 }
  0xdb   : > { %v651_v61 = vand.u32 4294901760, %v650_v51 }
  0xdd   : > { %v6040_v29 = vpop.f32.mrf.mxu1  ;;  %630 = vmatmul.f32.gmra.mxu0 %v629_v13  ;;  %v404_v13 = vsel %vm315_vm1, %v311_v3, 0  ;;  %v313_v3 = vld [vmem:[%s5843_s9 + $0xf8] sm:$0xff] }
  0xde   : > { %v6065_v32 = vand.u32 4294901760, %v404_v13 }
  0xdf   : > { %985 = vmatmul.f32.gmra.mxu2 %v634_v5  ;;  %v652_v5 = vsub.f32 %v650_v51, %v651_v61 }
  0xe0   : > { %812 = vmatmul.f32.gmra.mxu1 %v6025_v54  ;;  %9893 = vst [vmem:[#allocation15_spill] sm:$0xff] %v6065_v32  ;;  %v666_v45 = vsub.f32 %v404_v13, %v6065_v32  ;;  %v410_v13 = vsel %vm315_vm1, %v313_v3, 0 }
  0xe1   : > { %1189 = vmatmul.f32.gmra.mxu3 %v635_v21  ;;  %v653_v21 = vand.u32 4294901760, %v652_v5  ;;  %v6085_v37 = vand.u32 4294901760, %v410_v13 }
  0xe2   : > { %v6047_v44 = vpop.f32.mrf.mxu0  ;;  %v667_v57 = vand.u32 4294901760, %v666_v45 }
  0xe3   : > { %9895 = vst [vmem:[#allocation17_spill] sm:$0xff] %v6085_v37 }
  0xe5   : > { %v6050_v46 = vpop.f32.mrf.mxu1  ;;  %638 = vmatmul.f32.gmra.mxu0 %v637_v40 }
  0xe7   : > { %990 = vmatmul.f32.gmra.mxu2 %v642_v33 }
  0xe8   : > { %816 = vmatmul.f32.gmra.mxu1 %v6035_v22 }
  0xe9   : > { %1195 = vmatmul.f32.gmra.mxu3 %v643_v41  ;;  %v660_v41 = vsub.f32 %v658_v7, %v659_v26 }
  0xea   : > { %v6057_v2 = vpop.f32.mrf.mxu0 }
  0xed   : > { %v6060_v4 = vpop.f32.mrf.mxu1  ;;  %646 = vmatmul.f32.gmra.mxu0 %v645_v60  ;;  %v6075_v60 = vand.u32 4294901760, %v407_v50 }
  0xef   : > { %995 = vmatmul.f32.gmra.mxu2 %v650_v51  ;;  %v661_v51 = vand.u32 4294901760, %v660_v41  ;;  %9894 = vst [vmem:[#allocation16_spill] sm:$0xff] %v6075_v60  ;;  %v674_v27 = vsub.f32 %v407_v50, %v6075_v60  ;;  %v2525_v50 = vld [vmem:[%s9767_s2 + $0x10] sm:$0xff] }
  0xf0   : > { %820 = vmatmul.f32.gmra.mxu1 %v6045_v43  ;;  %v6095_v3 = vand.u32 4294901760, %v2525_v50 }
  0xf1   : > { %1201 = vmatmul.f32.gmra.mxu3 %v651_v61 }
  0xf2   : > { %v6067_v33 = vpop.f32.mrf.mxu0  ;;  %9896 = vst [vmem:[#allocation18_spill] sm:$0xff] %v6095_v3  ;;  %2638 = vmatpush.msrb.mxu2 %v6095_v3  ;;  %3265 = vmatpush.msra.mxu1 %v6095_v3 }
  0xf5   : > { %v6070_v40 = vpop.f32.mrf.mxu1  ;;  %654 = vmatmul.f32.gmra.mxu0 %v653_v21  ;;  %v668_v21 = vsub.f32 %v666_v45, %v667_v57 }
  0xf7   : > { %1000 = vmatmul.f32.gmra.mxu2 %v658_v7  ;;  %v669_v7 = vand.u32 4294901760, %v668_v21 }
  0xf8   : > { %824 = vmatmul.f32.gmra.mxu1 %v6055_v62 }
  0xf9   : > { %1207 = vmatmul.f32.gmra.mxu3 %v659_v26  ;;  %v675_v26 = vand.u32 4294901760, %v674_v27 }
  0xfa   : > { %v6077_v61 = vpop.f32.mrf.mxu0 }
  0xfb   : > { %v676_v43 = vsub.f32 %v674_v27, %v675_v26 }
  0xfd   : > { %v6080_v5 = vpop.f32.mrf.mxu1  ;;  %662 = vmatmul.f32.gmra.mxu0 %v661_v51  ;;  %v682_v51 = vsub.f32 %v410_v13, %v6085_v37 }
  0xff   : > { %1005 = vmatmul.f32.gmra.mxu2 %v666_v45  ;;  %v6100_v45 = vsub.f32 %v2525_v50, %v6095_v3  ;;  %v683_v21 = vand.u32 4294901760, %v682_v51 }
 0x100   : > { %828 = vmatmul.f32.gmra.mxu1 %v6065_v32 }
 0x101   : > { %1213 = vmatmul.f32.gmra.mxu3 %v667_v57  ;;  %v677_v57 = vand.u32 4294901760, %v676_v43  ;;  %3082 = vmatpush.msra.mxu0 %v6100_v45  ;;  %v684_v50 = vsub.f32 %v682_v51, %v683_v21 }
 0x102   : > { %v6087_v41 = vpop.f32.mrf.mxu0 }
 0x103   : > { %v685_v43 = vand.u32 4294901760, %v684_v50 }
 0x105   : > { %v6089_v62 = vpop.f32.mrf.mxu1  ;;  %670 = vmatmul.f32.gmra.mxu0 %v669_v7  ;;  %v9788_v7 = vand.u32 4294901760, %v6100_v45 }
 0x107   : > { %1010 = vmatmul.f32.gmra.mxu2 %v674_v27  ;;  %v2921_v27 = vsub.f32 %v6100_v45, %v9788_v7 }
 0x108   : > { %832 = vmatmul.f32.gmra.mxu1 %v6075_v60 }
 0x109   : > { %1219 = vmatmul.f32.gmra.mxu3 %v675_v26  ;;  %v2922_v60 = vand.u32 4294901760, %v2921_v27 }
 0x10a   : > { %v6103_v13 = vpop.f32.mrf.mxu0 }
 0x10b   : > { %2923 = vmatpush.msrb.mxu3 %v2922_v60 }
 0x10d   : > { %v6107_v32 = vpop.f32.mrf.mxu1  ;;  %678 = vmatmul.f32.gmra.mxu0 %v677_v57  ;;  %v6124_v57 = vpop.f32.mrf.mxu2 }
 0x10f   : > { %1015 = vmatmul.f32.gmra.mxu2 %v682_v51 }
 0x110   : > { %836 = vmatmul.f32.gmra.mxu1 %v6085_v37 }
 0x111   : > { %1225 = vmatmul.f32.gmra.mxu3 %v683_v21  ;;  %v6132_v21 = vpop.f32.mrf.mxu3 }
 0x112   : > { %v6113_v26 = vpop.f32.mrf.mxu0 }
 0x115   : > { %v6115_v22 = vpop.f32.mrf.mxu1  ;;  %686 = vmatmul.f32.gmra.mxu0 %v685_v43  ;;  %v6136_v50 = vpop.f32.mrf.mxu2 }
 0x118   : > { %1395 = vmatmul.f32.vlgmr.msrb.gmra.mxu1 %v5849_v10 }
 0x119   : > { %v6144_v7 = vpop.f32.mrf.mxu3 }
 0x11a   : > { %v6118_v54 = vpop.f32.mrf.mxu0 }
 0x11d   : > { %v6120_v24 = vpop.f32.mrf.mxu1  ;;  %1249 = vmatmul.f32.vlgmr.msrb.gmra.mxu0 %v5849_v10 }
 0x120   : > { %1399 = vmatmul.f32.gmra.mxu1 %v5851_v11 }
 0x121   : > { %v6156_v48 = vpop.f32.mrf.mxu3 }
 0x122   : > { %v6126_v60 = vpop.f32.mrf.mxu0 }
 0x125   : > { %v6128_v51 = vpop.f32.mrf.mxu1  ;;  %1253 = vmatmul.f32.gmra.mxu0 %v5851_v11  ;;  %v6149_v11 = vpop.f32.mrf.mxu2 }
 0x128   : > { %1403 = vmatmul.f32.gmra.mxu1 %v5858_v20 }
 0x12a   : > { %v6134_v27 = vpop.f32.mrf.mxu0 }
 0x12d   : > { %v6138_v43 = vpop.f32.mrf.mxu1  ;;  %1257 = vmatmul.f32.gmra.mxu0 %v5858_v20  ;;  %v6160_v20 = vpop.f32.mrf.mxu2 }
 0x12e   : > { %9897 = vst [vmem:[#allocation19_spill] sm:$0xff] %v6138_v43 }
 0x130   : > { %1407 = vmatmul.f32.gmra.mxu1 %v5864_v28 }
 0x132   : > { %v6142_v10 = vpop.f32.mrf.mxu0 }
 0x133   : > { %9898 = vst [vmem:[#allocation20_spill] sm:$0xff] %v6142_v10 }
 0x135   : > { %v6146_v37 = vpop.f32.mrf.mxu1  ;;  %1261 = vmatmul.f32.gmra.mxu0 %v5864_v28  ;;  %v2524_v28 = vld [vmem:[%s9767_s2 + $0x8] sm:$0xff] }
 0x136   : > { %9899 = vst [vmem:[#allocation21_spill] sm:$0xff] %v6146_v37  ;;  %v6170_v14 = vand.u32 4294901760, %v2524_v28 }
 0x138   : > { %1411 = vmatmul.f32.gmra.mxu1 %v5870_v35  ;;  %9904 = vst [vmem:[#allocation26_spill] sm:$0xff] %v6170_v14  ;;  %2640 = vmatpush.msrb.mxu2 %v6170_v14 }
 0x139   : > { %3267 = vmatpush.msra.mxu1 %v6170_v14 }
 0x13a   : > { %v6152_v12 = vpop.f32.mrf.mxu0 }
 0x13b   : > { %9900 = vst [vmem:[#allocation22_spill] sm:$0xff] %v6152_v12 }
 0x13d   : > { %v6154_v59 = vpop.f32.mrf.mxu1  ;;  %1265 = vmatmul.f32.gmra.mxu0 %v5870_v35  ;;  %v6177_v35 = vsub.f32 %v2524_v28, %v6170_v14 }
 0x13e   : > { %9901 = vst [vmem:[#allocation23_spill] sm:$0xff] %v6154_v59  ;;  %v6172_v59 = vpop.f32.mrf.mxu3 }
 0x13f   : > { %3085 = vmatpush.msra.mxu0 %v6177_v35 }
 0x140   : > { %1415 = vmatmul.f32.gmra.mxu1 %v5876_v42 }
 0x142   : > { %v6162_v36 = vpop.f32.mrf.mxu0 }
 0x143   : > { %9902 = vst [vmem:[#allocation24_spill] sm:$0xff] %v6162_v36  ;;  %v9799_v36 = vand.u32 4294901760, %v6177_v35 }
 0x145   : > { %v6164_v17 = vpop.f32.mrf.mxu1  ;;  %1269 = vmatmul.f32.gmra.mxu0 %v5876_v42  ;;  %v2927_v12 = vsub.f32 %v6177_v35, %v9799_v36 }
 0x146   : > { %9903 = vst [vmem:[#allocation25_spill] sm:$0xff] %v6164_v17  ;;  %v6180_v17 = vpop.f32.mrf.mxu2  ;;  %v6193_v14 = vpop.f32.mrf.mxu3 }
 0x147   : > { %v2928_v28 = vand.u32 4294901760, %v2927_v12 }
 0x148   : > { %1419 = vmatmul.f32.gmra.mxu1 %v5882_v49 }
 0x149   : > { %2929 = vmatpush.msrb.mxu3 %v2928_v28 }
 0x14a   : > { %v6182_v42 = vpop.f32.mrf.mxu0 }
 0x14b   : > { %9905 = vst [vmem:[#allocation27_spill] sm:$0xff] %v6182_v42 }
 0x14d   : > { %v6186_v37 = vpop.f32.mrf.mxu1  ;;  %1273 = vmatmul.f32.gmra.mxu0 %v5882_v49 }
 0x14e   : > { %9906 = vst [vmem:[#allocation28_spill] sm:$0xff] %v6186_v37  ;;  %v6197_v42 = vpop.f32.mrf.mxu2  ;;  %v6205_v36 = vpop.f32.mrf.mxu3 }
 0x150   : > { %1423 = vmatmul.f32.gmra.mxu1 %v5888_v56 }
 0x152   : > { %v6195_v3 = vpop.f32.mrf.mxu0 }
 0x153   : > { %9907 = vst [vmem:[#allocation29_spill] sm:$0xff] %v6195_v3 }
 0x155   : > { %v6199_v43 = vpop.f32.mrf.mxu1  ;;  %1277 = vmatmul.f32.gmra.mxu0 %v5888_v56 }
 0x156   : > { %9908 = vst [vmem:[#allocation30_spill] sm:$0xff] %v6199_v43  ;;  %v6210_v12 = vpop.f32.mrf.mxu2  ;;  %v6217_v43 = vpop.f32.mrf.mxu3 }
 0x157   : > { %9913 = vst [vmem:[#allocation35_spill] sm:$0xff] %v6217_v43 }
 0x158   : > { %1427 = vmatmul.f32.gmra.mxu1 %v5894_v63 }
 0x15a   : > { %v6203_v37 = vpop.f32.mrf.mxu0 }
 0x15b   : > { %9909 = vst [vmem:[#allocation31_spill] sm:$0xff] %v6203_v37 }
 0x15d   : > { %v6207_v49 = vpop.f32.mrf.mxu1  ;;  %1281 = vmatmul.f32.gmra.mxu0 %v5894_v63 }
 0x15e   : > { %9910 = vst [vmem:[#allocation32_spill] sm:$0xff] %v6207_v49  ;;  %v6221_v56 = vpop.f32.mrf.mxu2  ;;  %v6228_v63 = vpop.f32.mrf.mxu3 }
 0x15f   : > { %9916 = vst [vmem:[#allocation38_spill] sm:$0xff] %v6228_v63 }
 0x160   : > { %1431 = vmatmul.f32.gmra.mxu1 %v5900_v6 }
 0x162   : > { %v6213_v28 = vpop.f32.mrf.mxu0 }
 0x163   : > { %9911 = vst [vmem:[#allocation33_spill] sm:$0xff] %v6213_v28 }
 0x165   : > { %v6215_v3 = vpop.f32.mrf.mxu1  ;;  %1285 = vmatmul.f32.gmra.mxu0 %v5900_v6 }
 0x166   : > { %9912 = vst [vmem:[#allocation34_spill] sm:$0xff] %v6215_v3  ;;  %v6231_v28 = vpop.f32.mrf.mxu2  ;;  %v6239_v6 = vpop.f32.mrf.mxu3 }
 0x167   : > { %9917 = vst [vmem:[#allocation39_spill] sm:$0xff] %v6231_v28 }
 0x168   : > { %1435 = vmatmul.f32.gmra.mxu1 %v5906_v15  ;;  %9920 = vst [vmem:[#allocation42_spill] sm:$0xff] %v6239_v6 }
 0x16a   : > { %v6223_v37 = vpop.f32.mrf.mxu0 }
 0x16b   : > { %9914 = vst [vmem:[#allocation36_spill] sm:$0xff] %v6223_v37 }
 0x16d   : > { %v6225_v49 = vpop.f32.mrf.mxu1  ;;  %1289 = vmatmul.f32.gmra.mxu0 %v5906_v15 }
 0x16e   : > { %9915 = vst [vmem:[#allocation37_spill] sm:$0xff] %v6225_v49  ;;  %v6243_v49 = vpop.f32.mrf.mxu2 }
 0x16f   : > { %9922 = vst [vmem:[#allocation44_spill] sm:$0xff] %v6243_v49 }
 0x170   : > { %1439 = vmatmul.f32.gmra.mxu1 %v5912_v23 }
 0x172   : > { %v6233_v3 = vpop.f32.mrf.mxu0 }
 0x173   : > { %9918 = vst [vmem:[#allocation40_spill] sm:$0xff] %v6233_v3  ;;  %v6251_v3 = vpop.f32.mrf.mxu3 }
 0x174   : > { %9925 = vst [vmem:[#allocation47_spill] sm:$0xff] %v6251_v3 }
 0x175   : > { %v6235_v10 = vpop.f32.mrf.mxu1  ;;  %1293 = vmatmul.f32.gmra.mxu0 %v5912_v23 }
 0x176   : > { %9919 = vst [vmem:[#allocation41_spill] sm:$0xff] %v6235_v10  ;;  %v6256_v23 = vpop.f32.mrf.mxu2 }
 0x177   : > { %9927 = vst [vmem:[#allocation49_spill] sm:$0xff] %v6256_v23 }
 0x178   : > { %1443 = vmatmul.f32.gmra.mxu1 %v5918_v31 }
 0x17a   : > { %v6241_v37 = vpop.f32.mrf.mxu0 }
 0x17b   : > { %9921 = vst [vmem:[#allocation43_spill] sm:$0xff] %v6241_v37 }
 0x17d   : > { %v6245_v15 = vpop.f32.mrf.mxu1  ;;  %1297 = vmatmul.f32.gmra.mxu0 %v5918_v31 }
 0x17e   : > { %9923 = vst [vmem:[#allocation45_spill] sm:$0xff] %v6245_v15  ;;  %v6263_v15 = vpop.f32.mrf.mxu3  ;;  %v6267_v31 = vpop.f32.mrf.mxu2 }
 0x17f   : > { %9930 = vst [vmem:[#allocation52_spill] sm:$0xff] %v6263_v15 }
 0x180   : > { %1447 = vmatmul.f32.gmra.mxu1 %v5924_v39  ;;  %9931 = vst [vmem:[#allocation53_spill] sm:$0xff] %v6267_v31 }
 0x182   : > { %v6249_v16 = vpop.f32.mrf.mxu0 }
 0x183   : > { %9924 = vst [vmem:[#allocation46_spill] sm:$0xff] %v6249_v16  ;;  %v5786_v16 = vmov 8.0  }
 0x184   : > { %5648 = vrcp.f32 %v5786_v16 }
 0x185   : > { %v6253_v10 = vpop.f32.mrf.mxu1  ;;  %1301 = vmatmul.f32.gmra.mxu0 %v5924_v39 }
 0x186   : > { %9926 = vst [vmem:[#allocation48_spill] sm:$0xff] %v6253_v10  ;;  %v6272_v23 = vpop.f32.mrf.mxu3 }
 0x187   : > { %9933 = vst [vmem:[#allocation55_spill] sm:$0xff] %v6272_v23 }
 0x188   : > { %1451 = vmatmul.f32.gmra.mxu1 %v5930_v47 }
 0x18a   : > { %v6259_v37 = vpop.f32.mrf.mxu0  ;;  %v5649_v3 = vpop.eup %5648 }
 0x18b   : > { %9928 = vst [vmem:[#allocation50_spill] sm:$0xff] %v6259_v37  ;;  %v6275_v37 = vpop.f32.mrf.mxu2  ;;  %vm1753_vm3 = vweird.f32 %v5649_v3 }
 0x18c   : > { %9934 = vst [vmem:[#allocation56_spill] sm:$0xff] %v6275_v37 }
 0x18d   : > { %v6261_v6 = vpop.f32.mrf.mxu1  ;;  %1305 = vmatmul.f32.gmra.mxu0 %v5930_v47 }
 0x18e   : > { %9929 = vst [vmem:[#allocation51_spill] sm:$0xff] %v6261_v6  ;;  %v1749_v6 = vmul.f32 8.0, %v5649_v3  ;;  %v6281_v23 = vpop.f32.mrf.mxu3 }
 0x190   : > { %1455 = vmatmul.f32.gmra.mxu1 %v5936_v55  ;;  %v1750_v16 = vsub.f32 1.0, %v1749_v6 }
 0x192   : > { %v6269_v10 = vpop.f32.mrf.mxu0  ;;  %v1751_v52 = vmul.f32 %v5649_v3, %v1750_v16  ;;  %v750_v16 = vadd.f32 %v6040_v29, %v6047_v44 }
 0x193   : > { %9932 = vst [vmem:[#allocation54_spill] sm:$0xff] %v6269_v10  ;;  %v6284_v28 = vpop.f32.mrf.mxu2 }
 0x195   : > { %v1396_v39 = vpop.f32.mrf.mxu1  ;;  %1309 = vmatmul.f32.gmra.mxu0 %v5936_v55 }
 0x198   : > { %1459 = vmatmul.f32.gmra.mxu1 %v5942_v0 }
 0x19a   : > { %v1250_v47 = vpop.f32.mrf.mxu0 }
 0x19b   : > { %v1251_v15 = vadd.f32 %v1250_v47, %v5959_v34 }
 0x19d   : > { %v1400_v31 = vpop.f32.mrf.mxu1  ;;  %v1397_v63 = vadd.f32 %v1396_v39, %v1251_v15  ;;  %1313 = vmatmul.f32.gmra.mxu0 %v5942_v0  ;;  %v1752_v15 = vadd.f32 %v5649_v3, %v1751_v52  ;;  %v746_v39 = vadd.f32 %v6028_v1, %v6037_v25  ;;  %v754_v52 = vadd.f32 %v6050_v46, %v6057_v2 }
 0x19e   : > { %v762_v1 = vadd.f32 %v6070_v40, %v6077_v61 }
 0x19f   : > { %v1524_v10 = vsel %vm1523_vm2, %v1397_v63, 0.0 }
 0x1a0   : > { %1463 = vmatmul.f32.gmra.mxu1 %v5948_v8  ;;  %v1525_v55 = vrot.slane %v1524_v10, 4  ;;  %v922_v61 = vadd.f32 %v6180_v17, %v762_v1 }
 0x1a2   : > { %v1526_v43 = vadd.f32 %v1525_v55, %v1524_v10  ;;  %v1254_v49 = vpop.f32.mrf.mxu0  ;;  %v902_v55 = vadd.f32 %v6124_v57, %v746_v39  ;;  %v6316_v57 = vpop.f32.mrf.mxu2 }
 0x1a3   : > { %v1255_v37 = vadd.f32 %v1254_v49, %v5967_v53 }
 0x1a4   : > { %v1527_v34 = vrot.slane %v1526_v43, 2 }
 0x1a5   : > { %v1404_v47 = vpop.f32.mrf.mxu1  ;;  %v6286_v6 = vadd.f32 %v1400_v31, %v1255_v37  ;;  %1317 = vmatmul.f32.gmra.mxu0 %v5948_v8  ;;  %v758_v8 = vadd.f32 %v6060_v4, %v6067_v33  ;;  %v6300_v37 = vsel %vm1753_vm3, %v5649_v3, %v1752_v15  ;;  %v907_v4 = vadd.f32 %v6136_v50, %v750_v16 }
 0x1a6   : > { %v1528_v0 = vadd.f32 %v1527_v34, %v1526_v43  ;;  %v6305_v34 = vpop.f32.mrf.mxu3  ;;  %v912_v33 = vadd.f32 %v6149_v11, %v754_v52  ;;  %v766_v50 = vadd.f32 %v6080_v5, %v6087_v41 }
 0x1a7   : > { %v1531_v10 = vsel %vm1523_vm2, %v6286_v6, 0.0  ;;  %v917_v3 = vadd.f32 %v6160_v20, %v758_v8 }
 0x1a8   : > { %1467 = vmatmul.f32.gmra.mxu1 %v5954_v19  ;;  %v1529_v53 = vrot.slane %v1528_v0, 1  ;;  %v1532_v49 = vrot.slane %v1531_v10, 4  ;;  %v6339_v5 = vadd.f32 %v6156_v48, %v912_v33 }
 0x1a9   : > { %v6342_v41 = vadd.f32 %v6172_v59, %v917_v3 }
 0x1aa   : > { %v1530_v25 = vadd.f32 %v1529_v53, %v1528_v0  ;;  %v1533_v43 = vadd.f32 %v1532_v49, %v1531_v10  ;;  %v1258_v31 = vpop.f32.mrf.mxu0  ;;  %v6321_v0 = vadd.f32 %v6132_v21, %v902_v55  ;;  %v2523_v21 = vld [vmem:[%s9767_s2] sm:$0xff] }
 0x1ab   : > { %v1259_v29 = vadd.f32 %v1258_v31, %v5975_v9  ;;  %v6344_v39 = vand.u32 4294901760, %v2523_v21 }
 0x1ac   : > { %v1755_v44 = vmul.f32 %v6300_v37, %v1530_v25  ;;  %v1534_v46 = vrot.slane %v1533_v43, 2 }
 0x1ad   : > { %v1408_v2 = vpop.f32.mrf.mxu1  ;;  %v6312_v40 = vadd.f32 %v1404_v47, %v1259_v29  ;;  %1321 = vmatmul.f32.gmra.mxu0 %v5954_v19  ;;  %v770_v19 = vadd.f32 %v6089_v62, %v6103_v13  ;;  %v6336_v47 = vadd.f32 %v6144_v7, %v907_v4  ;;  %v6347_v62 = vadd.f32 %v6193_v14, %v922_v61  ;;  %v9938_v4 = vld [vmem:[#allocation39_spill] sm:$0xff] }
 0x1ae   : > { %v6318_v15 = vsub.f32 %v1397_v63, %v1755_v44  ;;  %v1535_v9 = vadd.f32 %v1534_v46, %v1533_v43  ;;  %v774_v7 = vadd.f32 %v6107_v32, %v6113_v26  ;;  %2642 = vmatpush.msrb.mxu2 %v6344_v39  ;;  %v2931_v48 = vsub.f32 %v2523_v21, %v6344_v39  ;;  %v6363_v26 = vpop.f32.mrf.mxu3 }
 0x1af   : > { %v1538_v11 = vsel %vm1523_vm2, %v6312_v40, 0.0  ;;  %3269 = vmatpush.msra.mxu1 %v6344_v39  ;;  %v927_v14 = vadd.f32 %v6197_v42, %v766_v50  ;;  %v932_v52 = vadd.f32 %v6210_v12, %v770_v19  ;;  %v9935_v43 = vand.u32 4294901760, %v6009_v18 }
 0x1b0   : > { %1471 = vmatmul.f32.gmra.mxu1 %v5962_v38  ;;  %v1819_v17 = vmul.f32 %v6318_v15, %v6318_v15  ;;  %v1536_v20 = vrot.slane %v1535_v9, 1  ;;  %v1539_v63 = vrot.slane %v1538_v11, 4  ;;  %v778_v32 = vadd.f32 %v6115_v22, %v6118_v54  ;;  %3088 = vmatpush.msra.mxu0 %v2931_v48 }
 0x1b1   : > { %3478 = vmatpush.msra.mxu2 %v9935_v43  ;;  %v782_v42 = vadd.f32 %v6120_v24, %v6126_v60  ;;  %v9936_v18 = vand.u32 4294901760, %v6100_v45  ;;  %v937_v54 = vadd.f32 %v6221_v56, %v774_v7  ;;  %v6381_v24 = vpop.f32.mrf.mxu2  ;;  %v6388_v56 = vadd.f32 %v6205_v36, %v927_v14  ;;  %v9941_v36 = vld [vmem:[#allocation4_spill] sm:$0xff] }
 0x1b2   : > { %v1851_v13 = vsel %vm1523_vm2, %v1819_v17, 0.0  ;;  %v1537_v10 = vadd.f32 %v1536_v20, %v1535_v9  ;;  %v1540_v53 = vadd.f32 %v1539_v63, %v1538_v11  ;;  %v1262_v49 = vpop.f32.mrf.mxu0  ;;  %v942_v33 = vadd.f32 %v9938_v4, %v778_v32  ;;  %v9939_v9 = vld [vmem:[#allocation44_spill] sm:$0xff]  ;;  %v9940_v17 = vld [vmem:[#allocation35_spill] sm:$0xff] }
 0x1b3   : > { %v1852_v16 = vrot.slane %v1851_v13, 4  ;;  %v1263_v59 = vadd.f32 %v1262_v49, %v5983_v30  ;;  %v2932_v30 = vand.u32 4294901760, %v2931_v48  ;;  %3482 = vmatpush.msra.mxu2 %v9936_v18  ;;  %v947_v50 = vadd.f32 %v9939_v9, %v782_v42  ;;  %v9945_v14 = vld [vmem:[#allocation20_spill] sm:$0xff]  ;;  %v9948_v42 = vld [vmem:[#allocation47_spill] sm:$0xff]  ;;  %v9955_v9 = vld [vmem:[#allocation26_spill] sm:$0xff] }
 0x1b4   : > { %v1756_v8 = vmul.f32 %v6300_v37, %v1537_v10  ;;  %v1541_v1 = vrot.slane %v1540_v53, 2  ;;  %v6394_v20 = vadd.f32 %v9940_v17, %v932_v52  ;;  %v9954_v4 = vld [vmem:[#allocation23_spill] sm:$0xff] }
 0x1b5   : > { %v1412_v25 = vpop.f32.mrf.mxu1  ;;  %v1853_v31 = vadd.f32 %v1852_v16, %v1851_v13  ;;  %v6365_v55 = vadd.f32 %v1408_v2, %v1263_v59  ;;  %1325 = vmatmul.f32.gmra.mxu0 %v5962_v38  ;;  %v2933_v44 = vsub.f32 %v2931_v48, %v2932_v30  ;;  %v786_v38 = vadd.f32 %v6128_v51, %v6134_v27  ;;  %v9942_v13 = vld [vmem:[#allocation38_spill] sm:$0xff] }
 0x1b6   : > { %v6371_v12 = vsub.f32 %v6286_v6, %v1756_v8  ;;  %v1542_v29 = vadd.f32 %v1541_v1, %v1540_v53  ;;  %v9937_v2 = vand.u32 4294901760, %v6177_v35  ;;  %v6398_v10 = vadd.f32 %v9942_v13, %v937_v54  ;;  %v9943_v53 = vld [vmem:[#allocation49_spill] sm:$0xff]  ;;  %v9944_v59 = vld [vmem:[#allocation6_spill] sm:$0xff]  ;;  %v9946_v8 = vld [vmem:[#allocation19_spill] sm:$0xff] }
 0x1b7   : > { %v1854_v22 = vrot.slane %v1853_v31, 2  ;;  %v1545_v46 = vsel %vm1523_vm2, %v6365_v55, 0.0  ;;  %v2934_v61 = vand.u32 4294901760, %v2933_v44  ;;  %v952_v49 = vadd.f32 %v9943_v53, %v786_v38  ;;  %v9950_v44 = vld [vmem:[#allocation22_spill] sm:$0xff] }
 0x1b8   : > { %1475 = vmatmul.f32.gmra.mxu1 %v5970_v58  ;;  %v1820_v60 = vmul.f32 %v6371_v12, %v6371_v12  ;;  %v1543_v6 = vrot.slane %v1542_v29, 1  ;;  %v1546_v45 = vrot.slane %v1545_v46, 4  ;;  %3486 = vmatpush.msra.mxu2 %v9937_v2  ;;  %v790_v52 = vadd.f32 %v9946_v8, %v9945_v14  ;;  %v9953_v2 = vld [vmem:[#allocation24_spill] sm:$0xff] }
 0x1b9   : > { %v1855_v3 = vadd.f32 %v1854_v22, %v1853_v31  ;;  %2935 = vmatpush.msrb.mxu3 %v2934_v61  ;;  %v9947_v31 = vld [vmem:[#allocation42_spill] sm:$0xff] }
 0x1ba   : > { %v1858_v51 = vsel %vm1523_vm2, %v1820_v60, 0.0  ;;  %v1544_v27 = vadd.f32 %v1543_v6, %v1542_v29  ;;  %v1547_v11 = vadd.f32 %v1546_v45, %v1545_v46  ;;  %v1266_v19 = vpop.f32.mrf.mxu0  ;;  %3490 = vmatpush.msra.mxu2 %v2932_v30  ;;  %v6409_v30 = vadd.f32 %v9947_v31, %v942_v33  ;;  %v9949_v22 = vld [vmem:[#allocation18_spill] sm:$0xff]  ;;  %v9951_v46 = vld [vmem:[#allocation21_spill] sm:$0xff]  ;;  %v6420_v60 = vpop.f32.mrf.mxu3  ;;  %v9961_v31 = vld [vmem:[#allocation7_spill] sm:$0xff] }
 0x1bb   : > { %v1856_v35 = vrot.slane %v1855_v3, 1  ;;  %v1859_v21 = vrot.slane %v1858_v51, 4  ;;  %v1267_v63 = vadd.f32 %v1266_v19, %v9941_v36  ;;  %3633 = vmatpush.msra.mxu3 %v9944_v59  ;;  %v6412_v29 = vadd.f32 %v9948_v42, %v947_v50  ;;  %v9952_v45 = vld [vmem:[#allocation2_spill] sm:$0xff]  ;;  %v9956_v50 = vld [vmem:[#allocation52_spill] sm:$0xff] }
 0x1bc   : > { %v1757_v7 = vmul.f32 %v6300_v37, %v1544_v27  ;;  %v1548_v16 = vrot.slane %v1547_v11, 2  ;;  %v794_v38 = vadd.f32 %v9951_v46, %v9950_v44  ;;  %v9957_v27 = vld [vmem:[#allocation53_spill] sm:$0xff]  ;;  %v9960_v59 = vld [vmem:[#allocation56_spill] sm:$0xff]  ;;  %v9962_v44 = vld [vmem:[#allocation55_spill] sm:$0xff] }
 0x1bd   : > { %v1416_v48 = vpop.f32.mrf.mxu1  ;;  %v1857_v1 = vadd.f32 %v1856_v35, %v1855_v3  ;;  %v1860_v43 = vadd.f32 %v1859_v21, %v1858_v51  ;;  %v6405_v32 = vadd.f32 %v1412_v25, %v1267_v63  ;;  %1329 = vmatmul.f32.gmra.mxu0 %v5970_v58  ;;  %3635 = vmatpush.msra.mxu3 %v9949_v22  ;;  %v9958_v35 = vld [vmem:[#allocation27_spill] sm:$0xff]  ;;  %v9959_v21 = vld [vmem:[#allocation25_spill] sm:$0xff]  ;;  %v981_v63 = vpop.f32.mrf.mxu2 }
 0x1be   : > { %v6415_v18 = vsub.f32 %v6312_v40, %v1757_v7  ;;  %v1549_v54 = vadd.f32 %v1548_v16, %v1547_v11  ;;  %v798_v40 = vadd.f32 %v9954_v4, %v9953_v2  ;;  %v6432_v51 = vadd.f32 %v9956_v50, %v952_v49  ;;  %v9963_v46 = vld [vmem:[#allocation29_spill] sm:$0xff] }
 0x1bf   : > { %v2075_v25 = vmul.f32 %v1857_v1, %v6300_v37  ;;  %v1861_v58 = vrot.slane %v1860_v43, 2  ;;  %v1552_v6 = vsel %vm1523_vm2, %v6405_v32, 0.0  ;;  %3637 = vmatpush.msra.mxu3 %v9955_v9  ;;  %v957_v11 = vadd.f32 %v9957_v27, %v790_v52  ;;  %v9967_v27 = vld [vmem:[#allocation3_spill] sm:$0xff] }
 0x1c0   : > { %1479 = vmatmul.f32.gmra.mxu1 %v9952_v45  ;;  %v1821_v33 = vmul.f32 %v6415_v18, %v6415_v18  ;;  %v1550_v3 = vrot.slane %v1549_v54, 1  ;;  %v1553_v61 = vrot.slane %v1552_v6, 4  ;;  %v802_v36 = vadd.f32 %v9959_v21, %v9958_v35 }
 0x1c1   : > { %v6435_v19 = vadd.f32 1e-05, %v2075_v25  ;;  %v1862_v17 = vadd.f32 %v1861_v58, %v1860_v43  ;;  %3639 = vmatpush.msra.mxu3 %v6344_v39  ;;  %v962_v14 = vadd.f32 %v9960_v59, %v794_v38  ;;  %v967_v52 = vadd.f32 %v6284_v28, %v798_v40  ;;  %v9964_v25 = vld [vmem:[#allocation28_spill] sm:$0xff] }
 0x1c2   : > { %v1865_v13 = vsel %vm1523_vm2, %v1821_v33, 0.0  ;;  %v1551_v53 = vadd.f32 %v1550_v3, %v1549_v54  ;;  %v1554_v7 = vadd.f32 %v1553_v61, %v1552_v6  ;;  %v1270_v16 = vpop.f32.mrf.mxu0  ;;  %v6447_v54 = vadd.f32 %v9962_v44, %v957_v11  ;;  %v9965_v33 = vld [vmem:[#allocation31_spill] sm:$0xff]  ;;  %v9966_v3 = vld [vmem:[#allocation30_spill] sm:$0xff]  ;;  %v9969_v44 = vld [vmem:[#allocation33_spill] sm:$0xff] }
 0x1c3   : > { %5650 = vrsqrt.f32 %v6435_v19  ;;  %v1863_v49 = vrot.slane %v1862_v17, 1  ;;  %v1866_v8 = vrot.slane %v1865_v13, 4  ;;  %v1271_v42 = vadd.f32 %v1270_v16, %v9961_v31 }
 0x1c4   : > { %v1758_v1 = vmul.f32 %v6300_v37, %v1551_v53  ;;  %v1555_v43 = vrot.slane %v1554_v7, 2  ;;  %v806_v39 = vadd.f32 %v9964_v25, %v9963_v46  ;;  %v972_v6 = vadd.f32 %v6316_v57, %v802_v36  ;;  %v9970_v46 = vld [vmem:[#allocation32_spill] sm:$0xff] }
 0x1c5   : > { %v1420_v22 = vpop.f32.mrf.mxu1  ;;  %v1864_v58 = vadd.f32 %v1863_v49, %v1862_v17  ;;  %v1867_v38 = vadd.f32 %v1866_v8, %v1865_v13  ;;  %1333 = vmatmul.f32.gmra.mxu0 %v9952_v45  ;;  %v6456_v4 = vadd.f32 %v1416_v48, %v1271_v42  ;;  %v6459_v40 = vadd.f32 %v6281_v23, %v962_v14  ;;  %v1184_v17 = vpop.f32.mrf.mxu3 }
 0x1c6   : > { %v6454_v28 = vsub.f32 %v6365_v55, %v1758_v1  ;;  %v1556_v2 = vadd.f32 %v1555_v43, %v1554_v7  ;;  %v810_v61 = vadd.f32 %v9966_v3, %v9965_v33  ;;  %v6466_v45 = vadd.f32 %v6305_v34, %v967_v52  ;;  %v9968_v43 = vld [vmem:[#allocation9_spill] sm:$0xff] }
 0x1c7   : > { %v2076_v9 = vmul.f32 %v1864_v58, %v6300_v37  ;;  %v1868_v50 = vrot.slane %v1867_v38, 2  ;;  %v1559_v48 = vsel %vm1523_vm2, %v6456_v4, 0.0  ;;  %v977_v11 = vadd.f32 %v6381_v24, %v806_v39  ;;  %v986_v24 = vpop.f32.mrf.mxu2 }
 0x1c8   : > { %1483 = vmatmul.f32.gmra.mxu1 %v9967_v27  ;;  %v1822_v57 = vmul.f32 %v6454_v28, %v6454_v28  ;;  %v1557_v55 = vrot.slane %v1556_v2, 1  ;;  %v1560_v36 = vrot.slane %v1559_v48, 4  ;;  %v6476_v13 = vadd.f32 %v6363_v26, %v972_v6 }
 0x1c9   : > { %v5651_v23 = vpop.eup %5650  ;;  %v6473_v35 = vadd.f32 1e-05, %v2076_v9  ;;  %v1869_v21 = vadd.f32 %v1868_v50, %v1867_v38  ;;  %v982_v59 = vadd.f32 %v981_v63, %v810_v61  ;;  %v6484_v42 = vadd.f32 %v6420_v60, %v977_v11  ;;  %v9971_v61 = vld [vmem:[#allocation5_spill] sm:$0xff] }
 0x1ca   : > { %v2140_v34 = vmul.f32 %v5651_v23, %v6435_v19  ;;  %v1872_v53 = vsel %vm1523_vm2, %v1822_v57, 0.0  ;;  %v1558_v7 = vadd.f32 %v1557_v55, %v1556_v2  ;;  %v1274_v16 = vpop.f32.mrf.mxu0  ;;  %v1561_v1 = vadd.f32 %v1560_v36, %v1559_v48 }
 0x1cb   : > { %5652 = vrsqrt.f32 %v6473_v35  ;;  %v1870_v14 = vrot.slane %v1869_v21, 1  ;;  %v1873_v49 = vrot.slane %v1872_v53, 4  ;;  %v1275_v31 = vadd.f32 %v1274_v16, %v9968_v43  ;;  %v9973_v16 = vld [vmem:[#allocation34_spill] sm:$0xff] }
 0x1cc   : > { %v2141_v8 = vmul.f32 %v5651_v23, %v2140_v34  ;;  %v1759_v52 = vmul.f32 %v6300_v37, %v1558_v7  ;;  %v814_v25 = vadd.f32 %v9970_v46, %v9969_v44  ;;  %v1562_v6 = vrot.slane %v1561_v1, 2  ;;  %v9972_v7 = vld [vmem:[#allocation36_spill] sm:$0xff]  ;;  %v9974_v46 = vld [vmem:[#allocation11_spill] sm:$0xff] }
 0x1cd   : > { %v1424_v26 = vpop.f32.mrf.mxu1  ;;  %v1871_v39 = vadd.f32 %v1870_v14, %v1869_v21  ;;  %v1874_v63 = vadd.f32 %v1873_v49, %v1872_v53  ;;  %1337 = vmatmul.f32.gmra.mxu0 %v9967_v27  ;;  %v6492_v2 = vadd.f32 %v1420_v22, %v1275_v31  ;;  %v6494_v33 = vadd.f32 %v1184_v17, %v982_v59  ;;  %v1190_v53 = vpop.f32.mrf.mxu3 }
 0x1ce   : > { %v2142_v58 = vmul.f32 0.5, %v2141_v8  ;;  %v6490_v38 = vsub.f32 %v6405_v32, %v1759_v52  ;;  %vm2146_vm4 = vweird.f32 %v5651_v23  ;;  %v1563_v27 = vadd.f32 %v1562_v6, %v1561_v1 }
 0x1cf   : > { %v2077_v60 = vmul.f32 %v1871_v39, %v6300_v37  ;;  %v1875_v3 = vrot.slane %v1874_v63, 2  ;;  %v1566_v32 = vsel %vm1523_vm2, %v6492_v2, 0.0  ;;  %v987_v55 = vadd.f32 %v986_v24, %v814_v25 }
 0x1d0   : > { %1487 = vmatmul.f32.gmra.mxu1 %v9971_v61  ;;  %v2143_v9 = vsub.f32 1.5, %v2142_v58  ;;  %v1823_v50 = vmul.f32 %v6490_v38, %v6490_v38  ;;  %v1567_v11 = vrot.slane %v1566_v32, 4  ;;  %vm2145_vm5 = vweird.f32 %v6435_v19 }
 0x1d1   : > { %v5653_v57 = vpop.eup %5652  ;;  %v6502_v22 = vadd.f32 1e-05, %v2077_v60  ;;  %v1876_v48 = vadd.f32 %v1875_v3, %v1874_v63  ;;  %v818_v59 = vadd.f32 %v9973_v16, %v9972_v7  ;;  %vm2147_vm6 = vmor %vm2145_vm5, %vm2146_vm4  ;;  %v1564_v52 = vrot.slane %v1563_v27, 1  ;;  %v991_v63 = vpop.f32.mrf.mxu2 }
 0x1d2   : > { %v2144_v17 = vmul.f32 %v5651_v23, %v2143_v9  ;;  %v2150_v21 = vmul.f32 %v5653_v57, %v6473_v35  ;;  %v1879_v36 = vsel %vm1523_vm2, %v1823_v50, 0.0  ;;  %v1278_v34 = vpop.f32.mrf.mxu0  ;;  %v1568_v1 = vadd.f32 %v1567_v11, %v1566_v32  ;;  %v9975_v32 = vld [vmem:[#allocation8_spill] sm:$0xff] }
 0x1d3   : > { %5654 = vrsqrt.f32 %v6502_v22  ;;  %v1877_v14 = vrot.slane %v1876_v48, 1  ;;  %v1880_v49 = vrot.slane %v1879_v36, 4  ;;  %v1279_v25 = vadd.f32 %v1278_v34, %v9974_v46 }
 0x1d4   : > { %v2148_v24 = vsel %vm2147_vm6, %v5651_v23, %v2144_v17  ;;  %v2151_v8 = vmul.f32 %v5653_v57, %v2150_v21  ;;  %v6514_v39 = vadd.f32 %v1190_v53, %v987_v55  ;;  %v1565_v6 = vadd.f32 %v1564_v52, %v1563_v27 }
 0x1d5   : > { %v1428_v19 = vpop.f32.mrf.mxu1  ;;  %v2459_v43 = vmul.f32 %v2148_v24, %v6318_v15  ;;  %v1878_v31 = vadd.f32 %v1877_v14, %v1876_v48  ;;  %v1881_v44 = vadd.f32 %v1880_v49, %v1879_v36  ;;  %1341 = vmatmul.f32.gmra.mxu0 %v9971_v61  ;;  %v1569_v60 = vrot.slane %v1568_v1, 2 }
 0x1d6   : > { %v2152_v58 = vmul.f32 0.5, %v2151_v8  ;;  %v6517_v50 = vadd.f32 %v1424_v26, %v1279_v25  ;;  %vm2156_vm7 = vweird.f32 %v5653_v57  ;;  %v1760_v48 = vmul.f32 %v6300_v37, %v1565_v6 }
 0x1d7   : > { %v2491_v3 = vmax.f32 %v2459_v43, 0.0  ;;  %v2078_v23 = vmul.f32 %v1878_v31, %v6300_v37  ;;  %v1882_v9 = vrot.slane %v1881_v44, 2  ;;  %v1570_v11 = vadd.f32 %v1569_v60, %v1568_v1 }
 0x1d8   : > { %1491 = vmatmul.f32.gmra.mxu1 %v9975_v32  ;;  %v2153_v15 = vsub.f32 1.5, %v2152_v58  ;;  %v6523_v55 = vadd.f32 %v991_v63, %v818_v59  ;;  %v1573_v21 = vsel %vm1523_vm2, %v6517_v50, 0.0  ;;  %vm2155_vm8 = vweird.f32 %v6473_v35 }
 0x1d9   : > { %v6521_v61 = vpop.eup %5654  ;;  %v6525_v17 = vadd.f32 1e-05, %v2078_v23  ;;  %v1883_v27 = vadd.f32 %v1882_v9, %v1881_v44  ;;  %v6533_v34 = vsub.f32 %v6456_v4, %v1760_v48  ;;  %vm2157_vm9 = vmor %vm2155_vm8, %vm2156_vm7  ;;  %v1571_v16 = vrot.slane %v1570_v11, 1 }
 0x1da   : > { %v2154_v36 = vmul.f32 %v5653_v57, %v2153_v15  ;;  %v2160_v26 = vmul.f32 %v6521_v61, %v6502_v22  ;;  %v1282_v53 = vpop.f32.mrf.mxu0  ;;  %v2528_v59 = vsel %vm1523_vm2, %v2491_v3, 0  ;;  %v1574_v24 = vrot.slane %v1573_v21, 4 }
 0x1db   : > { %5656 = vrsqrt.f32 %v6525_v17  ;;  %v1884_v7 = vrot.slane %v1883_v27, 1  ;;  %v1824_v35 = vmul.f32 %v6533_v34, %v6533_v34  ;;  %v1572_v1 = vadd.f32 %v1571_v16, %v1570_v11 }
 0x1dc   : > { %v2158_v14 = vsel %vm2157_vm9, %v5653_v57, %v2154_v36  ;;  %v2161_v49 = vmul.f32 %v6521_v61, %v2160_v26  ;;  %v1283_v43 = vadd.f32 %v1282_v53, %v6321_v0  ;;  %v1575_v46 = vadd.f32 %v1574_v24, %v1573_v21 }
 0x1dd   : > { %v1432_v8 = vpop.f32.mrf.mxu1  ;;  %v2460_v52 = vmul.f32 %v2158_v14, %v6371_v12  ;;  %v1885_v4 = vadd.f32 %v1884_v7, %v1883_v27  ;;  %1345 = vmatmul.f32.gmra.mxu0 %v9975_v32  ;;  %v1886_v44 = vsel %vm1523_vm2, %v1824_v35, 0.0  ;;  %v6544_v57 = vand.u32 4294901760, %v2528_v59  ;;  %v9976_v12 = vld [vmem:[#allocation10_spill] sm:$0xff] }
 0x1de   : > { %v2162_v31 = vmul.f32 0.5, %v2161_v49  ;;  %vm2165_vm10 = vweird.f32 %v6502_v22  ;;  %v1887_v63 = vrot.slane %v1886_v44, 4  ;;  %v1761_v58 = vmul.f32 %v6300_v37, %v1572_v1 }
 0x1df   : > { %v2079_v25 = vmul.f32 %v1885_v4, %v6300_v37  ;;  %v2492_v6 = vmax.f32 %v2460_v52, 0.0  ;;  %v1576_v0 = vrot.slane %v1575_v46, 2  ;;  %v6550_v3 = vadd.f32 %v1428_v19, %v1283_v43  ;;  %2937 = vmatmul.f32.vlgmr.msrb.gmra.mxu3 %v6544_v57 }
 0x1e0   : > { %1495 = vmatmul.f32.gmra.mxu1 %v9976_v12  ;;  %v2163_v60 = vsub.f32 1.5, %v2162_v31  ;;  %vm2166_vm11 = vweird.f32 %v6521_v61  ;;  %v1888_v32 = vadd.f32 %v1887_v63, %v1886_v44  ;;  %v6559_v15 = vsub.f32 %v6492_v2, %v1761_v58 }
 0x1e1   : > { %v6553_v23 = vpop.eup %5656  ;;  %v6556_v9 = vadd.f32 1e-05, %v2079_v25  ;;  %vm2175_vm12 = vweird.f32 %v6525_v17  ;;  %v1577_v19 = vadd.f32 %v1576_v0, %v1575_v46  ;;  %v6569_v26 = vsub.f32 %v2528_v59, %v6544_v57  ;;  %vm6573_vm13 = vmor %vm2165_vm10, %vm2166_vm11  ;;  %v9979_v25 = vld [vmem:[#allocation12_spill] sm:$0xff] }
 0x1e2   : > { %v2164_v48 = vmul.f32 %v6521_v61, %v2163_v60  ;;  %v2170_v11 = vmul.f32 %v6553_v23, %v6525_v17  ;;  %v1286_v27 = vpop.f32.mrf.mxu0  ;;  %v1889_v21 = vrot.slane %v1888_v32, 2  ;;  %v1825_v36 = vmul.f32 %v6559_v15, %v6559_v15 }
 0x1e3   : > { %5658 = vrsqrt.f32 %v6556_v9  ;;  %v1578_v7 = vrot.slane %v1577_v19, 1  ;;  %v1580_v16 = vsel %vm1523_vm2, %v6550_v3, 0.0  ;;  %v2531_v49 = vsel %vm1523_vm2, %v2492_v6, 0 }
 0x1e4   : > { %v2171_v53 = vmul.f32 %v6553_v23, %v2170_v11  ;;  %v2168_v59 = vsel %vm6573_vm13, %v6521_v61, %v2164_v48  ;;  %v1890_v35 = vadd.f32 %v1889_v21, %v1888_v32  ;;  %v1893_v22 = vsel %vm1523_vm2, %v1825_v36, 0.0 }
 0x1e5   : > { %v6580_v14 = vpop.f32.mrf.mxu1  ;;  %v1581_v24 = vrot.slane %v1580_v16, 4  ;;  %1349 = vmatmul.f32.gmra.mxu0 %v9976_v12  ;;  %v1894_v4 = vrot.slane %v1893_v22, 4  ;;  %v1579_v1 = vadd.f32 %v1578_v7, %v1577_v19  ;;  %v1287_v43 = vadd.f32 %v1286_v27, %v6336_v47 }
 0x1e6   : > { %v2172_v52 = vmul.f32 0.5, %v2171_v53  ;;  %vm2176_vm14 = vweird.f32 %v6553_v23  ;;  %v1891_v31 = vrot.slane %v1890_v35, 1  ;;  %v9803_v46 = vand.u32 4294901760, %v6569_v26 }
 0x1e7   : > { %v1582_v44 = vadd.f32 %v1581_v24, %v1580_v16  ;;  %v1895_v63 = vadd.f32 %v1894_v4, %v1893_v22  ;;  %v1762_v58 = vmul.f32 %v6300_v37, %v1579_v1  ;;  %v6593_v6 = vadd.f32 %v1432_v8, %v1287_v43  ;;  %vm6611_vm0 = vmor %vm2175_vm12, %vm2176_vm14 }
 0x1e8   : > { %1499 = vmatmul.f32.gmra.mxu1 %v9979_v25  ;;  %v2173_v61 = vsub.f32 1.5, %v2172_v52  ;;  %v2461_v60 = vmul.f32 %v2168_v59, %v6415_v18  ;;  %v1892_v0 = vadd.f32 %v1891_v31, %v1890_v35  ;;  %v6598_v32 = vand.u32 4294901760, %v2531_v49 }
 0x1e9   : > { %v6595_v12 = vpop.eup %5658  ;;  %v1583_v47 = vrot.slane %v1582_v44, 2  ;;  %vm2185_vm15 = vweird.f32 %v6556_v9  ;;  %v1896_v19 = vrot.slane %v1895_v63, 2  ;;  %v2646_v8 = vsub.f32 %v6569_v26, %v9803_v46 }
 0x1ea   : > { %9980 = vst [vmem:[#allocation39_spill] sm:$0xff] %v6598_v32  ;;  %v2174_v48 = vmul.f32 %v6553_v23, %v2173_v61  ;;  %v2180_v11 = vmul.f32 %v6595_v12, %v6556_v9  ;;  %v1290_v27 = vpop.f32.mrf.mxu0  ;;  %v2080_v21 = vmul.f32 %v1892_v0, %v6300_v37  ;;  %v6617_v36 = vsub.f32 %v6517_v50, %v1762_v58  ;;  %v9983_v61 = vld [vmem:[#allocation13_spill] sm:$0xff] }
 0x1eb   : > { %v1584_v2 = vadd.f32 %v1583_v47, %v1582_v44  ;;  %v1587_v53 = vsel %vm1523_vm2, %v6593_v6, 0.0  ;;  %2941 = vmatmul.f32.gmra.mxu3 %v6598_v32  ;;  %v1897_v16 = vadd.f32 %v1896_v19, %v1895_v63  ;;  %v2493_v22 = vmax.f32 %v2461_v60, 0.0 }
 0x1ec   : > { %v2178_v7 = vsel %vm6611_vm0, %v6553_v23, %v2174_v48  ;;  %v2181_v17 = vmul.f32 %v6595_v12, %v2180_v11  ;;  %v1588_v59 = vrot.slane %v1587_v53, 4  ;;  %v6628_v24 = vadd.f32 1e-05, %v2080_v21 }
 0x1ed   : > { %v6626_v35 = vpop.f32.mrf.mxu1  ;;  %v1826_v50 = vmul.f32 %v6617_v36, %v6617_v36  ;;  %v1585_v52 = vrot.slane %v1584_v2, 1  ;;  %1353 = vmatmul.f32.gmra.mxu0 %v9979_v25  ;;  %v1898_v1 = vrot.slane %v1897_v16, 1  ;;  %v2647_v31 = vand.u32 4294901760, %v2646_v8 }
 0x1ee   : > { %v2182_v4 = vmul.f32 0.5, %v2181_v17  ;;  %v1589_v43 = vadd.f32 %v1588_v59, %v1587_v53  ;;  %v6634_v23 = vmul.f32 %v2178_v7, %v6454_v28  ;;  %vm2186_vm1 = vweird.f32 %v6595_v12 }
 0x1ef   : > { %5660 = vrsqrt.f32 %v6628_v24  ;;  %v1900_v44 = vsel %vm1523_vm2, %v1826_v50, 0.0  ;;  %v1899_v58 = vadd.f32 %v1898_v1, %v1897_v16  ;;  %v1586_v0 = vadd.f32 %v1585_v52, %v1584_v2  ;;  %2648 = vmatmul.f32.vlgmr.msrb.gmra.mxu2 %v2647_v31  ;;  %vm6652_vm3 = vmor %vm2185_vm15, %vm2186_vm1  ;;  %v9988_v50 = vld [vmem:[#allocation37_spill] sm:$0xff] }
 0x1f0   : > { %1503 = vmatmul.f32.gmra.mxu1 %v9983_v61  ;;  %v2183_v63 = vsub.f32 1.5, %v2182_v4  ;;  %v1901_v60 = vrot.slane %v1900_v44, 4  ;;  %v1590_v25 = vrot.slane %v1589_v43, 2  ;;  %v1291_v47 = vadd.f32 %v1290_v27, %v6339_v5 }
 0x1f1   : > { %v6642_v48 = vsub.f32 %v2531_v49, %v6598_v32  ;;  %v2534_v28 = vsel %vm1523_vm2, %v2493_v22, 0  ;;  %v2081_v19 = vmul.f32 %v1899_v58, %v6300_v37  ;;  %v1763_v18 = vmul.f32 %v6300_v37, %v1586_v0 }
 0x1f2   : > { %v2184_v11 = vmul.f32 %v6595_v12, %v2183_v63  ;;  %v1902_v8 = vadd.f32 %v1901_v60, %v1900_v44  ;;  %v1294_v21 = vpop.f32.mrf.mxu0  ;;  %v1591_v5 = vadd.f32 %v1590_v25, %v1589_v43  ;;  %v6657_v49 = vadd.f32 %v6580_v14, %v1291_v47  ;;  %v9987_v14 = vld [vmem:[#allocation40_spill] sm:$0xff]  ;;  %v9989_v60 = vld [vmem:[#allocation14_spill] sm:$0xff] }
 0x1f3   : > { %v9802_v27 = vand.u32 4294901760, %v6642_v48  ;;  %v6660_v53 = vand.u32 4294901760, %v2534_v28  ;;  %v6665_v17 = vadd.f32 1e-05, %v2081_v19  ;;  %v6668_v9 = vsub.f32 %v6550_v3, %v1763_v18 }
 0x1f4   : > { %v2188_v7 = vsel %vm6652_vm3, %v6595_v12, %v2184_v11  ;;  %v1903_v16 = vrot.slane %v1902_v8, 2  ;;  %v6676_v52 = vadd.f32 %v9988_v50, %v9987_v14  ;;  %v1592_v4 = vrot.slane %v1591_v5, 1 }
 0x1f5   : > { %9986 = vst [vmem:[#allocation44_spill] sm:$0xff] %v6660_v53  ;;  %v6670_v59 = vpop.f32.mrf.mxu1  ;;  %v6672_v22 = vpop.eup %5660  ;;  %v1594_v1 = vsel %vm1523_vm2, %v6657_v49, 0.0  ;;  %v2654_v12 = vsub.f32 %v6642_v48, %v9802_v27  ;;  %2945 = vmatmul.f32.gmra.mxu3 %v6660_v53  ;;  %1357 = vmatmul.f32.gmra.mxu0 %v9983_v61  ;;  %v2494_v3 = vmax.f32 %v6634_v23, 0.0  ;;  %vm2195_vm4 = vweird.f32 %v6628_v24 }
 0x1f6   : > { %v2190_v43 = vmul.f32 %v6672_v22, %v6628_v24  ;;  %5662 = vrsqrt.f32 %v6665_v17  ;;  %v6691_v31 = vmul.f32 %v2188_v7, %v6490_v38  ;;  %v1904_v44 = vadd.f32 %v1903_v16, %v1902_v8 }
 0x1f7   : > { %v1827_v63 = vmul.f32 %v6668_v9, %v6668_v9  ;;  %v1593_v58 = vadd.f32 %v1592_v4, %v1591_v5  ;;  %v1595_v23 = vrot.slane %v1594_v1, 4  ;;  %v2655_v0 = vand.u32 4294901760, %v2654_v12 }
 0x1f8   : > { %1507 = vmatmul.f32.gmra.mxu1 %v9989_v60  ;;  %v2191_v61 = vmul.f32 %v6672_v22, %v2190_v43  ;;  %v1295_v25 = vadd.f32 %v1294_v21, %v6342_v41  ;;  %v1905_v47 = vrot.slane %v1904_v44, 1  ;;  %v6701_v38 = vsub.f32 %v2534_v28, %v6660_v53 }
 0x1f9   : > { %v1907_v11 = vsel %vm1523_vm2, %v1827_v63, 0.0  ;;  %v1764_v19 = vmul.f32 %v6300_v37, %v1593_v58  ;;  %v1596_v2 = vadd.f32 %v1595_v23, %v1594_v1  ;;  %2656 = vmatmul.f32.gmra.mxu2 %v2655_v0  ;;  %vm2196_vm5 = vweird.f32 %v6672_v22 }
 0x1fa   : > { %v2192_v8 = vmul.f32 0.5, %v2191_v61  ;;  %v1908_v18 = vrot.slane %v1907_v11, 4  ;;  %v6704_v5 = vadd.f32 %v6626_v35, %v1295_v25  ;;  %v1298_v7 = vpop.f32.mrf.mxu0  ;;  %v1906_v16 = vadd.f32 %v1905_v47, %v1904_v44  ;;  %vm6730_vm7 = vmor %vm2195_vm4, %vm2196_vm5 }
 0x1fb   : > { %v6708_v41 = vsub.f32 %v6593_v6, %v1764_v19  ;;  %v9801_v21 = vand.u32 4294901760, %v6701_v38  ;;  %v1597_v4 = vrot.slane %v1596_v2, 2  ;;  %vm2205_vm6 = vweird.f32 %v6665_v17 }
 0x1fc   : > { %v6711_v14 = vpop.eup %5662  ;;  %v2193_v28 = vsub.f32 1.5, %v2192_v8  ;;  %v1909_v50 = vadd.f32 %v1908_v18, %v1907_v11  ;;  %v1601_v1 = vsel %vm1523_vm2, %v6704_v5, 0.0  ;;  %v2082_v6 = vmul.f32 %v1906_v16, %v6300_v37  ;;  %v9992_v11 = vld [vmem:[#allocation15_spill] sm:$0xff] }
 0x1fd   : > { %v6715_v12 = vpop.f32.mrf.mxu1  ;;  %v2200_v35 = vmul.f32 %v6711_v14, %v6665_v17  ;;  %v1828_v43 = vmul.f32 %v6708_v41, %v6708_v41  ;;  %v2537_v44 = vsel %vm1523_vm2, %v2494_v3, 0  ;;  %1361 = vmatmul.f32.gmra.mxu0 %v9989_v60  ;;  %v1598_v61 = vadd.f32 %v1597_v4, %v1596_v2 }
 0x1fe   : > { %v2194_v63 = vmul.f32 %v6672_v22, %v2193_v28  ;;  %v1910_v58 = vrot.slane %v1909_v50, 2  ;;  %v1602_v23 = vrot.slane %v1601_v1, 4  ;;  %v6735_v47 = vadd.f32 1e-05, %v2082_v6 }
 0x1ff   : > { %v2201_v25 = vmul.f32 %v6711_v14, %v2200_v35  ;;  %v1914_v3 = vsel %vm1523_vm2, %v1828_v43, 0.0  ;;  %v2662_v60 = vsub.f32 %v6701_v38, %v9801_v21  ;;  %v1599_v18 = vrot.slane %v1598_v61, 1  ;;  %v1196_v21 = vpop.f32.mrf.mxu3 }
 0x200   : > { %1511 = vmatmul.f32.gmra.mxu1 %v9992_v11  ;;  %v2198_v24 = vsel %vm6730_vm7, %v6672_v22, %v2194_v63  ;;  %v1911_v19 = vadd.f32 %v1910_v58, %v1909_v50  ;;  %v1915_v8 = vrot.slane %v1914_v3, 4  ;;  %v2495_v2 = vmax.f32 %v6691_v31, 0.0  ;;  %v996_v58 = vpop.f32.mrf.mxu2 }
 0x201   : > { %v2202_v16 = vmul.f32 0.5, %v2201_v25  ;;  %vm2206_vm8 = vweird.f32 %v6711_v14  ;;  %5664 = vrsqrt.f32 %v6735_v47  ;;  %v1600_v35 = vadd.f32 %v1599_v18, %v1598_v61 }
 0x202   : > { %v1912_v28 = vrot.slane %v1911_v19, 1  ;;  %v1916_v4 = vadd.f32 %v1915_v8, %v1914_v3  ;;  %v1603_v6 = vadd.f32 %v1602_v23, %v1601_v1  ;;  %v1302_v43 = vpop.f32.mrf.mxu0  ;;  %v6749_v27 = vmul.f32 %v2198_v24, %v6533_v34  ;;  %vm6767_vm9 = vmor %vm2205_vm6, %vm2206_vm8 }
 0x203   : > { %v2203_v22 = vsub.f32 1.5, %v2202_v16  ;;  %v2663_v50 = vand.u32 4294901760, %v2662_v60  ;;  %v6751_v63 = vand.u32 4294901760, %v2537_v44  ;;  %v1765_v25 = vmul.f32 %v6300_v37, %v1600_v35 }
 0x204   : > { %v1913_v31 = vadd.f32 %v1912_v28, %v1911_v19  ;;  %v1917_v0 = vrot.slane %v1916_v4, 2  ;;  %v1604_v46 = vrot.slane %v1603_v6, 2  ;;  %v1299_v34 = vadd.f32 %v1298_v7, %v6347_v62 }
 0x205   : > { %9993 = vst [vmem:[#allocation35_spill] sm:$0xff] %v6751_v63  ;;  %v6754_v53 = vpop.f32.mrf.mxu1  ;;  %v2204_v61 = vmul.f32 %v6711_v14, %v2203_v22  ;;  %2664 = vmatmul.f32.gmra.mxu2 %v2663_v50  ;;  %2949 = vmatmul.f32.gmra.mxu3 %v6751_v63  ;;  %v6760_v1 = vsub.f32 %v2537_v44, %v6751_v63  ;;  %v2540_v23 = vsel %vm1523_vm2, %v2495_v2, 0  ;;  %vm2215_vm10 = vweird.f32 %v6735_v47 }
 0x206   : > { %v2083_v60 = vmul.f32 %v1913_v31, %v6300_v37  ;;  %v1918_v24 = vadd.f32 %v1917_v0, %v1916_v4  ;;  %v6773_v19 = vsub.f32 %v6657_v49, %v1765_v25  ;;  %v1605_v62 = vadd.f32 %v1604_v46, %v1603_v6  ;;  %1365 = vmatmul.f32.gmra.mxu0 %v9992_v11  ;;  %v9996_v49 = vld [vmem:[#allocation16_spill] sm:$0xff] }
 0x207   : > { %v6776_v7 = vpop.eup %5664  ;;  %v6779_v44 = vadd.f32 %v1196_v21, %v6523_v55  ;;  %v6782_v17 = vadd.f32 %v996_v58, %v6676_v52  ;;  %v2208_v8 = vsel %vm6767_vm9, %v6711_v14, %v2204_v61  ;;  %v6788_v18 = vadd.f32 %v6670_v59, %v1299_v34 }
 0x208   : > { %1515 = vmatmul.f32.gmra.mxu1 %v9996_v49  ;;  %v2210_v46 = vmul.f32 %v6776_v7, %v6735_v47  ;;  %v6793_v11 = vadd.f32 1e-05, %v2083_v60  ;;  %v9807_v55 = vand.u32 4294901760, %v6760_v1  ;;  %v6796_v21 = vand.u32 4294901760, %v2540_v23 }
 0x209   : > { %v1919_v52 = vrot.slane %v1918_v24, 1  ;;  %v1829_v2 = vmul.f32 %v6773_v19, %v6773_v19  ;;  %v1606_v16 = vrot.slane %v1605_v62, 1  ;;  %v1608_v59 = vsel %vm1523_vm2, %v6788_v18, 0.0 }
 0x20a   : > { %9997 = vst [vmem:[#allocation4_spill] sm:$0xff] %v6796_v21  ;;  %v2496_v14 = vmax.f32 %v6749_v27, 0.0  ;;  %v6804_v28 = vmul.f32 %v2208_v8, %v6559_v15  ;;  %v2211_v4 = vmul.f32 %v6776_v7, %v2210_v46  ;;  %5666 = vrsqrt.f32 %v6793_v11  ;;  %v1306_v35 = vpop.f32.mrf.mxu0 }
 0x20b   : > { %v1920_v6 = vadd.f32 %v1919_v52, %v1918_v24  ;;  %v1921_v22 = vsel %vm1523_vm2, %v1829_v2, 0.0  ;;  %v1607_v50 = vadd.f32 %v1606_v16, %v1605_v62  ;;  %v1609_v58 = vrot.slane %v1608_v59, 4  ;;  %v9998_v16 = vld [vmem:[#allocation17_spill] sm:$0xff] }
 0x20c   : > { %v2212_v31 = vmul.f32 0.5, %v2211_v4  ;;  %v1922_v0 = vrot.slane %v1921_v22, 4  ;;  %v2670_v27 = vsub.f32 %v6760_v1, %v9807_v55  ;;  %v1303_v15 = vadd.f32 %v1302_v43, %v6388_v56 }
 0x20d   : > { %v6814_v25 = vpop.f32.mrf.mxu1  ;;  %v2084_v61 = vmul.f32 %v1920_v6, %v6300_v37  ;;  %v1766_v34 = vmul.f32 %v6300_v37, %v1607_v50  ;;  %v1610_v3 = vadd.f32 %v1609_v58, %v1608_v59  ;;  %2953 = vmatmul.f32.gmra.mxu3 %v6796_v21  ;;  %v6820_v60 = vsub.f32 %v2540_v23, %v6796_v21 }
 0x20e   : > { %v2213_v24 = vsub.f32 1.5, %v2212_v31  ;;  %v1923_v62 = vadd.f32 %v1922_v0, %v1921_v22  ;;  %v2671_v8 = vand.u32 4294901760, %v2670_v27  ;;  %v6823_v46 = vadd.f32 %v6715_v12, %v1303_v15  ;;  %1369 = vmatmul.f32.gmra.mxu0 %v9996_v49 }
 0x20f   : > { %v6826_v56 = vadd.f32 1e-05, %v2084_v61  ;;  %v6829_v43 = vsub.f32 %v6704_v5, %v1766_v34  ;;  %v1611_v52 = vrot.slane %v1610_v3, 2  ;;  %v9806_v2 = vand.u32 4294901760, %v6820_v60 }
 0x210   : > { %1519 = vmatmul.f32.gmra.mxu1 %v9998_v16  ;;  %v6833_v23 = vpop.eup %5666  ;;  %vm2216_vm11 = vweird.f32 %v6776_v7  ;;  %v1924_v12 = vrot.slane %v1923_v62, 2  ;;  %2672 = vmatmul.f32.gmra.mxu2 %v2671_v8  ;;  %v1615_v49 = vsel %vm1523_vm2, %v6823_v46, 0.0  ;;  %v2214_v4 = vmul.f32 %v6776_v7, %v2213_v24 }
 0x211   : > { %v2220_v5 = vmul.f32 %v6833_v23, %v6793_v11  ;;  %5668 = vrsqrt.f32 %v6826_v56  ;;  %v2543_v6 = vsel %vm1523_vm2, %v2496_v14, 0  ;;  %vm2225_vm12 = vweird.f32 %v6793_v11  ;;  %vm6858_vm14 = vmor %vm2215_vm10, %vm2216_vm11 }
 0x212   : > { %v1925_v22 = vadd.f32 %v1924_v12, %v1923_v62  ;;  %v1830_v50 = vmul.f32 %v6829_v43, %v6829_v43  ;;  %v1612_v58 = vadd.f32 %v1611_v52, %v1610_v3  ;;  %v6847_v31 = vpop.f32.mrf.mxu0  ;;  %vm2226_vm13 = vweird.f32 %v6833_v23 }
 0x213   : > { %v2221_v0 = vmul.f32 %v6833_v23, %v2220_v5  ;;  %v1616_v27 = vrot.slane %v1615_v49, 4  ;;  %v2678_v15 = vsub.f32 %v6820_v60, %v9806_v2  ;;  %v6863_v24 = vand.u32 4294901760, %v2543_v6  ;;  %vm6894_vm0 = vmor %vm2225_vm12, %vm2226_vm13 }
 0x214   : > { %v1926_v61 = vrot.slane %v1925_v22, 1  ;;  %v1928_v34 = vsel %vm1523_vm2, %v1830_v50, 0.0  ;;  %v1613_v3 = vrot.slane %v1612_v58, 1  ;;  %v2218_v8 = vsel %vm6858_vm14, %v6776_v7, %v2214_v4 }
 0x215   : > { %v6865_v62 = vpop.f32.mrf.mxu1  ;;  %v2222_v52 = vmul.f32 0.5, %v2221_v0  ;;  %v1929_v12 = vrot.slane %v1928_v34, 4  ;;  %v1617_v5 = vadd.f32 %v1616_v27, %v1615_v49  ;;  %v2679_v55 = vand.u32 4294901760, %v2678_v15  ;;  %2957 = vmatmul.f32.gmra.mxu3 %v6863_v24 }
 0x216   : > { %v1927_v47 = vadd.f32 %v1926_v61, %v1925_v22  ;;  %v1614_v2 = vadd.f32 %v1613_v3, %v1612_v58  ;;  %v1307_v59 = vadd.f32 %v1306_v35, %v6394_v20  ;;  %1373 = vmatmul.f32.gmra.mxu0 %v9998_v16  ;;  %v6876_v14 = vsub.f32 %v2543_v6, %v6863_v24 }
 0x217   : > { %v6873_v50 = vpop.eup %5668  ;;  %v2223_v21 = vsub.f32 1.5, %v2222_v52  ;;  %v1930_v63 = vadd.f32 %v1929_v12, %v1928_v34  ;;  %v1618_v32 = vrot.slane %v1617_v5, 2  ;;  %v10001_v7 = vand.u32 4294901760, %v6569_v26 }
 0x218   : > { %v2466_v49 = vmul.f32 %v2218_v8, %v6617_v36  ;;  %v2230_v4 = vmul.f32 %v6873_v50, %v6826_v56  ;;  %vm2235_vm15 = vweird.f32 %v6826_v56  ;;  %v2085_v20 = vmul.f32 %v1927_v47, %v6300_v37  ;;  %2680 = vmatmul.f32.gmra.mxu2 %v2679_v55 }
 0x219   : > { %3273 = vmatmul.f32.vlgmr.msra.gmra.mxu1 %v10001_v7  ;;  %v1767_v35 = vmul.f32 %v6300_v37, %v1614_v2  ;;  %v2224_v16 = vmul.f32 %v6833_v23, %v2223_v21  ;;  %v1931_v22 = vrot.slane %v1930_v63, 2  ;;  %v1619_v6 = vadd.f32 %v1618_v32, %v1617_v5 }
 0x21a   : > { %v6888_v58 = vadd.f32 %v6754_v53, %v1307_v59  ;;  %v2231_v0 = vmul.f32 %v6873_v50, %v2230_v4  ;;  %v6899_v27 = vadd.f32 1e-05, %v2085_v20  ;;  %v2685_v32 = vand.u32 4294901760, %v6876_v14  ;;  %v6905_v21 = vpop.f32.mrf.mxu0 }
 0x21b   : > { %v6902_v55 = vsub.f32 %v6788_v18, %v1767_v35  ;;  %v2228_v53 = vsel %vm6894_vm0, %v6833_v23, %v2224_v16  ;;  %v1932_v11 = vadd.f32 %v1931_v22, %v1930_v63  ;;  %v1620_v2 = vrot.slane %v1619_v6, 1 }
 0x21c   : > { %v1622_v59 = vsel %vm1523_vm2, %v6888_v58, 0.0  ;;  %v2498_v15 = vmax.f32 %v2466_v49, 0.0  ;;  %v2232_v61 = vmul.f32 0.5, %v2231_v0  ;;  %vm2236_vm1 = vweird.f32 %v6873_v50 }
 0x21d   : > { %5670 = vrsqrt.f32 %v6899_v27  ;;  %v6914_v18 = vpop.f32.mrf.mxu1  ;;  %v1933_v34 = vrot.slane %v1932_v11, 1  ;;  %v1831_v3 = vmul.f32 %v6902_v55, %v6902_v55  ;;  %v1621_v8 = vadd.f32 %v1620_v2, %v1619_v6  ;;  %vm6939_vm3 = vmor %vm2235_vm15, %vm2236_vm1  ;;  %v10009_v2 = vld [vmem:[#allocation43_spill] sm:$0xff] }
 0x21e   : > { %v1623_v52 = vrot.slane %v1622_v59, 4  ;;  %v6919_v63 = vmul.f32 %v2228_v53, %v6668_v9  ;;  %v2233_v23 = vsub.f32 1.5, %v2232_v61  ;;  %v2686_v12 = vsub.f32 %v6876_v14, %v2685_v32  ;;  %3091 = vmatmul.f32.vlgmr.msra.gmra.mxu0 %v6569_v26 }
 0x21f   : > { %v10004_v5 = vmax.f32 %v6804_v28, 0.0  ;;  %v1934_v7 = vadd.f32 %v1933_v34, %v1932_v11  ;;  %v1935_v49 = vsel %vm1523_vm2, %v1831_v3, 0.0  ;;  %v1768_v4 = vmul.f32 %v6300_v37, %v1621_v8 }
 0x220   : > { %v1624_v20 = vadd.f32 %v1623_v52, %v1622_v59  ;;  %v10005_v9 = vand.u32 4294901760, %v6642_v48  ;;  %v2234_v35 = vmul.f32 %v6873_v50, %v2233_v23  ;;  %v1936_v16 = vrot.slane %v1935_v49, 4  ;;  %v10010_v59 = vld [vmem:[#allocation41_spill] sm:$0xff] }
 0x221   : > { %v2546_v47 = vsel %vm1523_vm2, %v10004_v5, 0  ;;  %v2687_v22 = vand.u32 4294901760, %v2686_v12  ;;  %v2086_v28 = vmul.f32 %v1934_v7, %v6300_v37  ;;  %v6945_v36 = vsub.f32 %v6823_v46, %v1768_v4 }
 0x222   : > { %3279 = vmatmul.f32.gmra.mxu1 %v10005_v9  ;;  %v6933_v6 = vand.u32 4294901760, %v2546_v47  ;;  %v1625_v0 = vrot.slane %v1624_v20, 2  ;;  %v1311_v53 = vadd.f32 %v6847_v31, %v6398_v10  ;;  %v6953_v61 = vadd.f32 %v10010_v59, %v10009_v2  ;;  %v6960_v46 = vpop.f32.mrf.mxu0 }
 0x223   : > { %v6949_v11 = vpop.eup %5670  ;;  %v2499_v56 = vmax.f32 %v6919_v63, 0.0  ;;  %v2238_v34 = vsel %vm6939_vm3, %v6873_v50, %v2234_v35  ;;  %v1937_v3 = vadd.f32 %v1936_v16, %v1935_v49  ;;  %2688 = vmatmul.f32.gmra.mxu2 %v2687_v22  ;;  %vm2245_vm4 = vweird.f32 %v6899_v27 }
 0x224   : > { %10006 = vst [vmem:[#allocation38_spill] sm:$0xff] %v6933_v6  ;;  %2961 = vmatmul.f32.gmra.mxu3 %v6933_v6  ;;  %v2240_v10 = vmul.f32 %v6949_v11, %v6899_v27  ;;  %v6965_v31 = vadd.f32 1e-05, %v2086_v28  ;;  %v6968_v8 = vsub.f32 %v2546_v47, %v6933_v6  ;;  %v2549_v52 = vsel %vm1523_vm2, %v2498_v15, 0 }
 0x225   : > { %v1938_v23 = vrot.slane %v1937_v3, 2  ;;  %v1832_v50 = vmul.f32 %v6945_v36, %v6945_v36  ;;  %v1626_v12 = vadd.f32 %v1625_v0, %v1624_v20  ;;  %v6974_v5 = vadd.f32 %v6814_v25, %v1311_v53  ;;  %v6976_v7 = vpop.f32.mrf.mxu1 }
 0x226   : > { %v6979_v49 = vmul.f32 %v2238_v34, %v6708_v41  ;;  %v2241_v4 = vmul.f32 %v6949_v11, %v2240_v10  ;;  %vm2246_vm5 = vweird.f32 %v6949_v11  ;;  %5672 = vrsqrt.f32 %v6965_v31  ;;  %3096 = vmatmul.f32.gmra.mxu0 %v6642_v48 }
 0x227   : > { %v1939_v15 = vadd.f32 %v1938_v23, %v1937_v3  ;;  %v1942_v47 = vsel %vm1523_vm2, %v1832_v50, 0.0  ;;  %v1627_v9 = vrot.slane %v1626_v12, 1  ;;  %v1629_v20 = vsel %vm1523_vm2, %v6974_v5, 0.0  ;;  %vm7016_vm6 = vmor %vm2245_vm4, %vm2246_vm5 }
 0x228   : > { %v2242_v25 = vmul.f32 0.5, %v2241_v4  ;;  %v1943_v35 = vrot.slane %v1942_v47, 4  ;;  %v1630_v16 = vrot.slane %v1629_v20, 4  ;;  %v9815_v41 = vand.u32 4294901760, %v6968_v8 }
 0x229   : > { %v10011_v22 = vand.u32 4294901760, %v6701_v38  ;;  %v1940_v26 = vrot.slane %v1939_v15, 1  ;;  %v1628_v28 = vadd.f32 %v1627_v9, %v1626_v12  ;;  %v6991_v0 = vand.u32 4294901760, %v2549_v52 }
 0x22a   : > { %v1315_v53 = vadd.f32 %v6905_v21, %v6409_v30  ;;  %v2243_v2 = vsub.f32 1.5, %v2242_v25  ;;  %v1944_v59 = vadd.f32 %v1943_v35, %v1942_v47  ;;  %v1631_v34 = vadd.f32 %v1630_v16, %v1629_v20  ;;  %v7006_v12 = vpop.f32.mrf.mxu0 }
 0x22b   : > { %3285 = vmatmul.f32.gmra.mxu1 %v10011_v22  ;;  %10012 = vst [vmem:[#allocation49_spill] sm:$0xff] %v6991_v0  ;;  %v2694_v48 = vsub.f32 %v6968_v8, %v9815_v41  ;;  %v1941_v3 = vadd.f32 %v1940_v26, %v1939_v15  ;;  %v1769_v10 = vmul.f32 %v6300_v37, %v1628_v28  ;;  %v2500_v15 = vmax.f32 %v6979_v49, 0.0 }
 0x22c   : > { %2965 = vmatmul.f32.gmra.mxu3 %v6991_v0  ;;  %v7001_v23 = vadd.f32 %v6865_v62, %v1315_v53  ;;  %v7004_v50 = vsub.f32 %v2549_v52, %v6991_v0  ;;  %v7008_v30 = vpop.eup %5672  ;;  %v2244_v21 = vmul.f32 %v6949_v11, %v2243_v2  ;;  %v1945_v4 = vrot.slane %v1944_v59, 2 }
 0x22d   : > { %v1632_v47 = vrot.slane %v1631_v34, 2  ;;  %v2695_v9 = vand.u32 4294901760, %v2694_v48  ;;  %v2250_v52 = vmul.f32 %v7008_v30, %v6965_v31  ;;  %v2087_v20 = vmul.f32 %v1941_v3, %v6300_v37  ;;  %v7026_v35 = vpop.f32.mrf.mxu1 }
 0x22e   : > { %v7024_v25 = vsub.f32 %v6888_v58, %v1769_v10  ;;  %v2248_v16 = vsel %vm7016_vm6, %v6949_v11, %v2244_v21  ;;  %v1946_v22 = vadd.f32 %v1945_v4, %v1944_v59  ;;  %v1636_v26 = vsel %vm1523_vm2, %v7001_v23, 0.0  ;;  %3101 = vmatmul.f32.gmra.mxu0 %v6701_v38 }
 0x22f   : > { %v1633_v27 = vadd.f32 %v1632_v47, %v1631_v34  ;;  %2696 = vmatmul.f32.gmra.mxu2 %v2695_v9  ;;  %v2251_v28 = vmul.f32 %v7008_v30, %v2250_v52  ;;  %vm2255_vm7 = vweird.f32 %v6965_v31  ;;  %v7035_v53 = vadd.f32 1e-05, %v2087_v20 }
 0x230   : > { %v1833_v58 = vmul.f32 %v7024_v25, %v7024_v25  ;;  %v1947_v2 = vrot.slane %v1946_v22, 1  ;;  %v1637_v11 = vrot.slane %v1636_v26, 4  ;;  %v9814_v59 = vand.u32 4294901760, %v7004_v50 }
 0x231   : > { %v1634_v48 = vrot.slane %v1633_v27, 1  ;;  %v10015_v34 = vand.u32 4294901760, %v6760_v1  ;;  %v7044_v3 = vmul.f32 %v2248_v16, %v6773_v19  ;;  %v2252_v10 = vmul.f32 0.5, %v2251_v28  ;;  %v1001_v16 = vpop.f32.mrf.mxu2 }
 0x232   : > { %vm2256_vm8 = vweird.f32 %v7008_v30  ;;  %5674 = vrsqrt.f32 %v7035_v53  ;;  %v1948_v21 = vadd.f32 %v1947_v2, %v1946_v22  ;;  %v1949_v4 = vsel %vm1523_vm2, %v1833_v58, 0.0  ;;  %v7055_v20 = vpop.f32.mrf.mxu0 }
 0x233   : > { %3291 = vmatmul.f32.gmra.mxu1 %v10015_v34  ;;  %v1635_v38 = vadd.f32 %v1634_v48, %v1633_v27  ;;  %v1638_v47 = vadd.f32 %v1637_v11, %v1636_v26  ;;  %v2253_v9 = vsub.f32 1.5, %v2252_v10  ;;  %v1950_v62 = vrot.slane %v1949_v4, 4  ;;  %vm7085_vm9 = vmor %vm2255_vm7, %vm2256_vm8 }
 0x234   : > { %v2702_v52 = vsub.f32 %v7004_v50, %v9814_v59  ;;  %v2552_v19 = vsel %vm1523_vm2, %v2499_v56, 0  ;;  %v2088_v28 = vmul.f32 %v1948_v21, %v6300_v37  ;;  %v1319_v11 = vadd.f32 %v6960_v46, %v6412_v29 }
 0x235   : > { %v1770_v22 = vmul.f32 %v6300_v37, %v1635_v38  ;;  %v1639_v58 = vrot.slane %v1638_v47, 2  ;;  %v7059_v27 = vand.u32 4294901760, %v2552_v19  ;;  %v2254_v26 = vmul.f32 %v7008_v30, %v2253_v9  ;;  %v7073_v21 = vpop.f32.mrf.mxu1 }
 0x236   : > { %v1951_v2 = vadd.f32 %v1950_v62, %v1949_v4  ;;  %v2703_v48 = vand.u32 4294901760, %v2702_v52  ;;  %v7064_v63 = vadd.f32 1e-05, %v2088_v28  ;;  %v7078_v4 = vadd.f32 %v1001_v16, %v6953_v61  ;;  %3106 = vmatmul.f32.gmra.mxu0 %v6760_v1  ;;  %v7112_v28 = vpop.f32.mrf.mxu3 }
 0x237   : > { %10016 = vst [vmem:[#allocation6_spill] sm:$0xff] %v7059_v27  ;;  %v7067_v56 = vsub.f32 %v6974_v5, %v1770_v22  ;;  %v1640_v34 = vadd.f32 %v1639_v58, %v1638_v47  ;;  %2969 = vmatmul.f32.gmra.mxu3 %v7059_v27  ;;  %v7071_v10 = vsub.f32 %v2552_v19, %v7059_v27  ;;  %v2501_v29 = vmax.f32 %v7044_v3, 0.0 }
 0x238   : > { %v7075_v38 = vpop.eup %5674  ;;  %v1952_v5 = vrot.slane %v1951_v2, 2  ;;  %2704 = vmatmul.f32.gmra.mxu2 %v2703_v48  ;;  %v7090_v47 = vadd.f32 %v6914_v18, %v1319_v11  ;;  %v2258_v61 = vsel %vm7085_vm9, %v7008_v30, %v2254_v26  ;;  %vm2265_vm10 = vweird.f32 %v7035_v53 }
 0x239   : > { %v2260_v9 = vmul.f32 %v7075_v38, %v7035_v53  ;;  %5676 = vrsqrt.f32 %v7064_v63  ;;  %v10019_v31 = vand.u32 4294901760, %v6820_v60  ;;  %v1834_v18 = vmul.f32 %v7067_v56, %v7067_v56 }
 0x23a   : > { %v1953_v62 = vadd.f32 %v1952_v5, %v1951_v2  ;;  %v1641_v52 = vrot.slane %v1640_v34, 1  ;;  %v2555_v1 = vsel %vm1523_vm2, %v2500_v15, 0  ;;  %vm2266_vm11 = vweird.f32 %v7075_v38  ;;  %v7115_v48 = vpop.f32.mrf.mxu0 }
 0x23b   : > { %3297 = vmatmul.f32.gmra.mxu1 %v10019_v31  ;;  %v2261_v30 = vmul.f32 %v7075_v38, %v2260_v9  ;;  %v1643_v19 = vsel %vm1523_vm2, %v7090_v47, 0.0  ;;  %v9816_v16 = vand.u32 4294901760, %v7071_v10  ;;  %v1956_v58 = vsel %vm1523_vm2, %v1834_v18, 0.0  ;;  %vm7151_vm12 = vmor %vm2265_vm10, %vm2266_vm11 }
 0x23c   : > { %v1954_v22 = vrot.slane %v1953_v62, 1  ;;  %v1642_v26 = vadd.f32 %v1641_v52, %v1640_v34  ;;  %v1644_v2 = vrot.slane %v1643_v19, 4  ;;  %v1957_v15 = vrot.slane %v1956_v58, 4 }
 0x23d   : > { %v2262_v49 = vmul.f32 0.5, %v2261_v30  ;;  %v2710_v11 = vsub.f32 %v7071_v10, %v9816_v16  ;;  %v7120_v46 = vand.u32 4294901760, %v2555_v1  ;;  %v1323_v59 = vadd.f32 %v7006_v12, %v6432_v51 }
 0x23e   : > { %v1955_v5 = vadd.f32 %v1954_v22, %v1953_v62  ;;  %v1771_v9 = vmul.f32 %v6300_v37, %v1642_v26  ;;  %v1645_v31 = vadd.f32 %v1644_v2, %v1643_v19  ;;  %v1958_v52 = vadd.f32 %v1957_v15, %v1956_v58  ;;  %3111 = vmatmul.f32.gmra.mxu0 %v6820_v60  ;;  %v7143_v26 = vpop.f32.mrf.mxu1 }
 0x23f   : > { %10020 = vst [vmem:[#allocation20_spill] sm:$0xff] %v7120_v46  ;;  %v7125_v18 = vpop.eup %5676  ;;  %v2263_v34 = vsub.f32 1.5, %v2262_v49  ;;  %v2711_v41 = vand.u32 4294901760, %v2710_v11  ;;  %2973 = vmatmul.f32.gmra.mxu3 %v7120_v46  ;;  %v7129_v30 = vsub.f32 %v2555_v1, %v7120_v46  ;;  %v2470_v16 = vmul.f32 %v2258_v61, %v6829_v43 }
 0x240   : > { %v2270_v62 = vmul.f32 %v7125_v18, %v7064_v63  ;;  %v2089_v19 = vmul.f32 %v1955_v5, %v6300_v37  ;;  %v7136_v22 = vsub.f32 %v7001_v23, %v1771_v9  ;;  %v1959_v12 = vrot.slane %v1958_v52, 2 }
 0x241   : > { %v2264_v51 = vmul.f32 %v7075_v38, %v2263_v34  ;;  %v1646_v58 = vrot.slane %v1645_v31, 2  ;;  %2712 = vmatmul.f32.gmra.mxu2 %v2711_v41  ;;  %v7141_v1 = vadd.f32 %v6976_v7, %v1323_v59  ;;  %v2717_v41 = vand.u32 4294901760, %v7129_v30 }
 0x242   : > { %v2271_v60 = vmul.f32 %v7125_v18, %v2270_v62  ;;  %v7156_v23 = vadd.f32 1e-05, %v2089_v19  ;;  %v1835_v7 = vmul.f32 %v7136_v22, %v7136_v22  ;;  %v1960_v59 = vadd.f32 %v1959_v12, %v1958_v52  ;;  %v7168_v15 = vpop.f32.mrf.mxu0  ;;  %v1208_v62 = vpop.f32.mrf.mxu3 }
 0x243   : > { %3303 = vmatmul.f32.gmra.mxu1 %v2685_v32  ;;  %v2268_v32 = vsel %vm7151_vm12, %v7075_v38, %v2264_v51  ;;  %v1647_v61 = vadd.f32 %v1646_v58, %v1645_v31  ;;  %v1650_v53 = vsel %vm1523_vm2, %v7141_v1, 0.0  ;;  %v2502_v2 = vmax.f32 %v2470_v16, 0.0 }
 0x244   : > { %v2272_v49 = vmul.f32 0.5, %v2271_v60  ;;  %vm2276_vm13 = vweird.f32 %v7125_v18  ;;  %5678 = vrsqrt.f32 %v7156_v23  ;;  %v1961_v11 = vrot.slane %v1960_v59, 1 }
 0x245   : > { %v1963_v5 = vsel %vm1523_vm2, %v1835_v7, 0.0  ;;  %v1648_v9 = vrot.slane %v1647_v61, 1  ;;  %v1651_v34 = vrot.slane %v1650_v53, 4  ;;  %v7172_v38 = vmul.f32 %v2268_v32, %v6902_v55 }
 0x246   : > { %v2273_v31 = vsub.f32 1.5, %v2272_v49  ;;  %v1964_v52 = vrot.slane %v1963_v5, 4  ;;  %v2718_v16 = vsub.f32 %v7129_v30, %v2717_v41  ;;  %v1962_v19 = vadd.f32 %v1961_v11, %v1960_v59  ;;  %3116 = vmatmul.f32.gmra.mxu0 %v6876_v14 }
 0x247   : > { %v1649_v51 = vadd.f32 %v1648_v9, %v1647_v61  ;;  %v1652_v12 = vadd.f32 %v1651_v34, %v1650_v53  ;;  %v2558_v58 = vsel %vm1523_vm2, %v2501_v29, 0  ;;  %v1327_v61 = vadd.f32 %v7055_v20, %v6447_v54 }
 0x248   : > { %v7181_v43 = vmul.f32 %v7125_v18, %v2273_v31  ;;  %v1965_v60 = vadd.f32 %v1964_v52, %v1963_v5  ;;  %v2719_v7 = vand.u32 4294901760, %v2718_v16  ;;  %v7183_v55 = vand.u32 4294901760, %v2558_v58 }
 0x249   : > { %v2090_v32 = vmul.f32 %v1962_v19, %v6300_v37  ;;  %v1772_v49 = vmul.f32 %v6300_v37, %v1649_v51  ;;  %v1653_v59 = vrot.slane %v1652_v12, 2  ;;  %v10024_v3 = vand.u32 4294901760, %v6968_v8 }
 0x24a   : > { %10023 = vst [vmem:[#allocation19_spill] sm:$0xff] %v7183_v55  ;;  %v7192_v29 = vpop.eup %5678  ;;  %v7196_v53 = vadd.f32 %v7112_v28, %v6782_v17  ;;  %v7199_v11 = vadd.f32 %v1208_v62, %v7078_v4  ;;  %vm2275_vm14 = vweird.f32 %v7064_v63  ;;  %v1966_v14 = vrot.slane %v1965_v60, 2  ;;  %2720 = vmatmul.f32.gmra.mxu2 %v2719_v7  ;;  %2977 = vmatmul.f32.gmra.mxu3 %v7183_v55  ;;  %v7211_v28 = vpop.f32.mrf.mxu1 }
 0x24b   : > { %3309 = vmatmul.f32.gmra.mxu1 %v10024_v3  ;;  %v2280_v54 = vmul.f32 %v7192_v29, %v7156_v23  ;;  %v7205_v20 = vadd.f32 1e-05, %v2090_v32  ;;  %v7208_v5 = vsub.f32 %v2558_v58, %v7183_v55  ;;  %v2561_v17 = vsel %vm1523_vm2, %v2502_v2, 0  ;;  %vm7215_vm15 = vmor %vm2275_vm14, %vm2276_vm13  ;;  %v7236_v51 = vpop.f32.mrf.mxu0 }
 0x24c   : > { %v1967_v4 = vadd.f32 %v1966_v14, %v1965_v60  ;;  %v7220_v9 = vsub.f32 %v7090_v47, %v1772_v49  ;;  %v1654_v34 = vadd.f32 %v1653_v59, %v1652_v12  ;;  %v7223_v62 = vadd.f32 %v7026_v35, %v1327_v61 }
 0x24d   : > { %v2503_v31 = vmax.f32 %v7172_v38, 0.0  ;;  %v2278_v2 = vsel %vm7215_vm15, %v7125_v18, %v7181_v43  ;;  %v2281_v52 = vmul.f32 %v7192_v29, %v2280_v54  ;;  %5680 = vrsqrt.f32 %v7205_v20  ;;  %v7241_v18 = vpop.f32.mrf.mxu3 }
 0x24e   : > { %v1968_v16 = vrot.slane %v1967_v4, 1  ;;  %v1836_v47 = vmul.f32 %v7220_v9, %v7220_v9  ;;  %v1655_v19 = vrot.slane %v1654_v34, 1  ;;  %v1657_v35 = vsel %vm1523_vm2, %v7223_v62, 0.0  ;;  %3121 = vmatmul.f32.gmra.mxu0 %v6968_v8 }
 0x24f   : > { %v2282_v38 = vmul.f32 0.5, %v2281_v52  ;;  %v1658_v12 = vrot.slane %v1657_v35, 4  ;;  %v9818_v58 = vand.u32 4294901760, %v7208_v5  ;;  %v7239_v60 = vand.u32 4294901760, %v2561_v17 }
 0x250   : > { %v1969_v43 = vadd.f32 %v1968_v16, %v1967_v4  ;;  %v1970_v7 = vsel %vm1523_vm2, %v1836_v47, 0.0  ;;  %v1656_v32 = vadd.f32 %v1655_v19, %v1654_v34  ;;  %v1331_v49 = vadd.f32 %v7115_v48, %v6459_v40 }
 0x251   : > { %10027 = vst [vmem:[#allocation42_spill] sm:$0xff] %v7239_v60  ;;  %v2283_v59 = vsub.f32 1.5, %v2282_v38  ;;  %v1971_v61 = vrot.slane %v1970_v7, 4  ;;  %v1659_v3 = vadd.f32 %v1658_v12, %v1657_v35  ;;  %v2726_v14 = vsub.f32 %v7208_v5, %v9818_v58  ;;  %v10030_v12 = vld [vmem:[#allocation45_spill] sm:$0xff] }
 0x252   : > { %v10028_v54 = vand.u32 4294901760, %v7004_v50  ;;  %vm2286_vm0 = vweird.f32 %v7192_v29  ;;  %v2091_v63 = vmul.f32 %v1969_v43, %v6300_v37  ;;  %v1773_v4 = vmul.f32 %v6300_v37, %v1656_v32  ;;  %2981 = vmatmul.f32.gmra.mxu3 %v7239_v60 }
 0x253   : > { %v7257_v40 = vadd.f32 %v7073_v21, %v1331_v49  ;;  %v7259_v8 = vpop.eup %5680  ;;  %v1972_v48 = vadd.f32 %v1971_v61, %v1970_v7  ;;  %v1660_v34 = vrot.slane %v1659_v3, 2  ;;  %v2727_v52 = vand.u32 4294901760, %v2726_v14  ;;  %v10029_v21 = vld [vmem:[#allocation46_spill] sm:$0xff]  ;;  %v7278_v49 = vpop.f32.mrf.mxu1 }
 0x254   : > { %3315 = vmatmul.f32.gmra.mxu1 %v10028_v54  ;;  %v7262_v16 = vsub.f32 %v2561_v17, %v7239_v60  ;;  %v2284_v47 = vmul.f32 %v7192_v29, %v2283_v59  ;;  %v2290_v19 = vmul.f32 %v7259_v8, %v7205_v20  ;;  %v7267_v35 = vadd.f32 1e-05, %v2091_v63 }
 0x255   : > { %v7270_v38 = vsub.f32 %v7141_v1, %v1773_v4  ;;  %v7274_v43 = vadd.f32 %v10030_v12, %v10029_v21  ;;  %v1973_v7 = vrot.slane %v1972_v48, 2  ;;  %v1661_v32 = vadd.f32 %v1660_v34, %v1659_v3  ;;  %2728 = vmatmul.f32.gmra.mxu2 %v2727_v52  ;;  %v7299_v34 = vpop.f32.mrf.mxu0 }
 0x256   : > { %v1664_v17 = vsel %vm1523_vm2, %v7257_v40, 0.0  ;;  %v7281_v59 = vmul.f32 %v2278_v2, %v6945_v36  ;;  %vm2285_vm1 = vweird.f32 %v7156_v23  ;;  %v2291_v1 = vmul.f32 %v7259_v8, %v2290_v19  ;;  %3126 = vmatmul.f32.gmra.mxu0 %v7004_v50  ;;  %v7313_v50 = vpop.f32.mrf.mxu2 }
 0x257   : > { %5682 = vrsqrt.f32 %v7267_v35  ;;  %vm7288_vm3 = vmor %vm2285_vm1, %vm2286_vm0  ;;  %v1974_v3 = vadd.f32 %v1973_v7, %v1972_v48  ;;  %v1837_v14 = vmul.f32 %v7270_v38, %v7270_v38  ;;  %v1662_v54 = vrot.slane %v1661_v32, 1  ;;  %v7305_v7 = vpop.f32.mrf.mxu3 }
 0x258   : > { %v1665_v63 = vrot.slane %v1664_v17, 4  ;;  %v2288_v36 = vsel %vm7288_vm3, %v7192_v29, %v2284_v47  ;;  %v2292_v23 = vmul.f32 0.5, %v2291_v1  ;;  %v9817_v2 = vand.u32 4294901760, %v7262_v16 }
 0x259   : > { %v2564_v4 = vsel %vm1523_vm2, %v2503_v31, 0  ;;  %v1975_v52 = vrot.slane %v1974_v3, 1  ;;  %v1977_v48 = vsel %vm1523_vm2, %v1837_v14, 0.0  ;;  %v1663_v19 = vadd.f32 %v1662_v54, %v1661_v32 }
 0x25a   : > { %v1666_v21 = vadd.f32 %v1665_v63, %v1664_v17  ;;  %v10033_v12 = vand.u32 4294901760, %v7071_v10  ;;  %v2504_v29 = vmax.f32 %v7281_v59, 0.0  ;;  %v1978_v47 = vrot.slane %v1977_v48, 4 }
 0x25b   : > { %v2734_v31 = vsub.f32 %v7262_v16, %v9817_v2  ;;  %v7311_v1 = vand.u32 4294901760, %v2564_v4  ;;  %v1976_v61 = vadd.f32 %v1975_v52, %v1974_v3  ;;  %v1774_v32 = vmul.f32 %v6300_v37, %v1663_v19  ;;  %v7343_v19 = vpop.f32.mrf.mxu1 }
 0x25c   : > { %3321 = vmatmul.f32.gmra.mxu1 %v10033_v12  ;;  %v1667_v17 = vrot.slane %v1666_v21, 2  ;;  %v1335_v14 = vadd.f32 %v7168_v15, %v6466_v45  ;;  %v7321_v59 = vmul.f32 %v2288_v36, %v7024_v25  ;;  %v1979_v63 = vadd.f32 %v1978_v47, %v1977_v48 }
 0x25d   : > { %10034 = vst [vmem:[#allocation47_spill] sm:$0xff] %v7311_v1  ;;  %v7318_v54 = vpop.eup %5682  ;;  %v2735_v12 = vand.u32 4294901760, %v2734_v31  ;;  %2985 = vmatmul.f32.gmra.mxu3 %v7311_v1  ;;  %v7325_v2 = vsub.f32 %v2564_v4, %v7311_v1  ;;  %v2293_v58 = vsub.f32 1.5, %v2292_v23  ;;  %v2092_v52 = vmul.f32 %v1976_v61, %v6300_v37 }
 0x25e   : > { %v2300_v3 = vmul.f32 %v7318_v54, %v7267_v35  ;;  %v7331_v45 = vsub.f32 %v7223_v62, %v1774_v32  ;;  %vm2295_vm4 = vweird.f32 %v7205_v20  ;;  %v1980_v25 = vrot.slane %v1979_v63, 2  ;;  %3131 = vmatmul.f32.gmra.mxu0 %v7071_v10  ;;  %v7366_v55 = vpop.f32.mrf.mxu2 }
 0x25f   : > { %v1668_v15 = vadd.f32 %v1667_v17, %v1666_v21  ;;  %2736 = vmatmul.f32.gmra.mxu2 %v2735_v12  ;;  %v7335_v36 = vadd.f32 %v7143_v26, %v1335_v14  ;;  %vm2296_vm5 = vweird.f32 %v7259_v8  ;;  %v7339_v4 = vadd.f32 1e-05, %v2092_v52  ;;  %v7348_v26 = vpop.f32.mrf.mxu0 }
 0x260   : > { %v2301_v23 = vmul.f32 %v7318_v54, %v2300_v3  ;;  %v1838_v48 = vmul.f32 %v7331_v45, %v7331_v45  ;;  %v1981_v62 = vadd.f32 %v1980_v25, %v1979_v63  ;;  %v9825_v31 = vand.u32 4294901760, %v7325_v2  ;;  %vm7375_vm7 = vmor %vm2295_vm4, %vm2296_vm5 }
 0x261   : > { %v1669_v47 = vrot.slane %v1668_v15, 1  ;;  %v1671_v21 = vsel %vm1523_vm2, %v7335_v36, 0.0  ;;  %v2505_v61 = vmax.f32 %v7321_v59, 0.0  ;;  %v2294_v32 = vmul.f32 %v7259_v8, %v2293_v58  ;;  %v7361_v58 = vpop.f32.mrf.mxu3 }
 0x262   : > { %v2302_v17 = vmul.f32 0.5, %v2301_v23  ;;  %5684 = vrsqrt.f32 %v7339_v4  ;;  %v1982_v14 = vrot.slane %v1981_v62, 1  ;;  %v1984_v63 = vsel %vm1523_vm2, %v1838_v48, 0.0 }
 0x263   : > { %v1670_v12 = vadd.f32 %v1669_v47, %v1668_v15  ;;  %v1672_v3 = vrot.slane %v1671_v21, 4  ;;  %v1985_v25 = vrot.slane %v1984_v63, 4  ;;  %v2742_v10 = vsub.f32 %v7325_v2, %v9825_v31 }
 0x264   : > { %3327 = vmatmul.f32.gmra.mxu1 %v2717_v41  ;;  %v2303_v52 = vsub.f32 1.5, %v2302_v17  ;;  %v2567_v59 = vsel %vm1523_vm2, %v2504_v29, 0  ;;  %v1983_v23 = vadd.f32 %v1982_v14, %v1981_v62  ;;  %vm2306_vm6 = vweird.f32 %v7318_v54 }
 0x265   : > { %v1775_v1 = vmul.f32 %v6300_v37, %v1670_v12  ;;  %v1673_v60 = vadd.f32 %v1672_v3, %v1671_v21  ;;  %v7364_v41 = vand.u32 4294901760, %v2567_v59  ;;  %v1986_v15 = vadd.f32 %v1985_v25, %v1984_v63  ;;  %v7413_v25 = vpop.f32.mrf.mxu1 }
 0x266   : > { %v2743_v48 = vand.u32 4294901760, %v2742_v10  ;;  %v1339_v47 = vadd.f32 %v7236_v51, %v6476_v13  ;;  %v2304_v62 = vmul.f32 %v7318_v54, %v2303_v52  ;;  %v2093_v21 = vmul.f32 %v1983_v23, %v6300_v37  ;;  %3136 = vmatmul.f32.gmra.mxu0 %v7129_v30  ;;  %v7440_v31 = vpop.f32.mrf.mxu2 }
 0x267   : > { %10035 = vst [vmem:[#allocation18_spill] sm:$0xff] %v7364_v41  ;;  %v7382_v17 = vsub.f32 %v7257_v40, %v1775_v1  ;;  %v1674_v14 = vrot.slane %v1673_v60, 2  ;;  %2989 = vmatmul.f32.gmra.mxu3 %v7364_v41  ;;  %v2298_v13 = vsel %vm7375_vm7, %v7259_v8, %v2294_v32  ;;  %vm2305_vm8 = vweird.f32 %v7267_v35  ;;  %v7423_v23 = vpop.f32.mrf.mxu0 }
 0x268   : > { %v7385_v63 = vpop.eup %5684  ;;  %v1987_v20 = vrot.slane %v1986_v15, 2  ;;  %2744 = vmatmul.f32.gmra.mxu2 %v2743_v48  ;;  %v7392_v51 = vadd.f32 %v7211_v28, %v1339_v47  ;;  %v7396_v1 = vadd.f32 1e-05, %v2093_v21  ;;  %v7399_v12 = vsub.f32 %v2567_v59, %v7364_v41  ;;  %vm7405_vm9 = vmor %vm2305_vm8, %vm2306_vm6 }
 0x269   : > { %v2310_v40 = vmul.f32 %v7385_v63, %v7339_v4  ;;  %v2570_v3 = vsel %vm1523_vm2, %v2505_v61, 0  ;;  %v1839_v35 = vmul.f32 %v7382_v17, %v7382_v17  ;;  %v1675_v32 = vadd.f32 %v1674_v14, %v1673_v60 }
 0x26a   : > { %v1988_v28 = vadd.f32 %v1987_v20, %v1986_v15  ;;  %v1678_v52 = vsel %vm1523_vm2, %v7392_v51, 0.0  ;;  %v10040_v61 = vand.u32 4294901760, %v7208_v5  ;;  %v2474_v30 = vmul.f32 %v2298_v13, %v7067_v56  ;;  %v7429_v13 = vpop.f32.mrf.mxu3 }
 0x26b   : > { %v2308_v10 = vsel %vm7405_vm9, %v7318_v54, %v2304_v62  ;;  %v2311_v59 = vmul.f32 %v7385_v63, %v2310_v40  ;;  %5686 = vrsqrt.f32 %v7396_v1  ;;  %v1991_v15 = vsel %vm1523_vm2, %v1839_v35, 0.0 }
 0x26c   : > { %3333 = vmatmul.f32.gmra.mxu1 %v10040_v61  ;;  %v1989_v60 = vrot.slane %v1988_v28, 1  ;;  %v1676_v48 = vrot.slane %v1675_v32, 1  ;;  %v1679_v47 = vrot.slane %v1678_v52, 4  ;;  %v1992_v21 = vrot.slane %v1991_v15, 4 }
 0x26d   : > { %v2312_v29 = vmul.f32 0.5, %v2311_v59  ;;  %v9826_v14 = vand.u32 4294901760, %v7399_v12  ;;  %v7427_v56 = vand.u32 4294901760, %v2570_v3  ;;  %v1343_v40 = vadd.f32 %v7299_v34, %v6484_v42 }
 0x26e   : > { %v1990_v54 = vadd.f32 %v1989_v60, %v1988_v28  ;;  %v1677_v62 = vadd.f32 %v1676_v48, %v1675_v32  ;;  %v1680_v20 = vadd.f32 %v1679_v47, %v1678_v52  ;;  %v2506_v8 = vmax.f32 %v2474_v30, 0.0  ;;  %3141 = vmatmul.f32.gmra.mxu0 %v7208_v5 }
 0x26f   : > { %10041 = vst [vmem:[#allocation22_spill] sm:$0xff] %v7427_v56  ;;  %v1993_v61 = vadd.f32 %v1992_v21, %v1991_v15  ;;  %v2750_v35 = vsub.f32 %v7399_v12, %v9826_v14  ;;  %2993 = vmatmul.f32.gmra.mxu3 %v7427_v56  ;;  %v7438_v59 = vsub.f32 %v2570_v3, %v7427_v56  ;;  %v2313_v60 = vsub.f32 1.5, %v2312_v29 }
 0x270   : > { %v2094_v28 = vmul.f32 %v1990_v54, %v6300_v37  ;;  %v1776_v32 = vmul.f32 %v6300_v37, %v1677_v62  ;;  %v1681_v52 = vrot.slane %v1680_v20, 2  ;;  %v7445_v42 = vadd.f32 %v7278_v49, %v1343_v40  ;;  %v10043_v62 = vld [vmem:[#allocation50_spill] sm:$0xff]  ;;  %v10044_v40 = vld [vmem:[#allocation48_spill] sm:$0xff] }
 0x271   : > { %v7447_v34 = vpop.eup %5686  ;;  %v7450_v30 = vmul.f32 %v2308_v10, %v7136_v22  ;;  %v1994_v15 = vrot.slane %v1993_v61, 2  ;;  %v2751_v48 = vand.u32 4294901760, %v2750_v35  ;;  %v9837_v49 = vand.u32 4294901760, %v7438_v59 }
 0x272   : > { %v2320_v3 = vmul.f32 %v7447_v34, %v7396_v1  ;;  %v7455_v47 = vadd.f32 1e-05, %v2094_v28  ;;  %v7458_v21 = vsub.f32 %v7335_v36, %v1776_v32  ;;  %v10042_v54 = vand.u32 4294901760, %v7262_v16  ;;  %v7472_v28 = vpop.f32.mrf.mxu1  ;;  %v7485_v56 = vpop.f32.mrf.mxu3 }
 0x273   : > { %v1007_v22 = vadd.f32 %v7313_v50, %v7274_v43  ;;  %v1995_v10 = vadd.f32 %v1994_v15, %v1993_v61  ;;  %v1682_v29 = vadd.f32 %v1681_v52, %v1680_v20  ;;  %2752 = vmatmul.f32.gmra.mxu2 %v2751_v48  ;;  %v1685_v5 = vsel %vm1523_vm2, %v7445_v42, 0.0  ;;  %v7476_v61 = vpop.f32.mrf.mxu0 }
 0x274   : > { %3339 = vmatmul.f32.gmra.mxu1 %v10042_v54  ;;  %v834_v35 = vadd.f32 %v10044_v40, %v10043_v62  ;;  %vm2316_vm10 = vweird.f32 %v7385_v63  ;;  %v2321_v36 = vmul.f32 %v7447_v34, %v2320_v3  ;;  %5688 = vrsqrt.f32 %v7455_v47 }
 0x275   : > { %v1996_v32 = vrot.slane %v1995_v10, 1  ;;  %v1840_v43 = vmul.f32 %v7458_v21, %v7458_v21  ;;  %v1683_v50 = vrot.slane %v1682_v29, 1  ;;  %v1686_v20 = vrot.slane %v1685_v5, 4 }
 0x276   : > { %v2507_v52 = vmax.f32 %v7450_v30, 0.0  ;;  %v2314_v15 = vmul.f32 %v7385_v63, %v2313_v60  ;;  %v2758_v48 = vsub.f32 %v7438_v59, %v9837_v49  ;;  %v2573_v3 = vsel %vm1523_vm2, %v2506_v8, 0  ;;  %v7489_v30 = vpop.f32.mrf.mxu2  ;;  %3146 = vmatmul.f32.gmra.mxu0 %v7262_v16 }
 0x277   : > { %v1997_v54 = vadd.f32 %v1996_v32, %v1995_v10  ;;  %v1998_v62 = vsel %vm1523_vm2, %v1840_v43, 0.0  ;;  %v1684_v40 = vadd.f32 %v1683_v50, %v1682_v29  ;;  %v1687_v14 = vadd.f32 %v1686_v20, %v1685_v5 }
 0x278   : > { %v2322_v41 = vmul.f32 0.5, %v2321_v36  ;;  %v1999_v46 = vrot.slane %v1998_v62, 4  ;;  %v2759_v27 = vand.u32 4294901760, %v2758_v48  ;;  %v7487_v0 = vand.u32 4294901760, %v2573_v3 }
 0x279   : > { %v2095_v60 = vmul.f32 %v1997_v54, %v6300_v37  ;;  %v1777_v49 = vmul.f32 %v6300_v37, %v1684_v40  ;;  %v1688_v6 = vrot.slane %v1687_v14, 2  ;;  %v1347_v8 = vadd.f32 %v7348_v26, %v6494_v33 }
 0x27a   : > { %v7496_v10 = vpop.eup %5688  ;;  %v7499_v29 = vadd.f32 %v7241_v18, %v1007_v22  ;;  %v7502_v5 = vadd.f32 %v7366_v55, %v834_v35  ;;  %vm2315_vm11 = vweird.f32 %v7339_v4  ;;  %v2000_v36 = vadd.f32 %v1999_v46, %v1998_v62  ;;  %2997 = vmatmul.f32.gmra.mxu3 %v7487_v0 }
 0x27b   : > { %v10045_v32 = vand.u32 4294901760, %v7325_v2  ;;  %vm7510_vm12 = vmor %vm2315_vm11, %vm2316_vm10  ;;  %vm2325_vm13 = vweird.f32 %v7396_v1  ;;  %v2330_v55 = vmul.f32 %v7496_v10, %v7455_v47  ;;  %v7517_v18 = vadd.f32 1e-05, %v2095_v60  ;;  %2760 = vmatmul.f32.gmra.mxu2 %v2759_v27 }
 0x27c   : > { %v7520_v46 = vsub.f32 %v7392_v51, %v1777_v49  ;;  %v7523_v16 = vsub.f32 %v2573_v3, %v7487_v0  ;;  %v2318_v4 = vsel %vm7510_vm12, %v7385_v63, %v2314_v15  ;;  %v2001_v26 = vrot.slane %v2000_v36, 2  ;;  %v7538_v15 = vpop.f32.mrf.mxu1 }
 0x27d   : > { %3345 = vmatmul.f32.gmra.mxu1 %v10045_v32  ;;  %v1689_v22 = vadd.f32 %v1688_v6, %v1687_v14  ;;  %v7529_v35 = vadd.f32 %v7343_v19, %v1347_v8  ;;  %v2323_v43 = vsub.f32 1.5, %v2322_v41  ;;  %v2331_v50 = vmul.f32 %v7496_v10, %v2330_v55  ;;  %v7543_v14 = vpop.f32.mrf.mxu0  ;;  %v7552_v8 = vpop.f32.mrf.mxu3 }
 0x27e   : > { %5690 = vrsqrt.f32 %v7517_v18  ;;  %v2576_v51 = vsel %vm1523_vm2, %v2507_v52, 0  ;;  %v2002_v27 = vadd.f32 %v2001_v26, %v2000_v36  ;;  %v1841_v49 = vmul.f32 %v7520_v46, %v7520_v46  ;;  %3151 = vmatmul.f32.gmra.mxu0 %v7325_v2 }
 0x27f   : > { %v1690_v20 = vrot.slane %v1689_v22, 1  ;;  %v1692_v63 = vsel %vm1523_vm2, %v7529_v35, 0.0  ;;  %v2476_v6 = vmul.f32 %v2318_v4, %v7220_v9  ;;  %vm2326_vm14 = vweird.f32 %v7447_v34  ;;  %v7559_v4 = vpop.f32.mrf.mxu2 }
 0x280   : > { %v1693_v19 = vrot.slane %v1692_v63, 4  ;;  %v9840_v41 = vand.u32 4294901760, %v7523_v16  ;;  %v2003_v52 = vrot.slane %v2002_v27, 1  ;;  %v2005_v48 = vsel %vm1523_vm2, %v1841_v49, 0.0  ;;  %vm7572_vm15 = vmor %vm2325_vm13, %vm2326_vm14 }
 0x281   : > { %v1691_v3 = vadd.f32 %v1690_v20, %v1689_v22  ;;  %v7546_v54 = vand.u32 4294901760, %v2576_v51  ;;  %v2324_v62 = vmul.f32 %v7447_v34, %v2323_v43  ;;  %v2006_v40 = vrot.slane %v2005_v48, 4 }
 0x282   : > { %v1694_v60 = vadd.f32 %v1693_v19, %v1692_v63  ;;  %v2766_v9 = vsub.f32 %v7523_v16, %v9840_v41  ;;  %v2332_v36 = vmul.f32 0.5, %v2331_v50  ;;  %v2004_v32 = vadd.f32 %v2003_v52, %v2002_v27 }
 0x283   : > { %v1778_v33 = vmul.f32 %v6300_v37, %v1691_v3  ;;  %3001 = vmatmul.f32.gmra.mxu3 %v7546_v54  ;;  %v1351_v55 = vadd.f32 %v7423_v23, %v6514_v39  ;;  %v2007_v22 = vadd.f32 %v2006_v40, %v2005_v48  ;;  %v7564_v20 = vsub.f32 %v2576_v51, %v7546_v54 }
 0x284   : > { %v7561_v26 = vpop.eup %5690  ;;  %v1695_v43 = vrot.slane %v1694_v60, 2  ;;  %v2767_v49 = vand.u32 4294901760, %v2766_v9  ;;  %v10048_v2 = vand.u32 4294901760, %v7399_v12  ;;  %v2508_v50 = vmax.f32 %v2476_v6, 0.0 }
 0x285   : > { %v2340_v23 = vmul.f32 %v7561_v26, %v7517_v18  ;;  %v2096_v27 = vmul.f32 %v2004_v32, %v6300_v37  ;;  %v7580_v51 = vsub.f32 %v7445_v42, %v1778_v33  ;;  %v2328_v63 = vsel %vm7572_vm15, %v7447_v34, %v2324_v62 }
 0x286   : > { %3351 = vmatmul.f32.gmra.mxu1 %v10048_v2  ;;  %vm2335_vm0 = vweird.f32 %v7455_v47  ;;  %v2008_v6 = vrot.slane %v2007_v22, 2  ;;  %v1696_v1 = vadd.f32 %v1695_v43, %v1694_v60  ;;  %2768 = vmatmul.f32.gmra.mxu2 %v2767_v49  ;;  %v7587_v19 = vadd.f32 %v7413_v25, %v1351_v55  ;;  %v7603_v43 = vpop.f32.mrf.mxu0 }
 0x287   : > { %v2333_v52 = vsub.f32 1.5, %v2332_v36  ;;  %v2341_v48 = vmul.f32 %v7561_v26, %v2340_v23  ;;  %v7590_v3 = vadd.f32 1e-05, %v2096_v27  ;;  %v1842_v42 = vmul.f32 %v7580_v51, %v7580_v51  ;;  %v7600_v36 = vpop.f32.mrf.mxu1  ;;  %3156 = vmatmul.f32.gmra.mxu0 %v7399_v12 }
 0x288   : > { %v2009_v40 = vadd.f32 %v2008_v6, %v2007_v22  ;;  %v1697_v9 = vrot.slane %v1696_v1, 1  ;;  %v1699_v34 = vsel %vm1523_vm2, %v7587_v19, 0.0  ;;  %v9841_v62 = vand.u32 4294901760, %v7564_v20  ;;  %v7618_v41 = vpop.f32.mrf.mxu2 }
 0x289   : > { %v2477_v60 = vmul.f32 %v2328_v63, %v7270_v38  ;;  %vm2336_vm1 = vweird.f32 %v7496_v10  ;;  %v2342_v25 = vmul.f32 0.5, %v2341_v48  ;;  %5692 = vrsqrt.f32 %v7590_v3 }
 0x28a   : > { %v2010_v32 = vrot.slane %v2009_v40, 1  ;;  %v2012_v33 = vsel %vm1523_vm2, %v1842_v42, 0.0  ;;  %v1698_v55 = vadd.f32 %v1697_v9, %v1696_v1  ;;  %v1700_v22 = vrot.slane %v1699_v34, 4  ;;  %v7614_v1 = vpop.f32.mrf.mxu3  ;;  %vm7639_vm3 = vmor %vm2335_vm0, %vm2336_vm1 }
 0x28b   : > { %v2334_v49 = vmul.f32 %v7496_v10, %v2333_v52  ;;  %v2013_v2 = vrot.slane %v2012_v33, 4  ;;  %v2774_v38 = vsub.f32 %v7564_v20, %v9841_v62  ;;  %v2579_v39 = vsel %vm1523_vm2, %v2508_v50, 0 }
 0x28c   : > { %v2011_v23 = vadd.f32 %v2010_v32, %v2009_v40  ;;  %v1779_v27 = vmul.f32 %v6300_v37, %v1698_v55  ;;  %v1701_v63 = vadd.f32 %v1700_v22, %v1699_v34  ;;  %v7612_v6 = vand.u32 4294901760, %v2579_v39 }
 0x28d   : > { %v10052_v48 = vand.u32 4294901760, %v7438_v59  ;;  %v2509_v12 = vmax.f32 %v2477_v60, 0.0  ;;  %v2343_v52 = vsub.f32 1.5, %v2342_v25  ;;  %v2014_v42 = vadd.f32 %v2013_v2, %v2012_v33  ;;  %v10053_v25 = vld [vmem:[#allocation54_spill] sm:$0xff]  ;;  %v10054_v33 = vld [vmem:[#allocation51_spill] sm:$0xff] }
 0x28e   : > { %10051 = vst [vmem:[#allocation21_spill] sm:$0xff] %v7612_v6  ;;  %v2775_v9 = vand.u32 4294901760, %v2774_v38  ;;  %v2097_v62 = vmul.f32 %v2011_v23, %v6300_v37  ;;  %v7622_v50 = vsub.f32 %v7529_v35, %v1779_v27  ;;  %v1702_v40 = vrot.slane %v1701_v63, 2  ;;  %3005 = vmatmul.f32.gmra.mxu3 %v7612_v6 }
 0x28f   : > { %3357 = vmatmul.f32.gmra.mxu1 %v10052_v48  ;;  %v1355_v34 = vadd.f32 %v7476_v61, %v6779_v44  ;;  %v7627_v32 = vpop.eup %5692  ;;  %v7631_v60 = vadd.f32 %v7305_v7, %v7502_v5  ;;  %v838_v55 = vadd.f32 %v10054_v33, %v10053_v25  ;;  %vm2346_vm4 = vweird.f32 %v7561_v26  ;;  %3161 = vmatmul.f32.gmra.mxu0 %v7438_v59 }
 0x290   : > { %v2015_v44 = vrot.slane %v2014_v42, 2  ;;  %2776 = vmatmul.f32.gmra.mxu2 %v2775_v9  ;;  %v2338_v7 = vsel %vm7639_vm3, %v7496_v10, %v2334_v49  ;;  %v2350_v61 = vmul.f32 %v7627_v32, %v7590_v3  ;;  %v7649_v5 = vadd.f32 1e-05, %v2097_v62 }
 0x291   : > { %v7652_v22 = vsub.f32 %v2579_v39, %v7612_v6  ;;  %v1843_v2 = vmul.f32 %v7622_v50, %v7622_v50  ;;  %v1703_v38 = vadd.f32 %v1702_v40, %v1701_v63  ;;  %v7657_v23 = vadd.f32 %v7472_v28, %v1355_v34  ;;  %v7670_v34 = vpop.f32.mrf.mxu0 }
 0x292   : > { %v2016_v47 = vadd.f32 %v2015_v44, %v2014_v42  ;;  %v2344_v27 = vmul.f32 %v7561_v26, %v2343_v52  ;;  %v2351_v10 = vmul.f32 %v7627_v32, %v2350_v61  ;;  %5694 = vrsqrt.f32 %v7649_v5  ;;  %v7667_v42 = vpop.f32.mrf.mxu1  ;;  %v7677_v35 = vpop.f32.mrf.mxu3 }
 0x293   : > { %v2582_v62 = vsel %vm1523_vm2, %v2509_v12, 0  ;;  %v2019_v39 = vsel %vm1523_vm2, %v1843_v2, 0.0  ;;  %v1704_v48 = vrot.slane %v1703_v38, 1  ;;  %v1706_v63 = vsel %vm1523_vm2, %v7657_v23, 0.0 }
 0x294   : > { %v2017_v49 = vrot.slane %v2016_v47, 1  ;;  %v2352_v28 = vmul.f32 0.5, %v2351_v10  ;;  %v2020_v9 = vrot.slane %v2019_v39, 4  ;;  %v1707_v52 = vrot.slane %v1706_v63, 4 }
 0x295   : > { %v9843_v40 = vand.u32 4294901760, %v7652_v22  ;;  %v10057_v12 = vand.u32 4294901760, %v7523_v16  ;;  %vm2345_vm5 = vweird.f32 %v7517_v18  ;;  %v1705_v25 = vadd.f32 %v1704_v48, %v1703_v38 }
 0x296   : > { %v2018_v59 = vadd.f32 %v2017_v49, %v2016_v47  ;;  %v7675_v33 = vand.u32 4294901760, %v2582_v62  ;;  %v2478_v44 = vmul.f32 %v2338_v7, %v7331_v45  ;;  %vm7682_vm6 = vmor %vm2345_vm5, %vm2346_vm4  ;;  %v2021_v2 = vadd.f32 %v2020_v9, %v2019_v39  ;;  %v7697_v49 = vpop.f32.mrf.mxu2 }
 0x297   : > { %3363 = vmatmul.f32.gmra.mxu1 %v10057_v12  ;;  %v1708_v10 = vadd.f32 %v1707_v52, %v1706_v63  ;;  %v2782_v18 = vsub.f32 %v7652_v22, %v9843_v40  ;;  %v2348_v47 = vsel %vm7682_vm6, %v7561_v26, %v2344_v27  ;;  %v1780_v45 = vmul.f32 %v6300_v37, %v1705_v25 }
 0x298   : > { %10058 = vst [vmem:[#allocation2_spill] sm:$0xff] %v7675_v33  ;;  %v2098_v38 = vmul.f32 %v2018_v59, %v6300_v37  ;;  %3009 = vmatmul.f32.gmra.mxu3 %v7675_v33  ;;  %v1359_v7 = vadd.f32 %v7543_v14, %v7196_v53  ;;  %v7699_v39 = vpop.eup %5694  ;;  %v2353_v48 = vsub.f32 1.5, %v2352_v28  ;;  %v2022_v63 = vrot.slane %v2021_v2, 2  ;;  %3166 = vmatmul.f32.gmra.mxu0 %v7523_v16 }
 0x299   : > { %v1709_v9 = vrot.slane %v1708_v10, 2  ;;  %v2783_v52 = vand.u32 4294901760, %v2782_v18  ;;  %v2360_v26 = vmul.f32 %v7699_v39, %v7649_v5  ;;  %v7706_v12 = vsub.f32 %v7587_v19, %v1780_v45 }
 0x29a   : > { %v7703_v27 = vadd.f32 1e-05, %v2098_v38  ;;  %v7709_v59 = vsub.f32 %v2582_v62, %v7675_v33  ;;  %v2510_v53 = vmax.f32 %v2478_v44, 0.0  ;;  %v2023_v14 = vadd.f32 %v2022_v63, %v2021_v2  ;;  %v7734_v63 = vpop.f32.mrf.mxu0 }
 0x29b   : > { %v1710_v25 = vadd.f32 %v1709_v9, %v1708_v10  ;;  %2784 = vmatmul.f32.gmra.mxu2 %v2783_v52  ;;  %v7712_v28 = vadd.f32 %v7538_v15, %v1359_v7  ;;  %v7715_v61 = vadd.f32 %v7440_v31, %v838_v55  ;;  %v2479_v18 = vmul.f32 %v2348_v47, %v7382_v17  ;;  %v7730_v10 = vpop.f32.mrf.mxu1 }
 0x29c   : > { %v2361_v38 = vmul.f32 %v7699_v39, %v2360_v26  ;;  %5696 = vrsqrt.f32 %v7703_v27  ;;  %v2024_v19 = vrot.slane %v2023_v14, 1  ;;  %v1844_v62 = vmul.f32 %v7706_v12, %v7706_v12  ;;  %v7740_v26 = vpop.f32.mrf.mxu3 }
 0x29d   : > { %v1711_v44 = vrot.slane %v1710_v25, 1  ;;  %v1713_v15 = vsel %vm1523_vm2, %v7712_v28, 0.0  ;;  %v10061_v2 = vand.u32 4294901760, %v7564_v20  ;;  %v2354_v31 = vmul.f32 %v7627_v32, %v2353_v48 }
 0x29e   : > { %vm2356_vm7 = vweird.f32 %v7627_v32  ;;  %v1714_v17 = vrot.slane %v1713_v15, 4  ;;  %v9842_v55 = vand.u32 4294901760, %v7709_v59  ;;  %v2025_v16 = vadd.f32 %v2024_v19, %v2023_v14 }
 0x29f   : > { %3369 = vmatmul.f32.gmra.mxu1 %v10061_v2  ;;  %v2026_v47 = vsel %vm1523_vm2, %v1844_v62, 0.0  ;;  %v1712_v45 = vadd.f32 %v1711_v44, %v1710_v25  ;;  %v2585_v7 = vsel %vm1523_vm2, %v2510_v53, 0  ;;  %vm2355_vm8 = vweird.f32 %v7590_v3  ;;  %v7750_v3 = vpop.f32.mrf.mxu2 }
 0x2a0   : > { %v2027_v9 = vrot.slane %v2026_v47, 4  ;;  %v1715_v52 = vadd.f32 %v1714_v17, %v1713_v15  ;;  %v2790_v48 = vsub.f32 %v7709_v59, %v9842_v55  ;;  %vm7742_vm9 = vmor %vm2355_vm8, %vm2356_vm7  ;;  %v2362_v14 = vmul.f32 0.5, %v2361_v38  ;;  %3171 = vmatmul.f32.gmra.mxu0 %v7564_v20 }
 0x2a1   : > { %v2099_v25 = vmul.f32 %v2025_v16, %v6300_v37  ;;  %v1781_v53 = vmul.f32 %v6300_v37, %v1712_v45  ;;  %v7748_v19 = vand.u32 4294901760, %v2585_v7  ;;  %v2358_v44 = vsel %vm7742_vm9, %v7627_v32, %v2354_v31 }
 0x2a2   : > { %v7752_v62 = vpop.eup %5696  ;;  %v2028_v15 = vadd.f32 %v2027_v9, %v2026_v47  ;;  %v1716_v17 = vrot.slane %v1715_v52, 2  ;;  %v2791_v55 = vand.u32 4294901760, %v2790_v48  ;;  %v2511_v40 = vmax.f32 %v2479_v18, 0.0 }
 0x2a3   : > { %10064 = vst [vmem:[#allocation24_spill] sm:$0xff] %v7748_v19  ;;  %v2370_v38 = vmul.f32 %v7752_v62, %v7703_v27  ;;  %v7759_v16 = vadd.f32 1e-05, %v2099_v25  ;;  %v7762_v45 = vsub.f32 %v7657_v23, %v1781_v53  ;;  %3013 = vmatmul.f32.gmra.mxu3 %v7748_v19  ;;  %vm2365_vm10 = vweird.f32 %v7649_v5 }
 0x2a4   : > { %vm2366_vm11 = vweird.f32 %v7699_v39  ;;  %v2029_v2 = vrot.slane %v2028_v15, 2  ;;  %v1717_v32 = vadd.f32 %v1716_v17, %v1715_v52  ;;  %2792 = vmatmul.f32.gmra.mxu2 %v2791_v55  ;;  %v1363_v18 = vadd.f32 %v7603_v43, %v7199_v11 }
 0x2a5   : > { %v7771_v31 = vmul.f32 %v2358_v44, %v7458_v21  ;;  %v2363_v47 = vsub.f32 1.5, %v2362_v14  ;;  %v2371_v23 = vmul.f32 %v7752_v62, %v2370_v38  ;;  %5698 = vrsqrt.f32 %v7759_v16  ;;  %vm7823_vm14 = vmor %vm2365_vm10, %vm2366_vm11 }
 0x2a6   : > { %v10065_v9 = vand.u32 4294901760, %v7652_v22  ;;  %v2030_v48 = vadd.f32 %v2029_v2, %v2028_v15  ;;  %v1845_v55 = vmul.f32 %v7762_v45, %v7762_v45  ;;  %v1718_v52 = vrot.slane %v1717_v32, 1  ;;  %v7790_v15 = vpop.f32.mrf.mxu1 }
 0x2a7   : > { %v7780_v11 = vadd.f32 %v7600_v36, %v1363_v18  ;;  %v2372_v20 = vmul.f32 0.5, %v2371_v23  ;;  %vm2375_vm12 = vweird.f32 %v7703_v27  ;;  %v7784_v21 = vsub.f32 %v2585_v7, %v7748_v19  ;;  %v7793_v18 = vpop.f32.mrf.mxu0  ;;  %v7807_v6 = vpop.f32.mrf.mxu2 }
 0x2a8   : > { %3375 = vmatmul.f32.gmra.mxu1 %v10065_v9  ;;  %v2588_v43 = vsel %vm1523_vm2, %v2511_v40, 0  ;;  %v2031_v14 = vrot.slane %v2030_v48, 1  ;;  %v2033_v25 = vsel %vm1523_vm2, %v1845_v55, 0.0  ;;  %v1719_v53 = vadd.f32 %v1718_v52, %v1717_v32  ;;  %v7799_v32 = vpop.f32.mrf.mxu3  ;;  %3176 = vmatmul.f32.gmra.mxu0 %v7652_v22 }
 0x2a9   : > { %v1720_v44 = vsel %vm1523_vm2, %v7780_v11, 0.0  ;;  %v2373_v17 = vsub.f32 1.5, %v2372_v20  ;;  %v2034_v36 = vrot.slane %v2033_v25, 4  ;;  %v2797_v2 = vand.u32 4294901760, %v7784_v21 }
 0x2aa   : > { %v1721_v38 = vrot.slane %v1720_v44, 4  ;;  %v2364_v7 = vmul.f32 %v7699_v39, %v2363_v47  ;;  %v2032_v23 = vadd.f32 %v2031_v14, %v2030_v48  ;;  %v1782_v40 = vmul.f32 %v6300_v37, %v1719_v53 }
 0x2ab   : > { %v7797_v9 = vand.u32 4294901760, %v2588_v43  ;;  %v7801_v55 = vpop.eup %5698  ;;  %v2374_v52 = vmul.f32 %v7752_v62, %v2373_v17  ;;  %v2035_v20 = vadd.f32 %v2034_v36, %v2033_v25  ;;  %v2798_v33 = vsub.f32 %v7784_v21, %v2797_v2 }
 0x2ac   : > { %v1722_v19 = vadd.f32 %v1721_v38, %v1720_v44  ;;  %vm2376_vm13 = vweird.f32 %v7752_v62  ;;  %v2380_v47 = vmul.f32 %v7801_v55, %v7759_v16  ;;  %v2100_v48 = vmul.f32 %v2032_v23, %v6300_v37 }
 0x2ad   : > { %v7814_v14 = vsub.f32 %v7712_v28, %v1782_v40  ;;  %3017 = vmatmul.f32.gmra.mxu3 %v7797_v9  ;;  %v2512_v25 = vmax.f32 %v7771_v31, 0.0  ;;  %v2036_v44 = vrot.slane %v2035_v20, 2  ;;  %v2799_v36 = vand.u32 4294901760, %v2798_v33  ;;  %vm7841_vm15 = vmor %vm2375_vm12, %vm2376_vm13 }
 0x2ae   : > { %v1723_v17 = vrot.slane %v1722_v19, 2  ;;  %v10068_v28 = vand.u32 4294901760, %v7709_v59  ;;  %v2368_v22 = vsel %vm7823_vm14, %v7699_v39, %v2364_v7  ;;  %v2381_v31 = vmul.f32 %v7801_v55, %v2380_v47 }
 0x2af   : > { %v7833_v38 = vadd.f32 1e-05, %v2100_v48  ;;  %v1846_v5 = vmul.f32 %v7814_v14, %v7814_v14  ;;  %v2037_v23 = vadd.f32 %v2036_v44, %v2035_v20  ;;  %2800 = vmatmul.f32.gmra.mxu2 %v2799_v36  ;;  %v1367_v39 = vadd.f32 %v7670_v34, %v7499_v29  ;;  %v7865_v44 = vpop.f32.mrf.mxu1 }
 0x2b0   : > { %3381 = vmatmul.f32.gmra.mxu1 %v10068_v28  ;;  %v1724_v40 = vadd.f32 %v1723_v17, %v1722_v19  ;;  %v7848_v7 = vsub.f32 %v2588_v43, %v7797_v9  ;;  %v7852_v47 = vadd.f32 %v7361_v58, %v7715_v61  ;;  %v2378_v27 = vsel %vm7841_vm15, %v7752_v62, %v2374_v52  ;;  %v7867_v62 = vpop.f32.mrf.mxu0 }
 0x2b1   : > { %v2382_v48 = vmul.f32 0.5, %v2381_v31  ;;  %5700 = vrsqrt.f32 %v7833_v38  ;;  %v2038_v20 = vrot.slane %v2037_v23, 1  ;;  %v2040_v19 = vsel %vm1523_vm2, %v1846_v5, 0.0  ;;  %3181 = vmatmul.f32.gmra.mxu0 %v7709_v59 }
 0x2b2   : > { %v1725_v53 = vrot.slane %v1724_v40, 1  ;;  %v7860_v29 = vadd.f32 %v7667_v42, %v1367_v39  ;;  %v2481_v34 = vmul.f32 %v2368_v22, %v7520_v46  ;;  %v2041_v43 = vrot.slane %v2040_v19, 4  ;;  %v7873_v42 = vpop.f32.mrf.mxu3 }
 0x2b3   : > { %v9850_v58 = vand.u32 4294901760, %v7848_v7  ;;  %v2591_v61 = vsel %vm1523_vm2, %v2512_v25, 0  ;;  %v2039_v52 = vadd.f32 %v2038_v20, %v2037_v23  ;;  %v7876_v46 = vmul.f32 %v2378_v27, %v7580_v51  ;;  %v7887_v51 = vpop.f32.mrf.mxu2 }
 0x2b4   : > { %v1726_v17 = vadd.f32 %v1725_v53, %v1724_v40  ;;  %v1727_v36 = vsel %vm1523_vm2, %v7860_v29, 0.0  ;;  %v7871_v28 = vand.u32 4294901760, %v2591_v61  ;;  %v2042_v22 = vadd.f32 %v2041_v43, %v2040_v19 }
 0x2b5   : > { %v1728_v31 = vrot.slane %v1727_v36, 4  ;;  %v2806_v25 = vsub.f32 %v7848_v7, %v9850_v58  ;;  %v2383_v5 = vsub.f32 1.5, %v2382_v48  ;;  %v2101_v33 = vmul.f32 %v2039_v52, %v6300_v37 }
 0x2b6   : > { %10071 = vst [vmem:[#allocation23_spill] sm:$0xff] %v7871_v28  ;;  %v1783_v23 = vmul.f32 %v6300_v37, %v1726_v17  ;;  %3021 = vmatmul.f32.gmra.mxu3 %v7871_v28  ;;  %v1371_v40 = vadd.f32 %v7734_v63, %v7631_v60  ;;  %vm2385_vm0 = vweird.f32 %v7759_v16  ;;  %v2043_v27 = vrot.slane %v2042_v22, 2 }
 0x2b7   : > { %v7889_v39 = vpop.eup %5700  ;;  %v1729_v20 = vadd.f32 %v1728_v31, %v1727_v36  ;;  %v2807_v19 = vand.u32 4294901760, %v2806_v25  ;;  %v2513_v59 = vmax.f32 %v2481_v34, 0.0  ;;  %vm2386_vm1 = vweird.f32 %v7801_v55 }
 0x2b8   : > { %3387 = vmatmul.f32.gmra.mxu1 %v2797_v2  ;;  %v2390_v48 = vmul.f32 %v7889_v39, %v7833_v38  ;;  %v7897_v53 = vadd.f32 1e-05, %v2101_v33  ;;  %v2044_v60 = vadd.f32 %v2043_v27, %v2042_v22  ;;  %v7900_v63 = vsub.f32 %v7780_v11, %v1783_v23  ;;  %v7913_v25 = vpop.f32.mrf.mxu0  ;;  %vm7929_vm3 = vmor %vm2385_vm0, %vm2386_vm1 }
 0x2b9   : > { %v1730_v43 = vrot.slane %v1729_v20, 2  ;;  %2808 = vmatmul.f32.gmra.mxu2 %v2807_v19  ;;  %v7903_v52 = vadd.f32 %v7730_v10, %v1371_v40  ;;  %v2514_v17 = vmax.f32 %v7876_v46, 0.0  ;;  %v2384_v2 = vmul.f32 %v7801_v55, %v2383_v5  ;;  %3186 = vmatmul.f32.gmra.mxu0 %v7784_v21 }
 0x2ba   : > { %v2391_v34 = vmul.f32 %v7889_v39, %v2390_v48  ;;  %5702 = vrsqrt.f32 %v7897_v53  ;;  %v2045_v36 = vrot.slane %v2044_v60, 1  ;;  %v1847_v22 = vmul.f32 %v7900_v63, %v7900_v63  ;;  %v7922_v48 = vpop.f32.mrf.mxu1 }
 0x2bb   : > { %v1731_v31 = vadd.f32 %v1730_v43, %v1729_v20  ;;  %v1734_v11 = vsel %vm1523_vm2, %v7903_v52, 0.0  ;;  %v7916_v46 = vsub.f32 %v2591_v61, %v7871_v28  ;;  %v2594_v5 = vsel %vm1523_vm2, %v2513_v59, 0 }
 0x2bc   : > { %v2392_v10 = vmul.f32 0.5, %v2391_v34  ;;  %v1735_v33 = vrot.slane %v1734_v11, 4  ;;  %v2046_v23 = vadd.f32 %v2045_v36, %v2044_v60  ;;  %v2047_v40 = vsel %vm1523_vm2, %v1847_v22, 0.0  ;;  %v7934_v34 = vpop.f32.mrf.mxu3  ;;  %v7942_v22 = vpop.f32.mrf.mxu2 }
 0x2bd   : > { %v1732_v27 = vrot.slane %v1731_v31, 1  ;;  %v7920_v19 = vand.u32 4294901760, %v2594_v5  ;;  %v2048_v59 = vrot.slane %v2047_v40, 4  ;;  %v2813_v43 = vand.u32 4294901760, %v7916_v46  ;;  %10075 = vst [vmem:[#allocation52_spill] sm:$0xff] %v7934_v34 }
 0x2be   : > { %v2393_v61 = vsub.f32 1.5, %v2392_v10  ;;  %v1736_v60 = vadd.f32 %v1735_v33, %v1734_v11  ;;  %v2388_v36 = vsel %vm7929_vm3, %v7801_v55, %v2384_v2  ;;  %vm2396_vm4 = vweird.f32 %v7889_v39 }
 0x2bf   : > { %10072 = vst [vmem:[#allocation26_spill] sm:$0xff] %v7920_v19  ;;  %v2102_v21 = vmul.f32 %v2046_v23, %v6300_v37  ;;  %v1733_v16 = vadd.f32 %v1732_v27, %v1731_v31  ;;  %3025 = vmatmul.f32.gmra.mxu3 %v7920_v19  ;;  %v2049_v11 = vadd.f32 %v2048_v59, %v2047_v40  ;;  %v10076_v55 = vand.u32 4294901760, %v7848_v7 }
 0x2c0   : > { %v7944_v10 = vpop.eup %5702  ;;  %v1737_v33 = vrot.slane %v1736_v60, 2  ;;  %v2814_v58 = vsub.f32 %v7916_v46, %v2813_v43  ;;  %v1375_v28 = vadd.f32 %v7793_v18, %v7852_v47  ;;  %v2394_v2 = vmul.f32 %v7889_v39, %v2393_v61  ;;  %v7963_v47 = vpop.f32.mrf.mxu0 }
 0x2c1   : > { %3393 = vmatmul.f32.gmra.mxu1 %v10076_v55  ;;  %v2400_v31 = vmul.f32 %v7944_v10, %v7897_v53  ;;  %v7954_v23 = vadd.f32 1e-05, %v2102_v21  ;;  %v1784_v27 = vmul.f32 %v6300_v37, %v1733_v16  ;;  %v2050_v20 = vrot.slane %v2049_v11, 2  ;;  %3191 = vmatmul.f32.gmra.mxu0 %v7848_v7 }
 0x2c2   : > { %v1738_v40 = vadd.f32 %v1737_v33, %v1736_v60  ;;  %v2815_v59 = vand.u32 4294901760, %v2814_v58  ;;  %v7958_v34 = vmul.f32 %v2388_v36, %v7622_v50  ;;  %vm2395_vm5 = vweird.f32 %v7833_v38 }
 0x2c3   : > { %v2401_v18 = vmul.f32 %v7944_v10, %v2400_v31  ;;  %5704 = vrsqrt.f32 %v7954_v23  ;;  %vm7967_vm6 = vmor %vm2395_vm5, %vm2396_vm4  ;;  %v2051_v21 = vadd.f32 %v2050_v20, %v2049_v11  ;;  %v7972_v58 = vsub.f32 %v7860_v29, %v1784_v27 }
 0x2c4   : > { %v1739_v50 = vrot.slane %v1738_v40, 1  ;;  %2816 = vmatmul.f32.gmra.mxu2 %v2815_v59  ;;  %v7975_v38 = vadd.f32 %v7790_v15, %v1375_v28  ;;  %v2398_v60 = vsel %vm7967_vm6, %v7889_v39, %v2394_v2  ;;  %v7981_v16 = vsub.f32 %v2594_v5, %v7920_v19  ;;  %v7992_v5 = vpop.f32.mrf.mxu1  ;;  %v7994_v27 = vpop.f32.mrf.mxu3 }
 0x2c5   : > { %v2402_v36 = vmul.f32 0.5, %v2401_v18  ;;  %v2597_v33 = vsel %vm1523_vm2, %v2514_v17, 0  ;;  %v2052_v11 = vrot.slane %v2051_v21, 1  ;;  %v1848_v29 = vmul.f32 %v7972_v58, %v7972_v58  ;;  %10080 = vst [vmem:[#allocation27_spill] sm:$0xff] %v7994_v27 }
 0x2c6   : > { %v1740_v55 = vadd.f32 %v1739_v50, %v1738_v40  ;;  %v1741_v15 = vsel %vm1523_vm2, %v7975_v38, 0.0  ;;  %v2821_v39 = vand.u32 4294901760, %v7981_v16  ;;  %v7990_v2 = vand.u32 4294901760, %v2597_v33  ;;  %v7999_v40 = vpop.f32.mrf.mxu2 }
 0x2c7   : > { %v2403_v28 = vsub.f32 1.5, %v2402_v36  ;;  %v1742_v31 = vrot.slane %v1741_v15, 4  ;;  %vm2406_vm7 = vweird.f32 %v7944_v10  ;;  %v2053_v7 = vadd.f32 %v2052_v11, %v2051_v21 }
 0x2c8   : > { %10079 = vst [vmem:[#allocation53_spill] sm:$0xff] %v7990_v2  ;;  %v2054_v17 = vsel %vm1523_vm2, %v1848_v29, 0.0  ;;  %v1785_v20 = vmul.f32 %v6300_v37, %v1740_v55  ;;  %v2822_v36 = vsub.f32 %v7981_v16, %v2821_v39  ;;  %3029 = vmatmul.f32.gmra.mxu3 %v7990_v2  ;;  %v2484_v19 = vmul.f32 %v2398_v60, %v7706_v12  ;;  %v8011_v27 = vpop.f32.mrf.mxu0 }
 0x2c9   : > { %3399 = vmatmul.f32.gmra.mxu1 %v2813_v43  ;;  %v5705_v59 = vpop.eup %5704  ;;  %v2404_v18 = vmul.f32 %v7944_v10, %v2403_v28  ;;  %v2055_v61 = vrot.slane %v2054_v17, 4  ;;  %v1743_v50 = vadd.f32 %v1742_v31, %v1741_v15  ;;  %v2103_v11 = vmul.f32 %v2053_v7, %v6300_v37  ;;  %3196 = vmatmul.f32.gmra.mxu0 %v7916_v46 }
 0x2ca   : > { %v2410_v21 = vmul.f32 %v5705_v59, %v7954_v23  ;;  %v8008_v29 = vsub.f32 %v7903_v52, %v1785_v20  ;;  %vm2405_vm8 = vweird.f32 %v7897_v53  ;;  %v2823_v28 = vand.u32 4294901760, %v2822_v36 }
 0x2cb   : > { %v2056_v43 = vadd.f32 %v2055_v61, %v2054_v17  ;;  %v1744_v55 = vrot.slane %v1743_v50, 2  ;;  %v2515_v15 = vmax.f32 %v7958_v34, 0.0  ;;  %vm8016_vm9 = vmor %vm2405_vm8, %vm2406_vm7  ;;  %v8020_v31 = vadd.f32 1e-05, %v2103_v11 }
 0x2cc   : > { %v2411_v60 = vmul.f32 %v5705_v59, %v2410_v21  ;;  %v1849_v52 = vmul.f32 %v8008_v29, %v8008_v29  ;;  %v2408_v53 = vsel %vm8016_vm9, %v7944_v10, %v2404_v18  ;;  %2824 = vmatmul.f32.gmra.mxu2 %v2823_v28  ;;  %v8028_v34 = vsub.f32 %v2597_v33, %v7990_v2 }
 0x2cd   : > { %v2057_v7 = vrot.slane %v2056_v43, 2  ;;  %v1745_v17 = vadd.f32 %v1744_v55, %v1743_v50  ;;  %v2516_v20 = vmax.f32 %v2484_v19, 0.0  ;;  %vm2416_vm10 = vweird.f32 %v5705_v59 }
 0x2ce   : > { %v2412_v61 = vmul.f32 0.5, %v2411_v60  ;;  %5706 = vrsqrt.f32 %v8020_v31  ;;  %v2061_v21 = vsel %vm1523_vm2, %v1849_v52, 0.0  ;;  %v2829_v12 = vand.u32 4294901760, %v8028_v34  ;;  %v8039_v60 = vpop.f32.mrf.mxu1 }
 0x2cf   : > { %v2058_v36 = vadd.f32 %v2057_v7, %v2056_v43  ;;  %v1746_v11 = vrot.slane %v1745_v17, 1  ;;  %v2485_v10 = vmul.f32 %v2408_v53, %v7762_v45  ;;  %v2062_v50 = vrot.slane %v2061_v21, 4  ;;  %v8041_v43 = vpop.f32.mrf.mxu3  ;;  %v8045_v53 = vpop.f32.mrf.mxu2 }
 0x2d0   : > { %v2413_v18 = vsub.f32 1.5, %v2412_v61  ;;  %v2600_v33 = vsel %vm1523_vm2, %v2515_v15, 0  ;;  %v2830_v19 = vsub.f32 %v8028_v34, %v2829_v12  ;;  %vm2415_vm11 = vweird.f32 %v7954_v23 }
 0x2d1   : > { %3405 = vmatmul.f32.gmra.mxu1 %v2821_v39  ;;  %v2059_v55 = vrot.slane %v2058_v36, 1  ;;  %v1747_v46 = vadd.f32 %v1746_v11, %v1745_v17  ;;  %v8037_v28 = vand.u32 4294901760, %v2600_v33  ;;  %v2063_v7 = vadd.f32 %v2062_v50, %v2061_v21  ;;  %vm2417_vm12 = vmor %vm2415_vm11, %vm2416_vm10  ;;  %3201 = vmatmul.f32.gmra.mxu0 %v7981_v16 }
 0x2d2   : > { %v2414_v52 = vmul.f32 %v5705_v59, %v2413_v18  ;;  %v2603_v45 = vsel %vm1523_vm2, %v2516_v20, 0  ;;  %v2831_v17 = vand.u32 4294901760, %v2830_v19  ;;  %v2517_v18 = vmax.f32 %v2485_v10, 0.0 }
 0x2d3   : > { %10083 = vst [vmem:[#allocation25_spill] sm:$0xff] %v8037_v28  ;;  %v2060_v39 = vadd.f32 %v2059_v55, %v2058_v36  ;;  %v1786_v15 = vmul.f32 %v6300_v37, %v1747_v46  ;;  %3033 = vmatmul.f32.gmra.mxu3 %v8037_v28  ;;  %v8051_v61 = vsub.f32 %v2600_v33, %v8037_v28  ;;  %v2064_v23 = vrot.slane %v2063_v7, 2  ;;  %v3112_v55 = vpop.f32.mrf.mxu0 }
 0x2d4   : > { %v5707_v11 = vpop.eup %5706  ;;  %v2418_v2 = vsel %vm2417_vm12, %v5705_v59, %v2414_v52  ;;  %v8053_v21 = vand.u32 4294901760, %v2603_v45  ;;  %2832 = vmatmul.f32.gmra.mxu2 %v2831_v17  ;;  %v2939_v33 = vadd.f32 %v7429_v13, %v7489_v30  ;;  %v2606_v30 = vsel %vm1523_vm2, %v2517_v18, 0 }
 0x2d5   : > { %v2486_v20 = vmul.f32 %v2418_v2, %v7814_v14  ;;  %v2420_v50 = vmul.f32 %v5707_v11, %v8020_v31  ;;  %v2104_v36 = vmul.f32 %v2060_v39, %v6300_v37  ;;  %v2065_v46 = vadd.f32 %v2064_v23, %v2063_v7 }
 0x2d6   : > { %10084 = vst [vmem:[#allocation56_spill] sm:$0xff] %v8053_v21  ;;  %v8062_v10 = vsub.f32 %v7975_v38, %v1786_v15  ;;  %v2837_v59 = vand.u32 4294901760, %v8051_v61  ;;  %v2943_v14 = vadd.f32 %v7485_v56, %v7559_v4  ;;  %v8070_v52 = vsub.f32 %v2603_v45, %v8053_v21  ;;  %v3298_v18 = vpop.f32.mrf.mxu1 }
 0x2d7   : > { %v2421_v2 = vmul.f32 %v5707_v11, %v2420_v50  ;;  %v8067_v19 = vadd.f32 1e-05, %v2104_v36  ;;  %v2066_v39 = vrot.slane %v2065_v46, 1  ;;  %v2518_v38 = vmax.f32 %v2486_v20, 0.0  ;;  %v8078_v4 = vpop.f32.mrf.mxu3 }
 0x2d8   : > { %v1850_v16 = vmul.f32 %v8062_v10, %v8062_v10  ;;  %v2838_v13 = vsub.f32 %v8051_v61, %v2837_v59  ;;  %v2845_v56 = vand.u32 4294901760, %v8070_v52  ;;  %v8081_v23 = vand.u32 4294901760, %v2606_v30 }
 0x2d9   : > { %3411 = vmatmul.f32.gmra.mxu1 %v2829_v12  ;;  %v2422_v7 = vmul.f32 0.5, %v2421_v2  ;;  %5708 = vrsqrt.f32 %v8067_v19  ;;  %v2067_v15 = vadd.f32 %v2066_v39, %v2065_v46  ;;  %v2947_v50 = vadd.f32 %v7552_v8, %v7618_v41  ;;  %v8093_v39 = vpop.f32.mrf.mxu2  ;;  %3206 = vmatmul.f32.gmra.mxu0 %v8028_v34 }
 0x2da   : > { %v2068_v45 = vsel %vm1523_vm2, %v1850_v16, 0.0  ;;  %v2839_v17 = vand.u32 4294901760, %v2838_v13  ;;  %10085 = vst [vmem:[#allocation7_spill] sm:$0xff] %v8081_v23  ;;  %vm2426_vm13 = vweird.f32 %v5707_v11  ;;  %vm2425_vm14 = vweird.f32 %v8020_v31 }
 0x2db   : > { %v2423_v36 = vsub.f32 1.5, %v2422_v7  ;;  %v2069_v12 = vrot.slane %v2068_v45, 4  ;;  %3037 = vmatmul.f32.gmra.mxu3 %v8053_v21  ;;  %v2951_v20 = vadd.f32 %v7614_v1, %v7697_v49  ;;  %v2105_v46 = vmul.f32 %v2067_v15, %v6300_v37  ;;  %vm2427_vm15 = vmor %vm2425_vm14, %vm2426_vm13  ;;  %v10109_v21 = vld [vmem:[#allocation42_spill] sm:$0xff] }
 0x2dc   : > { %v2846_v2 = vsub.f32 %v8070_v52, %v2845_v56  ;;  %2840 = vmatmul.f32.gmra.mxu2 %v2839_v17  ;;  %v8096_v16 = vsub.f32 %v2606_v30, %v8081_v23  ;;  %v2609_v13 = vsel %vm1523_vm2, %v2518_v38, 0  ;;  %v2955_v1 = vadd.f32 %v7677_v35, %v7750_v3 }
 0x2dd   : > { %v2424_v41 = vmul.f32 %v5707_v11, %v2423_v36  ;;  %v2070_v8 = vadd.f32 %v2069_v12, %v2068_v45  ;;  %v8103_v49 = vadd.f32 1e-05, %v2105_v46  ;;  %v3093_v31 = vadd.f32 %v7867_v62, %v2939_v33  ;;  %v3117_v36 = vpop.f32.mrf.mxu0 }
 0x2de   : > { %v3098_v7 = vadd.f32 %v7913_v25, %v2943_v14  ;;  %v3103_v30 = vadd.f32 %v7963_v47, %v2947_v50  ;;  %v3108_v38 = vadd.f32 %v8011_v27, %v2951_v20  ;;  %v8112_v35 = vand.u32 4294901760, %v2609_v13 }
 0x2df   : > { %v5709_v15 = vpop.eup %5708  ;;  %v2428_v45 = vsel %vm2427_vm15, %v5707_v11, %v2424_v41  ;;  %v2071_v17 = vrot.slane %v2070_v8, 2  ;;  %5710 = vrsqrt.f32 %v8103_v49  ;;  %v2847_v62 = vand.u32 4294901760, %v2846_v2  ;;  %v3304_v41 = vpop.f32.mrf.mxu1 }
 0x2e0   : > { %v2487_v34 = vmul.f32 %v2428_v45, %v7900_v63  ;;  %v2430_v12 = vmul.f32 %v5709_v15, %v8067_v19  ;;  %10086 = vst [vmem:[#allocation55_spill] sm:$0xff] %v8112_v35  ;;  %v2853_v25 = vand.u32 4294901760, %v8096_v16  ;;  %v3113_v11 = vadd.f32 %v3112_v55, %v2955_v1  ;;  %v8122_v50 = vpop.f32.mrf.mxu3 }
 0x2e1   : > { %3417 = vmatmul.f32.gmra.mxu1 %v2837_v59  ;;  %v2072_v3 = vadd.f32 %v2071_v17, %v2070_v8  ;;  %v8116_v47 = vadd.f32 %v7865_v44, %v3093_v31  ;;  %v8119_v27 = vadd.f32 %v7922_v48, %v3098_v7  ;;  %v8125_v59 = vadd.f32 %v7992_v5, %v3103_v30 }
 0x2e2   : > { %v2519_v33 = vmax.f32 %v2487_v34, 0.0  ;;  %v2431_v14 = vmul.f32 %v5709_v15, %v2430_v12  ;;  %v2959_v55 = vadd.f32 %v7740_v26, %v7807_v6  ;;  %v8130_v46 = vsub.f32 %v2609_v13, %v8112_v35  ;;  %v8136_v8 = vpop.f32.mrf.mxu2  ;;  %3211 = vmatmul.f32.gmra.mxu0 %v8051_v61 }
 0x2e3   : > { %v2073_v63 = vrot.slane %v2072_v3, 1  ;;  %3041 = vmatmul.f32.gmra.mxu3 %v8081_v23  ;;  %v8133_v44 = vadd.f32 %v8039_v60, %v3108_v38  ;;  %v2854_v2 = vsub.f32 %v8096_v16, %v2853_v25  ;;  %v8139_v5 = vadd.f32 %v3298_v18, %v3113_v11 }
 0x2e4   : > { %v2432_v20 = vmul.f32 0.5, %v2431_v14  ;;  %2848 = vmatmul.f32.gmra.mxu2 %v2847_v62  ;;  %vm2436_vm0 = vweird.f32 %v5709_v15  ;;  %v2612_v6 = vsel %vm1523_vm2, %v2519_v33, 0  ;;  %v3118_v26 = vadd.f32 %v3117_v36, %v2959_v55 }
 0x2e5   : > { %v2074_v48 = vadd.f32 %v2073_v63, %v2072_v3  ;;  %v5711_v1 = vpop.eup %5710  ;;  %vm2435_vm1 = vweird.f32 %v8067_v19  ;;  %v2861_v45 = vand.u32 4294901760, %v8130_v46  ;;  %v2855_v17 = vand.u32 4294901760, %v2854_v2  ;;  %v3122_v38 = vpop.f32.mrf.mxu0 }
 0x2e6   : > { %v2433_v31 = vsub.f32 1.5, %v2432_v20  ;;  %v2440_v60 = vmul.f32 %v5711_v1, %v8103_v49  ;;  %vm2437_vm3 = vmor %vm2435_vm1, %vm2436_vm0  ;;  %v8148_v30 = vand.u32 4294901760, %v2612_v6  ;;  %v8150_v34 = vadd.f32 %v3304_v41, %v3118_v26 }
 0x2e7   : > { %v2106_v13 = vmul.f32 %v2074_v48, %v6300_v37  ;;  %v2963_v19 = vadd.f32 %v7799_v32, %v7887_v51  ;;  %vm2446_vm4 = vweird.f32 %v5711_v1  ;;  %vm2445_vm5 = vweird.f32 %v8103_v49  ;;  %v3310_v63 = vpop.f32.mrf.mxu1 }
 0x2e8   : > { %v2434_v7 = vmul.f32 %v5709_v15, %v2433_v31  ;;  %v2441_v61 = vmul.f32 %v5711_v1, %v2440_v60  ;;  %10087 = vst [vmem:[#allocation29_spill] sm:$0xff] %v8148_v30  ;;  %v8158_v33 = vsub.f32 %v2612_v6, %v8148_v30  ;;  %vm2447_vm6 = vmor %vm2445_vm5, %vm2446_vm4  ;;  %vm4807_vm0 = vcmask 1041409  }
 0x2e9   : > { %3423 = vmatmul.f32.gmra.mxu1 %v2845_v56  ;;  %v2138_v18 = vadd.f32 1e-05, %v2106_v13  ;;  %10088 = vst [vmem:[#allocation28_spill] sm:$0xff] %v8150_v34  ;;  %v2862_v56 = vsub.f32 %v8130_v46, %v2861_v45  ;;  %v3123_v51 = vadd.f32 %v3122_v38, %v2963_v19  ;;  %vm4810_vm5 = vcmask 1042434  }
 0x2ea   : > { %v2438_v36 = vsel %vm2437_vm3, %v5709_v15, %v2434_v7  ;;  %v2442_v3 = vmul.f32 0.5, %v2441_v61  ;;  %v8160_v15 = vpop.f32.mrf.mxu3  ;;  %3216 = vmatmul.f32.gmra.mxu0 %v8070_v52  ;;  %v2869_v2 = vand.u32 4294901760, %v8158_v33 }
 0x2eb   : > { %v2488_v12 = vmul.f32 %v2438_v36, %v7972_v58  ;;  %5712 = vrsqrt.f32 %v2138_v18  ;;  %3045 = vmatmul.f32.gmra.mxu3 %v8112_v35  ;;  %v8165_v32 = vpop.f32.mrf.mxu2  ;;  %v2863_v48 = vand.u32 4294901760, %v2862_v56  ;;  %v8172_v6 = vadd.f32 %v3310_v63, %v3123_v51  ;;  %v10107_v35 = vld [vmem:[#allocation19_spill] sm:$0xff] }
 0x2ec   : > { %v2443_v11 = vsub.f32 1.5, %v2442_v3  ;;  %2856 = vmatmul.f32.gmra.mxu2 %v2855_v17  ;;  %vm2455_vm8 = vweird.f32 %v2138_v18 }
 0x2ed   : > { %v2520_v62 = vmax.f32 %v2488_v12, 0.0  ;;  %v3127_v49 = vpop.f32.mrf.mxu0  ;;  %10090 = vst [vmem:[#allocation30_spill] sm:$0xff] %v8172_v6  ;;  %v10111_v6 = vld [vmem:[#allocation47_spill] sm:$0xff] }
 0x2ee   : > { %v2444_v58 = vmul.f32 %v5711_v1, %v2443_v11 }
 0x2ef   : > { %v2615_v14 = vsel %vm1523_vm2, %v2520_v62, 0 }
 0x2f0   : > { %v2448_v55 = vsel %vm2447_vm6, %v5711_v1, %v2444_v58  ;;  %v8168_v41 = vand.u32 4294901760, %v2615_v14  ;;  %v2870_v1 = vsub.f32 %v8158_v33, %v2869_v2 }
 0x2f1   : > { %3429 = vmatmul.f32.gmra.mxu1 %v2853_v25  ;;  %v5713_v20 = vpop.eup %5712  ;;  %v2489_v52 = vmul.f32 %v2448_v55, %v8008_v29  ;;  %v2967_v25 = vadd.f32 %v7873_v42, %v7942_v22  ;;  %v3316_v42 = vpop.f32.mrf.mxu1 }
 0x2f2   : > { %10089 = vst [vmem:[#allocation31_spill] sm:$0xff] %v8168_v41  ;;  %v2450_v31 = vmul.f32 %v5713_v20, %v2138_v18  ;;  %v2876_v13 = vsub.f32 %v2615_v14, %v8168_v41  ;;  %3221 = vmatmul.f32.gmra.mxu0 %v8096_v16  ;;  %v8180_v61 = vpop.f32.mrf.mxu3  ;;  %vm2456_vm7 = vweird.f32 %v5713_v20  ;;  %v2871_v36 = vand.u32 4294901760, %v2870_v1  ;;  %v10094_v1 = vld [vmem:[#allocation39_spill] sm:$0xff] }
 0x2f3   : > { %3049 = vmatmul.f32.gmra.mxu3 %v8148_v30  ;;  %v2521_v26 = vmax.f32 %v2489_v52, 0.0  ;;  %v3128_v17 = vadd.f32 %v3127_v49, %v2967_v25  ;;  %vm2457_vm9 = vmor %vm2455_vm8, %vm2456_vm7  ;;  %vm4813_vm8 = vcmask 1043459  }
 0x2f4   : > { %v2451_v60 = vmul.f32 %v5713_v20, %v2450_v31  ;;  %2864 = vmatmul.f32.gmra.mxu2 %v2863_v48  ;;  %v2877_v12 = vand.u32 4294901760, %v2876_v13 }
 0x2f5   : > { %v2618_v29 = vsel %vm1523_vm2, %v2521_v26, 0  ;;  %v8186_v56 = vadd.f32 %v3316_v42, %v3128_v17  ;;  %v8212_v25 = vpop.f32.mrf.mxu0  ;;  %v10095_v17 = vld [vmem:[#allocation44_spill] sm:$0xff] }
 0x2f6   : > { %v2452_v7 = vmul.f32 0.5, %v2451_v60  ;;  %v8182_v3 = vand.u32 4294901760, %v2618_v29  ;;  %v8184_v22 = vpop.f32.mrf.mxu2  ;;  %v2878_v11 = vsub.f32 %v2876_v13, %v2877_v12 }
 0x2f7   : > { %10092 = vst [vmem:[#allocation9_spill] sm:$0xff] %v8186_v56 }
 0x2f8   : > { %v2453_v38 = vsub.f32 1.5, %v2452_v7  ;;  %10091 = vst [vmem:[#allocation3_spill] sm:$0xff] %v8182_v3  ;;  %v2879_v63 = vand.u32 4294901760, %v2878_v11 }
 0x2f9   : > { %3435 = vmatmul.f32.gmra.mxu1 %v2861_v45  ;;  %v2884_v45 = vsub.f32 %v2618_v29, %v8182_v3 }
 0x2fa   : > { %v2454_v19 = vmul.f32 %v5713_v20, %v2453_v38  ;;  %3226 = vmatmul.f32.gmra.mxu0 %v8130_v46 }
 0x2fb   : > { %3053 = vmatmul.f32.gmra.mxu3 %v8168_v41  ;;  %v2885_v18 = vand.u32 4294901760, %v2884_v45 }
 0x2fc   : > { %v2458_v16 = vsel %vm2457_vm9, %v5713_v20, %v2454_v19  ;;  %2872 = vmatmul.f32.gmra.mxu2 %v2871_v36  ;;  %v10097_v19 = vld [vmem:[#allocation4_spill] sm:$0xff] }
 0x2fd   : > { %v2490_v62 = vmul.f32 %v2458_v16, %v8062_v10  ;;  %v8192_v14 = vpop.f32.mrf.mxu3  ;;  %v2886_v10 = vsub.f32 %v2884_v45, %v2885_v18  ;;  %v8220_v29 = vpop.f32.mrf.mxu0 }
 0x2fe   : > { %v8195_v55 = vpop.f32.mrf.mxu2 }
 0x2ff   : > { %v2522_v58 = vmax.f32 %v2490_v62, 0.0  ;;  %v2887_v46 = vand.u32 4294901760, %v2886_v10  ;;  %v10099_v10 = vld [vmem:[#allocation38_spill] sm:$0xff] }
 0x301   : > { %3441 = vmatmul.f32.gmra.mxu1 %v2869_v2  ;;  %v2621_v51 = vsel %vm1523_vm2, %v2522_v58, 0  ;;  %vm3769_vm2 = vcmask 523264  }
 0x302   : > { %v8197_v48 = vand.u32 4294901760, %v2621_v51  ;;  %3231 = vmatmul.f32.gmra.mxu0 %v8158_v33 }
 0x303   : > { %3057 = vmatmul.f32.gmra.mxu3 %v8182_v3  ;;  %v10105_v3 = vld [vmem:[#allocation20_spill] sm:$0xff] }
 0x304   : > { %10093 = vst [vmem:[#allocation33_spill] sm:$0xff] %v8197_v48  ;;  %2880 = vmatmul.f32.gmra.mxu2 %v2879_v63  ;;  %v2892_v20 = vsub.f32 %v2621_v51, %v8197_v48 }
 0x305   : > { %v8229_v42 = vpop.f32.mrf.mxu0 }
 0x306   : > { %v2893_v52 = vand.u32 4294901760, %v2892_v20  ;;  %v8202_v2 = vpop.f32.mrf.mxu3 }
 0x308   : > { %v2894_v49 = vsub.f32 %v2892_v20, %v2893_v52 }
 0x309   : > { %3447 = vmatmul.f32.gmra.mxu1 %v2877_v12  ;;  %v8205_v31 = vpop.f32.mrf.mxu2  ;;  %v10096_v12 = vld [vmem:[#allocation35_spill] sm:$0xff] }
 0x30a   : > { %3236 = vmatmul.f32.gmra.mxu0 %v2876_v13  ;;  %v2895_v26 = vand.u32 4294901760, %v2894_v49 }
 0x30b   : > { %3061 = vmatmul.f32.gmra.mxu3 %v8197_v48 }
 0x30c   : > { %2888 = vmatmul.f32.gmra.mxu2 %v2887_v46 }
 0x30d   : > { %v8236_v62 = vpop.f32.mrf.mxu0 }
 0x311   : > { %3453 = vmatmul.f32.gmra.mxu1 %v2885_v18  ;;  %v8208_v60 = vpop.f32.mrf.mxu3 }
 0x312   : > { %3241 = vmatmul.f32.gmra.mxu0 %v2884_v45  ;;  %v8238_v45 = vpop.f32.mrf.mxu1 }
 0x313   : > { %3641 = vmatmul.f32.vlgmr.msra.gmra.mxu3 %v6544_v57  ;;  %v8210_v33 = vpop.f32.mrf.mxu2 }
 0x314   : > { %2896 = vmatmul.f32.gmra.mxu2 %v2895_v26  ;;  %v10101_v26 = vld [vmem:[#allocation49_spill] sm:$0xff] }
 0x315   : > { %v8244_v18 = vpop.f32.mrf.mxu0 }
 0x319   : > { %3459 = vmatmul.f32.gmra.mxu1 %v2893_v52 }
 0x31a   : > { %3246 = vmatmul.f32.gmra.mxu0 %v2892_v20  ;;  %v8247_v20 = vpop.f32.mrf.mxu1 }
 0x31b   : > { %3645 = vmatmul.f32.gmra.mxu3 %v10094_v1  ;;  %v8216_v7 = vpop.f32.mrf.mxu3 }
 0x31c   : > { %3492 = vmatmul.f32.vlgmr.msra.gmra.mxu2 %v6544_v57 }
 0x31d   : > { %v8252_v49 = vpop.f32.mrf.mxu0 }
 0x31e   : > { %v8218_v13 = vpop.f32.mrf.mxu2 }
 0x323   : > { %3649 = vmatmul.f32.gmra.mxu3 %v10095_v17 }
 0x324   : > { %3496 = vmatmul.f32.gmra.mxu2 %v10094_v1 }
 0x326   : > { %v8224_v38 = vpop.f32.mrf.mxu3 }
 0x327   : > { %v8226_v36 = vpop.f32.mrf.mxu2 }
 0x32b   : > { %3653 = vmatmul.f32.gmra.mxu3 %v10096_v12 }
 0x32c   : > { %3500 = vmatmul.f32.gmra.mxu2 %v10095_v17  ;;  %v8256_v17 = vpop.f32.mrf.mxu1 }
 0x330   : > { %v3018_v57 = vpop.f32.mrf.mxu3 }
 0x332   : > { %v8233_v16 = vpop.f32.mrf.mxu2 }
 0x333   : > { %3657 = vmatmul.f32.gmra.mxu3 %v10097_v19 }
 0x334   : > { %3504 = vmatmul.f32.gmra.mxu2 %v10096_v12 }
 0x339   : > { %v3022_v11 = vpop.f32.mrf.mxu3 }
 0x33b   : > { %3661 = vmatmul.f32.gmra.mxu3 %v6863_v24 }
 0x33c   : > { %v2809_v58 = vpop.f32.mrf.mxu2  ;;  %3508 = vmatmul.f32.gmra.mxu2 %v10097_v19  ;;  %v10103_v19 = vld [vmem:[#allocation6_spill] sm:$0xff] }
 0x33d   : > { %v8242_v63 = vadd.f32 %v3018_v57, %v2809_v58  ;;  %v8261_v58 = vpop.f32.mrf.mxu0 }
 0x33f   : > { %10098 = vst [vmem:[#allocation32_spill] sm:$0xff] %v8242_v63 }
 0x342   : > { %v3026_v51 = vpop.f32.mrf.mxu3 }
 0x343   : > { %3665 = vmatmul.f32.gmra.mxu3 %v10099_v10 }
 0x344   : > { %3512 = vmatmul.f32.gmra.mxu2 %v6863_v24 }
 0x345   : > { %v8270_v41 = vpop.f32.mrf.mxu0 }
 0x347   : > { %v2817_v46 = vpop.f32.mrf.mxu2 }
 0x348   : > { %v8250_v52 = vadd.f32 %v3022_v11, %v2817_v46  ;;  %v8264_v46 = vpop.f32.mrf.mxu1 }
 0x34a   : > { %10100 = vst [vmem:[#allocation5_spill] sm:$0xff] %v8250_v52 }
 0x34b   : > { %3669 = vmatmul.f32.gmra.mxu3 %v10101_v26  ;;  %v3030_v1 = vpop.f32.mrf.mxu3 }
 0x34c   : > { %3516 = vmatmul.f32.gmra.mxu2 %v10099_v10 }
 0x34f   : > { %v2825_v12 = vpop.f32.mrf.mxu2 }
 0x350   : > { %v8258_v57 = vadd.f32 %v3026_v51, %v2825_v12  ;;  %v8274_v30 = vpop.f32.mrf.mxu1 }
 0x352   : > { %10102 = vst [vmem:[#allocation36_spill] sm:$0xff] %v8258_v57  ;;  %v10118_v57 = vld [vmem:[#allocation22_spill] sm:$0xff] }
 0x353   : > { %3673 = vmatmul.f32.gmra.mxu3 %v10103_v19 }
 0x354   : > { %3520 = vmatmul.f32.gmra.mxu2 %v10101_v26 }
 0x356   : > { %v3034_v24 = vpop.f32.mrf.mxu3 }
 0x357   : > { %v2833_v11 = vpop.f32.mrf.mxu2 }
 0x358   : > { %v8266_v48 = vadd.f32 %v3030_v1, %v2833_v11  ;;  %v8278_v1 = vpop.f32.mrf.mxu0 }
 0x35a   : > { %10104 = vst [vmem:[#allocation34_spill] sm:$0xff] %v8266_v48 }
 0x35b   : > { %3677 = vmatmul.f32.gmra.mxu3 %v10105_v3 }
 0x35c   : > { %3524 = vmatmul.f32.gmra.mxu2 %v10103_v19  ;;  %v8283_v19 = vpop.f32.mrf.mxu1 }
 0x35e   : > { %v3038_v10 = vpop.f32.mrf.mxu3 }
 0x35f   : > { %v2841_v51 = vpop.f32.mrf.mxu2 }
 0x360   : > { %v8272_v12 = vadd.f32 %v3034_v24, %v2841_v51  ;;  %v8288_v28 = vpop.f32.mrf.mxu0 }
 0x362   : > { %10106 = vst [vmem:[#allocation11_spill] sm:$0xff] %v8272_v12 }
 0x363   : > { %3681 = vmatmul.f32.gmra.mxu3 %v10107_v35 }
 0x364   : > { %3528 = vmatmul.f32.gmra.mxu2 %v10105_v3  ;;  %v8292_v12 = vpop.f32.mrf.mxu1 }
 0x365   : > { %10112 = vst [vmem:[#allocation12_spill] sm:$0xff] %v8292_v12 }
 0x366   : > { %v3042_v26 = vpop.f32.mrf.mxu3 }
 0x367   : > { %v2849_v23 = vpop.f32.mrf.mxu2 }
 0x368   : > { %v8280_v11 = vadd.f32 %v3038_v10, %v2849_v23  ;;  %v8297_v48 = vpop.f32.mrf.mxu0 }
 0x369   : > { %10115 = vst [vmem:[#allocation40_spill] sm:$0xff] %v8297_v48 }
 0x36a   : > { %10108 = vst [vmem:[#allocation8_spill] sm:$0xff] %v8280_v11  ;;  %v10114_v11 = vld [vmem:[#allocation18_spill] sm:$0xff] }
 0x36b   : > { %3685 = vmatmul.f32.gmra.mxu3 %v10109_v21 }
 0x36c   : > { %3532 = vmatmul.f32.gmra.mxu2 %v10107_v35 }
 0x36e   : > { %v3046_v24 = vpop.f32.mrf.mxu3 }
 0x36f   : > { %v2857_v51 = vpop.f32.mrf.mxu2 }
 0x370   : > { %v8286_v56 = vadd.f32 %v3042_v26, %v2857_v51  ;;  %v8300_v51 = vpop.f32.mrf.mxu1  ;;  %v8306_v52 = vpop.f32.mrf.mxu0 }
 0x371   : > { %10116 = vst [vmem:[#allocation37_spill] sm:$0xff] %v8300_v51 }
 0x372   : > { %10110 = vst [vmem:[#allocation10_spill] sm:$0xff] %v8286_v56 }
 0x373   : > { %3689 = vmatmul.f32.gmra.mxu3 %v10111_v6  ;;  %10119 = vst [vmem:[#allocation15_spill] sm:$0xff] %v8306_v52 }
 0x374   : > { %3536 = vmatmul.f32.gmra.mxu2 %v10109_v21 }
 0x376   : > { %v3050_v3 = vpop.f32.mrf.mxu3 }
 0x377   : > { %v2865_v23 = vpop.f32.mrf.mxu2 }
 0x378   : > { %v8294_v10 = vadd.f32 %v3046_v24, %v2865_v23 }
 0x37a   : > { %10113 = vst [vmem:[#allocation13_spill] sm:$0xff] %v8294_v10  ;;  %v8310_v10 = vpop.f32.mrf.mxu1 }
 0x37b   : > { %3693 = vmatmul.f32.gmra.mxu3 %v10114_v11  ;;  %10121 = vst [vmem:[#allocation17_spill] sm:$0xff] %v8310_v10  ;;  %v10127_v10 = vld [vmem:[#allocation21_spill] sm:$0xff] }
 0x37c   : > { %3540 = vmatmul.f32.gmra.mxu2 %v10111_v6 }
 0x37e   : > { %v3054_v35 = vpop.f32.mrf.mxu3 }
 0x37f   : > { %v2873_v26 = vpop.f32.mrf.mxu2 }
 0x380   : > { %v8302_v56 = vadd.f32 %v3050_v3, %v2873_v26  ;;  %v8314_v3 = vpop.f32.mrf.mxu0 }
 0x381   : > { %10122 = vst [vmem:[#allocation43_spill] sm:$0xff] %v8314_v3 }
 0x382   : > { %10117 = vst [vmem:[#allocation14_spill] sm:$0xff] %v8302_v56 }
 0x383   : > { %3697 = vmatmul.f32.gmra.mxu3 %v10118_v57 }
 0x384   : > { %3544 = vmatmul.f32.gmra.mxu2 %v10114_v11  ;;  %v8319_v11 = vpop.f32.mrf.mxu1 }
 0x385   : > { %10124 = vst [vmem:[#allocation46_spill] sm:$0xff] %v8319_v11  ;;  %v10129_v11 = vld [vmem:[#allocation2_spill] sm:$0xff] }
 0x386   : > { %v3058_v21 = vpop.f32.mrf.mxu3 }
 0x387   : > { %v2881_v24 = vpop.f32.mrf.mxu2 }
 0x388   : > { %v8308_v23 = vadd.f32 %v3054_v35, %v2881_v24  ;;  %v8324_v56 = vpop.f32.mrf.mxu0 }
 0x389   : > { %10126 = vst [vmem:[#allocation50_spill] sm:$0xff] %v8324_v56 }
 0x38a   : > { %10120 = vst [vmem:[#allocation16_spill] sm:$0xff] %v8308_v23 }
 0x38b   : > { %3701 = vmatmul.f32.gmra.mxu3 %v7487_v0 }
 0x38c   : > { %3548 = vmatmul.f32.gmra.mxu2 %v10118_v57  ;;  %v8328_v3 = vpop.f32.mrf.mxu1 }
 0x38d   : > { %10128 = vst [vmem:[#allocation48_spill] sm:$0xff] %v8328_v3 }
 0x38e   : > { %v3062_v6 = vpop.f32.mrf.mxu3 }
 0x38f   : > { %v2889_v63 = vpop.f32.mrf.mxu2 }
 0x390   : > { %v8316_v26 = vadd.f32 %v3058_v21, %v2889_v63 }
 0x392   : > { %10123 = vst [vmem:[#allocation41_spill] sm:$0xff] %v8316_v26 }
 0x393   : > { %3705 = vmatmul.f32.gmra.mxu3 %v7546_v54 }
 0x394   : > { %3552 = vmatmul.f32.gmra.mxu2 %v7487_v0  ;;  %v8332_v0 = vpop.f32.mrf.mxu0  ;;  %v8336_v34 = vpop.f32.mrf.mxu1 }
 0x395   : > { %10130 = vst [vmem:[#allocation54_spill] sm:$0xff] %v8332_v0 }
 0x396   : > { %v3642_v35 = vpop.f32.mrf.mxu3  ;;  %10131 = vst [vmem:[#allocation51_spill] sm:$0xff] %v8336_v34 }
 0x397   : > { %v2897_v24 = vpop.f32.mrf.mxu2 }
 0x398   : > { %v8322_v23 = vadd.f32 %v3062_v6, %v2897_v24 }
 0x39a   : > { %10125 = vst [vmem:[#allocation45_spill] sm:$0xff] %v8322_v23 }
 0x39b   : > { %3709 = vmatmul.f32.gmra.mxu3 %v10127_v10 }
 0x39c   : > { %3556 = vmatmul.f32.gmra.mxu2 %v7546_v54  ;;  %v8342_v48 = vpop.f32.mrf.mxu0 }
 0x39e   : > { %v3646_v57 = vpop.f32.mrf.mxu3 }
 0x39f   : > { %v3493_v63 = vpop.f32.mrf.mxu2 }
 0x3a0   : > { %v3494_v21 = vadd.f32 %v3493_v63, %v8116_v47  ;;  %v10132_v63 = vld [vmem:[#allocation24_spill] sm:$0xff] }
 0x3a2   : > { %v3643_v26 = vadd.f32 %v3642_v35, %v3494_v21 }
 0x3a3   : > { %3713 = vmatmul.f32.gmra.mxu3 %v10129_v11 }
 0x3a4   : > { %v3770_v6 = vsel %vm3769_vm2, %v3643_v26, 0.0  ;;  %3560 = vmatmul.f32.gmra.mxu2 %v10127_v10 }
 0x3a5   : > { %v3771_v24 = vrot.slane %v3770_v6, 4 }
 0x3a6   : > { %v3650_v23 = vpop.f32.mrf.mxu3 }
 0x3a7   : > { %v3772_v56 = vadd.f32 %v3771_v24, %v3770_v6  ;;  %v3497_v54 = vpop.f32.mrf.mxu2 }
 0x3a8   : > { %v3498_v3 = vadd.f32 %v3497_v54, %v8119_v27 }
 0x3a9   : > { %v3773_v52 = vrot.slane %v3772_v56, 2 }
 0x3aa   : > { %v3647_v47 = vadd.f32 %v3646_v57, %v3498_v3  ;;  %v8346_v57 = vpop.f32.mrf.mxu1 }
 0x3ab   : > { %3717 = vmatmul.f32.gmra.mxu3 %v10132_v63  ;;  %v3774_v35 = vadd.f32 %v3773_v52, %v3772_v56  ;;  %10133 = vst [vmem:[#allocation39_spill] sm:$0xff] %v8346_v57 }
 0x3ac   : > { %v3777_v21 = vsel %vm3769_vm2, %v3647_v47, 0.0  ;;  %3564 = vmatmul.f32.gmra.mxu2 %v10129_v11 }
 0x3ad   : > { %v3775_v0 = vrot.slane %v3774_v35, 1  ;;  %v3778_v51 = vrot.slane %v3777_v21, 4 }
 0x3ae   : > { %v3654_v10 = vpop.f32.mrf.mxu3 }
 0x3af   : > { %v3776_v6 = vadd.f32 %v3775_v0, %v3774_v35  ;;  %v3779_v24 = vadd.f32 %v3778_v51, %v3777_v21  ;;  %v3501_v12 = vpop.f32.mrf.mxu2  ;;  %v10135_v51 = vld [vmem:[#allocation52_spill] sm:$0xff] }
 0x3b0   : > { %v3502_v34 = vadd.f32 %v3501_v12, %v8125_v59  ;;  %v2971_v59 = vadd.f32 %v10135_v51, %v7999_v40  ;;  %v2983_v40 = vadd.f32 %v8078_v4, %v8136_v8 }
 0x3b1   : > { %v3994_v27 = vmul.f32 %v3776_v6, %v6300_v37  ;;  %v3780_v3 = vrot.slane %v3779_v24, 2 }
 0x3b2   : > { %v8348_v56 = vadd.f32 %v3650_v23, %v3502_v34  ;;  %v10136_v23 = vld [vmem:[#allocation27_spill] sm:$0xff]  ;;  %v3133_v6 = vadd.f32 %v8212_v25, %v2971_v59  ;;  %v3148_v4 = vadd.f32 %v8236_v62, %v2983_v40 }
 0x3b3   : > { %3721 = vmatmul.f32.gmra.mxu3 %v7797_v9  ;;  %v8351_v52 = vsub.f32 %v3643_v26, %v3994_v27  ;;  %v3781_v11 = vadd.f32 %v3780_v3, %v3779_v24  ;;  %v2975_v21 = vadd.f32 %v10136_v23, %v8045_v53  ;;  %v2979_v26 = vadd.f32 %v8041_v43, %v8093_v39  ;;  %v10137_v59 = vld [vmem:[#allocation23_spill] sm:$0xff] }
 0x3b4   : > { %v3784_v54 = vsel %vm3769_vm2, %v8348_v56, 0.0  ;;  %3568 = vmatmul.f32.gmra.mxu2 %v10132_v63  ;;  %v2987_v43 = vadd.f32 %v8122_v50, %v8165_v32  ;;  %v2991_v39 = vadd.f32 %v8160_v15, %v8184_v22  ;;  %v8387_v15 = vadd.f32 %v8238_v45, %v3133_v6  ;;  %v8391_v22 = vpop.f32.mrf.mxu1 }
 0x3b5   : > { %10134 = vst [vmem:[#allocation44_spill] sm:$0xff] %v8351_v52  ;;  %v4058_v12 = vmul.f32 %v8351_v52, %v8351_v52  ;;  %v3782_v0 = vrot.slane %v3781_v11, 1  ;;  %v3785_v35 = vrot.slane %v3784_v54, 4  ;;  %v3138_v51 = vadd.f32 %v8220_v29, %v2975_v21  ;;  %v8369_v52 = vpop.f32.mrf.mxu0 }
 0x3b6   : > { %v3658_v34 = vpop.f32.mrf.mxu3  ;;  %v2999_v32 = vadd.f32 %v8192_v14, %v8205_v31  ;;  %v3003_v14 = vadd.f32 %v8202_v2, %v8210_v33 }
 0x3b7   : > { %v4090_v24 = vsel %vm3769_vm2, %v4058_v12, 0.0  ;;  %v3783_v63 = vadd.f32 %v3782_v0, %v3781_v11  ;;  %v3786_v27 = vadd.f32 %v3785_v35, %v3784_v54  ;;  %v3505_v3 = vpop.f32.mrf.mxu2  ;;  %v3143_v54 = vadd.f32 %v8229_v42, %v2979_v26 }
 0x3b8   : > { %v4091_v57 = vrot.slane %v4090_v24, 4  ;;  %v3506_v53 = vadd.f32 %v3505_v3, %v8133_v44  ;;  %v2995_v44 = vadd.f32 %v8180_v61, %v8195_v55  ;;  %v3153_v61 = vadd.f32 %v8244_v18, %v2987_v43 }
 0x3b9   : > { %v3995_v25 = vmul.f32 %v3783_v63, %v6300_v37  ;;  %v3787_v11 = vrot.slane %v3786_v27, 2  ;;  %v8407_v0 = vadd.f32 %v8256_v17, %v3143_v54  ;;  %v3007_v26 = vadd.f32 %v8208_v60, %v8218_v13  ;;  %v10138_v13 = vld [vmem:[#allocation26_spill] sm:$0xff]  ;;  %v10139_v54 = vld [vmem:[#allocation12_spill] sm:$0xff] }
 0x3ba   : > { %v4092_v8 = vadd.f32 %v4091_v57, %v4090_v24  ;;  %v8379_v29 = vadd.f32 %v3654_v10, %v3506_v53  ;;  %v8397_v10 = vadd.f32 %v8247_v20, %v3138_v51  ;;  %v3158_v20 = vadd.f32 %v8252_v49, %v2991_v39 }
 0x3bb   : > { %3725 = vmatmul.f32.gmra.mxu3 %v10137_v59  ;;  %v8384_v12 = vsub.f32 %v3647_v47, %v3995_v25  ;;  %v3788_v50 = vadd.f32 %v3787_v11, %v3786_v27  ;;  %v3163_v33 = vadd.f32 %v8261_v58, %v2995_v44  ;;  %v8420_v63 = vadd.f32 %v8274_v30, %v3153_v61 }
 0x3bc   : > { %v4093_v42 = vrot.slane %v4092_v8, 2  ;;  %v3791_v62 = vsel %vm3769_vm2, %v8379_v29, 0.0  ;;  %3572 = vmatmul.f32.gmra.mxu2 %v7797_v9  ;;  %v8410_v9 = vadd.f32 %v8264_v46, %v3148_v4  ;;  %v3011_v49 = vadd.f32 %v8216_v7, %v8226_v36 }
 0x3bd   : > { %v4059_v55 = vmul.f32 %v8384_v12, %v8384_v12  ;;  %v3789_v45 = vrot.slane %v3788_v50, 1  ;;  %v3792_v47 = vrot.slane %v3791_v62, 4  ;;  %v8424_v27 = vpop.f32.mrf.mxu0  ;;  %v8434_v30 = vadd.f32 %v8283_v19, %v3158_v20 }
 0x3be   : > { %v8402_v57 = vpop.f32.mrf.mxu3  ;;  %v4094_v31 = vadd.f32 %v4093_v42, %v4092_v8  ;;  %v3015_v7 = vadd.f32 %v8224_v38, %v8233_v16  ;;  %v3178_v25 = vadd.f32 %v8288_v28, %v3007_v26  ;;  %v8448_v38 = vpop.f32.mrf.mxu1  ;;  %v8453_v4 = vadd.f32 %v10139_v54, %v3163_v33  ;;  %v10140_v8 = vld [vmem:[#allocation40_spill] sm:$0xff]  ;;  %v10141_v28 = vld [vmem:[#allocation37_spill] sm:$0xff]  ;;  %v10147_v26 = vld [vmem:[#allocation50_spill] sm:$0xff] }
 0x3bf   : > { %v4097_v18 = vsel %vm3769_vm2, %v4059_v55, 0.0  ;;  %v3790_v35 = vadd.f32 %v3789_v45, %v3788_v50  ;;  %v3793_v23 = vadd.f32 %v3792_v47, %v3791_v62  ;;  %v3509_v21 = vpop.f32.mrf.mxu2  ;;  %v10142_v55 = vld [vmem:[#allocation15_spill] sm:$0xff]  ;;  %v10148_v33 = vld [vmem:[#allocation53_spill] sm:$0xff] }
 0x3c0   : > { %v4095_v6 = vrot.slane %v4094_v31, 1  ;;  %v4098_v24 = vrot.slane %v4097_v18, 4  ;;  %v3510_v2 = vadd.f32 %v3509_v21, %v8139_v5  ;;  %v3168_v5 = vadd.f32 %v8270_v41, %v2999_v32  ;;  %v10146_v21 = vld [vmem:[#allocation5_spill] sm:$0xff] }
 0x3c1   : > { %v3996_v17 = vmul.f32 %v3790_v35, %v6300_v37  ;;  %v3794_v46 = vrot.slane %v3793_v23, 2  ;;  %v3173_v41 = vadd.f32 %v8278_v1, %v3003_v14  ;;  %v3188_v45 = vadd.f32 %v10142_v55, %v3015_v7  ;;  %v10145_v35 = vld [vmem:[#allocation43_spill] sm:$0xff] }
 0x3c2   : > { %v4096_v3 = vadd.f32 %v4095_v6, %v4094_v31  ;;  %v4099_v40 = vadd.f32 %v4098_v24, %v4097_v18  ;;  %v8426_v60 = vadd.f32 %v3658_v34, %v3510_v2  ;;  %v8459_v61 = vadd.f32 %v10141_v28, %v3168_v5  ;;  %v10143_v31 = vld [vmem:[#allocation28_spill] sm:$0xff] }
 0x3c3   : > { %3729 = vmatmul.f32.gmra.mxu3 %v10138_v13  ;;  %v8431_v58 = vsub.f32 %v8348_v56, %v3996_v17  ;;  %v3795_v51 = vadd.f32 %v3794_v46, %v3793_v23  ;;  %v10144_v18 = vld [vmem:[#allocation32_spill] sm:$0xff]  ;;  %v3198_v6 = vadd.f32 %v10147_v26, %v10146_v21  ;;  %v10157_v21 = vld [vmem:[#allocation30_spill] sm:$0xff] }
 0x3c4   : > { %v4314_v36 = vmul.f32 %v4096_v3, %v6300_v37  ;;  %v4100_v53 = vrot.slane %v4099_v40, 2  ;;  %v3798_v34 = vsel %vm3769_vm2, %v8426_v60, 0.0  ;;  %3576 = vmatmul.f32.gmra.mxu2 %v10137_v59  ;;  %v3183_v59 = vadd.f32 %v10140_v8, %v3011_v49  ;;  %v10149_v3 = vld [vmem:[#allocation17_spill] sm:$0xff]  ;;  %v10150_v5 = vld [vmem:[#allocation36_spill] sm:$0xff] }
 0x3c5   : > { %v4060_v56 = vmul.f32 %v8431_v58, %v8431_v58  ;;  %v3796_v43 = vrot.slane %v3795_v51, 1  ;;  %v3799_v39 = vrot.slane %v3798_v34, 4  ;;  %v3193_v23 = vadd.f32 %v10145_v35, %v10144_v18 }
 0x3c6   : > { %v8445_v19 = vpop.f32.mrf.mxu3  ;;  %v8450_v16 = vadd.f32 1e-05, %v4314_v36  ;;  %v4101_v11 = vadd.f32 %v4100_v53, %v4099_v40  ;;  %v8476_v40 = vadd.f32 %v10149_v3, %v3173_v41  ;;  %v3222_v36 = vpop.f32.mrf.mxu0 }
 0x3c7   : > { %v4104_v1 = vsel %vm3769_vm2, %v4060_v56, 0.0  ;;  %v3797_v44 = vadd.f32 %v3796_v43, %v3795_v51  ;;  %v3800_v50 = vadd.f32 %v3799_v39, %v3798_v34  ;;  %v3513_v32 = vpop.f32.mrf.mxu2  ;;  %v10151_v51 = vld [vmem:[#allocation54_spill] sm:$0xff] }
 0x3c8   : > { %5714 = vrsqrt.f32 %v8450_v16  ;;  %v4102_v42 = vrot.slane %v4101_v11, 1  ;;  %v4105_v62 = vrot.slane %v4104_v1, 4  ;;  %v3514_v20 = vadd.f32 %v3513_v32, %v10143_v31  ;;  %v10152_v56 = vld [vmem:[#allocation46_spill] sm:$0xff]  ;;  %v10155_v32 = vld [vmem:[#allocation11_spill] sm:$0xff] }
 0x3c9   : > { %v3997_v47 = vmul.f32 %v3797_v44, %v6300_v37  ;;  %v3801_v14 = vrot.slane %v3800_v50, 2  ;;  %v3203_v7 = vadd.f32 %v10151_v51, %v10150_v5  ;;  %v8483_v43 = vadd.f32 %v10152_v56, %v3178_v25  ;;  %v10154_v25 = vld [vmem:[#allocation48_spill] sm:$0xff]  ;;  %v10159_v5 = vld [vmem:[#allocation25_spill] sm:$0xff]  ;;  %v10160_v51 = vld [vmem:[#allocation39_spill] sm:$0xff] }
 0x3ca   : > { %v4103_v24 = vadd.f32 %v4102_v42, %v4101_v11  ;;  %v4106_v2 = vadd.f32 %v4105_v62, %v4104_v1  ;;  %v8473_v49 = vadd.f32 %v8402_v57, %v3514_v20  ;;  %v10156_v20 = vld [vmem:[#allocation51_spill] sm:$0xff]  ;;  %vm4384_vm11 = vweird.f32 %v8450_v16 }
 0x3cb   : > { %3733 = vmatmul.f32.gmra.mxu3 %v10148_v33  ;;  %v8470_v17 = vsub.f32 %v8379_v29, %v3997_v47  ;;  %v3802_v46 = vadd.f32 %v3801_v14, %v3800_v50  ;;  %v10153_v29 = vld [vmem:[#allocation34_spill] sm:$0xff]  ;;  %v8498_v50 = vadd.f32 %v10154_v25, %v3183_v59  ;;  %v3412_v47 = vpop.f32.mrf.mxu1  ;;  %v8507_v18 = vadd.f32 %v10156_v20, %v3188_v45 }
 0x3cc   : > { %v4315_v53 = vmul.f32 %v4103_v24, %v6300_v37  ;;  %v4107_v34 = vrot.slane %v4106_v2, 2  ;;  %3580 = vmatmul.f32.gmra.mxu2 %v10138_v13  ;;  %v3208_v39 = vadd.f32 %v8342_v48, %v10153_v29  ;;  %v3805_v11 = vsel %vm3769_vm2, %v8473_v49, 0.0  ;;  %v10158_v24 = vld [vmem:[#allocation8_spill] sm:$0xff] }
 0x3cd   : > { %v4061_v57 = vmul.f32 %v8470_v17, %v8470_v17  ;;  %v3803_v41 = vrot.slane %v3802_v46, 1  ;;  %v3806_v44 = vrot.slane %v3805_v11, 4  ;;  %v3213_v48 = vadd.f32 %v8369_v52, %v10155_v32  ;;  %v10161_v32 = vld [vmem:[#allocation10_spill] sm:$0xff] }
 0x3ce   : > { %v8491_v54 = vpop.f32.mrf.mxu3  ;;  %v8493_v8 = vpop.eup %5714  ;;  %v8495_v1 = vadd.f32 1e-05, %v4315_v53  ;;  %v4108_v13 = vadd.f32 %v4107_v34, %v4106_v2  ;;  %v8514_v2 = vadd.f32 %v8424_v27, %v10158_v24  ;;  %v8518_v53 = vadd.f32 %v10160_v51, %v3193_v23 }
 0x3cf   : > { %v4379_v42 = vmul.f32 %v8493_v8, %v8450_v16  ;;  %v4111_v62 = vsel %vm3769_vm2, %v4061_v57, 0.0  ;;  %v3804_v28 = vadd.f32 %v3803_v41, %v3802_v46  ;;  %v3517_v55 = vpop.f32.mrf.mxu2  ;;  %v3807_v52 = vadd.f32 %v3806_v44, %v3805_v11 }
 0x3d0   : > { %5716 = vrsqrt.f32 %v8495_v1  ;;  %v4109_v14 = vrot.slane %v4108_v13, 1  ;;  %v4112_v31 = vrot.slane %v4111_v62, 4  ;;  %v3518_v26 = vadd.f32 %v3517_v55, %v10157_v21 }
 0x3d1   : > { %v4380_v59 = vmul.f32 %v8493_v8, %v4379_v42  ;;  %v3998_v35 = vmul.f32 %v3804_v28, %v6300_v37  ;;  %v3808_v56 = vrot.slane %v3807_v52, 2  ;;  %v8529_v27 = vadd.f32 %v8391_v22, %v3198_v6 }
 0x3d2   : > { %v4110_v46 = vadd.f32 %v4109_v14, %v4108_v13  ;;  %v4113_v3 = vadd.f32 %v4112_v31, %v4111_v62  ;;  %v8524_v29 = vadd.f32 %v8445_v19, %v3518_v26  ;;  %v8532_v11 = vadd.f32 %v8448_v38, %v3203_v7 }
 0x3d3   : > { %3737 = vmatmul.f32.gmra.mxu3 %v10159_v5  ;;  %v4381_v45 = vmul.f32 0.5, %v4380_v59  ;;  %v8521_v34 = vsub.f32 %v8426_v60, %v3998_v35  ;;  %v3809_v13 = vadd.f32 %v3808_v56, %v3807_v52  ;;  %v8541_v42 = vadd.f32 %v3222_v36, %v10161_v32  ;;  %v10162_v59 = vld [vmem:[#allocation13_spill] sm:$0xff]  ;;  %v3418_v26 = vpop.f32.mrf.mxu1 }
 0x3d4   : > { %v4316_v57 = vmul.f32 %v4110_v46, %v6300_v37  ;;  %v4114_v41 = vrot.slane %v4113_v3, 2  ;;  %3584 = vmatmul.f32.gmra.mxu2 %v10148_v33  ;;  %v3812_v19 = vsel %vm3769_vm2, %v8524_v29, 0.0  ;;  %v3227_v33 = vpop.f32.mrf.mxu0  ;;  %vm4385_vm10 = vweird.f32 %v8493_v8 }
 0x3d5   : > { %v4382_v23 = vsub.f32 1.5, %v4381_v45  ;;  %v4062_v60 = vmul.f32 %v8521_v34, %v8521_v34  ;;  %v3813_v38 = vrot.slane %v3812_v19, 4  ;;  %v8548_v55 = vadd.f32 %v3412_v47, %v3208_v39  ;;  %v10165_v47 = vld [vmem:[#allocation56_spill] sm:$0xff]  ;;  %vm8560_vm12 = vmor %vm4384_vm11, %vm4385_vm10 }
 0x3d6   : > { %v8538_v44 = vpop.f32.mrf.mxu3  ;;  %v5717_v25 = vpop.eup %5716  ;;  %v8543_v22 = vadd.f32 1e-05, %v4316_v57  ;;  %v4115_v6 = vadd.f32 %v4114_v41, %v4113_v3  ;;  %v8553_v35 = vadd.f32 %v3227_v33, %v10162_v59  ;;  %v3810_v52 = vrot.slane %v3809_v13, 1  ;;  %v10164_v3 = vld [vmem:[#allocation9_spill] sm:$0xff] }
 0x3d7   : > { %v4389_v7 = vmul.f32 %v5717_v25, %v8495_v1  ;;  %v4118_v62 = vsel %vm3769_vm2, %v4062_v60, 0.0  ;;  %v3521_v28 = vpop.f32.mrf.mxu2  ;;  %v4383_v14 = vmul.f32 %v8493_v8, %v4382_v23  ;;  %v3814_v21 = vadd.f32 %v3813_v38, %v3812_v19 }
 0x3d8   : > { %5718 = vrsqrt.f32 %v8543_v22  ;;  %v4116_v36 = vrot.slane %v4115_v6, 1  ;;  %v4119_v31 = vrot.slane %v4118_v62, 4  ;;  %10163 = vst [vmem:[#allocation35_spill] sm:$0xff] %v8553_v35  ;;  %v3522_v39 = vadd.f32 %v3521_v28, %v10164_v3  ;;  %v10170_v3 = vld [vmem:[#allocation7_spill] sm:$0xff] }
 0x3d9   : > { %v4390_v20 = vmul.f32 %v5717_v25, %v4389_v7  ;;  %v3811_v56 = vadd.f32 %v3810_v52, %v3809_v13  ;;  %v3815_v57 = vrot.slane %v3814_v21, 2  ;;  %v8564_v41 = vadd.f32 %v3418_v26, %v3213_v48 }
 0x3da   : > { %v4117_v24 = vadd.f32 %v4116_v36, %v4115_v6  ;;  %v4120_v46 = vadd.f32 %v4119_v31, %v4118_v62  ;;  %v4387_v16 = vsel %vm8560_vm12, %v8493_v8, %v4383_v14  ;;  %v8571_v19 = vadd.f32 %v8491_v54, %v3522_v39  ;;  %v10169_v54 = vld [vmem:[#allocation44_spill] sm:$0xff] }
 0x3db   : > { %3741 = vmatmul.f32.gmra.mxu3 %v10165_v47  ;;  %v4391_v45 = vmul.f32 0.5, %v4390_v20  ;;  %10168 = vst [vmem:[#allocation4_spill] sm:$0xff] %v8564_v41  ;;  %vm4395_vm13 = vweird.f32 %v5717_v25  ;;  %v3999_v33 = vmul.f32 %v3811_v56, %v6300_v37  ;;  %v3816_v13 = vadd.f32 %v3815_v57, %v3814_v21 }
 0x3dc   : > { %v4317_v23 = vmul.f32 %v4117_v24, %v6300_v37  ;;  %v4121_v60 = vrot.slane %v4120_v46, 2  ;;  %3588 = vmatmul.f32.gmra.mxu2 %v10159_v5  ;;  %vm4394_vm14 = vweird.f32 %v8495_v1  ;;  %v3819_v7 = vsel %vm3769_vm2, %v8571_v19, 0.0 }
 0x3dd   : > { %v4392_v32 = vsub.f32 1.5, %v4391_v45  ;;  %v4698_v62 = vmul.f32 %v4387_v16, %v10169_v54  ;;  %v8585_v14 = vsub.f32 %v8473_v49, %v3999_v33  ;;  %vm4396_vm15 = vmor %vm4394_vm14, %vm4395_vm13  ;;  %v3817_v31 = vrot.slane %v3816_v13, 1 }
 0x3de   : > { %v8575_v6 = vpop.f32.mrf.mxu3  ;;  %v5719_v48 = vpop.eup %5718  ;;  %v8578_v38 = vadd.f32 1e-05, %v4317_v23  ;;  %v4122_v8 = vadd.f32 %v4121_v60, %v4120_v46  ;;  %v3820_v21 = vrot.slane %v3819_v7, 4  ;;  %vm4404_vm3 = vweird.f32 %v8543_v22 }
 0x3df   : > { %v4393_v28 = vmul.f32 %v5717_v25, %v4392_v32  ;;  %v4399_v5 = vmul.f32 %v5719_v48, %v8543_v22  ;;  %v3525_v36 = vpop.f32.mrf.mxu2  ;;  %v4063_v52 = vmul.f32 %v8585_v14, %v8585_v14  ;;  %v3818_v46 = vadd.f32 %v3817_v31, %v3816_v13 }
 0x3e0   : > { %5720 = vrsqrt.f32 %v8578_v38  ;;  %v4123_v1 = vrot.slane %v4122_v8, 1  ;;  %v3526_v49 = vadd.f32 %v3525_v36, %v8387_v15  ;;  %v4730_v39 = vmax.f32 %v4698_v62, 0.0 }
 0x3e1   : > { %v4397_v20 = vsel %vm4396_vm15, %v5717_v25, %v4393_v28  ;;  %v4400_v59 = vmul.f32 %v5719_v48, %v4399_v5  ;;  %v4125_v45 = vsel %vm3769_vm2, %v4063_v52, 0.0  ;;  %v3821_v56 = vadd.f32 %v3820_v21, %v3819_v7  ;;  %v10171_v21 = vld [vmem:[#allocation55_spill] sm:$0xff] }
 0x3e2   : > { %v4699_v26 = vmul.f32 %v4397_v20, %v8384_v12  ;;  %v4124_v24 = vadd.f32 %v4123_v1, %v4122_v8  ;;  %v4126_v16 = vrot.slane %v4125_v45, 4  ;;  %v4000_v23 = vmul.f32 %v3818_v46, %v6300_v37 }
 0x3e3   : > { %3745 = vmatmul.f32.gmra.mxu3 %v10170_v3  ;;  %v4401_v51 = vmul.f32 0.5, %v4400_v59  ;;  %vm4405_vm1 = vweird.f32 %v5719_v48  ;;  %v3822_v60 = vrot.slane %v3821_v56, 2  ;;  %v8598_v15 = vadd.f32 %v8538_v44, %v3526_v49 }
 0x3e4   : > { %v4731_v57 = vmax.f32 %v4699_v26, 0.0  ;;  %v4318_v25 = vmul.f32 %v4124_v24, %v6300_v37  ;;  %3592 = vmatmul.f32.gmra.mxu2 %v10165_v47  ;;  %v4127_v7 = vadd.f32 %v4126_v16, %v4125_v45  ;;  %v8607_v54 = vsub.f32 %v8524_v29, %v4000_v23  ;;  %vm4406_vm4 = vmor %vm4404_vm3, %vm4405_vm1 }
 0x3e5   : > { %v4402_v12 = vsub.f32 1.5, %v4401_v51  ;;  %v3823_v28 = vadd.f32 %v3822_v60, %v3821_v56  ;;  %vm4414_vm6 = vweird.f32 %v8578_v38  ;;  %v3826_v52 = vsel %vm3769_vm2, %v8598_v15, 0.0 }
 0x3e6   : > { %v8600_v32 = vpop.f32.mrf.mxu3  ;;  %v8602_v33 = vpop.eup %5720  ;;  %v4806_v13 = vrot.slane %v4731_v57, 7  ;;  %v8604_v8 = vadd.f32 1e-05, %v4318_v25  ;;  %v4128_v36 = vrot.slane %v4127_v7, 2  ;;  %v4064_v31 = vmul.f32 %v8607_v54, %v8607_v54 }
 0x3e7   : > { %v4403_v62 = vmul.f32 %v5719_v48, %v4402_v12  ;;  %v4409_v47 = vmul.f32 %v8602_v33, %v8578_v38  ;;  %v3529_v44 = vpop.f32.mrf.mxu2  ;;  %v3824_v22 = vrot.slane %v3823_v28, 1  ;;  %v3827_v46 = vrot.slane %v3826_v52, 4 }
 0x3e8   : > { %v4808_v5 = vsel %vm4807_vm0, %v4806_v13, %v4730_v39  ;;  %5722 = vrsqrt.f32 %v8604_v8  ;;  %v4129_v59 = vadd.f32 %v4128_v36, %v4127_v7  ;;  %v4132_v24 = vsel %vm3769_vm2, %v4064_v31, 0.0 }
 0x3e9   : > { %v4407_v1 = vsel %vm4406_vm4, %v5719_v48, %v4403_v62  ;;  %v4410_v29 = vmul.f32 %v8602_v33, %v4409_v47  ;;  %v3825_v48 = vadd.f32 %v3824_v22, %v3823_v28  ;;  %vm4415_vm7 = vweird.f32 %v8602_v33 }
 0x3ea   : > { %v4700_v20 = vmul.f32 %v4407_v1, %v8431_v58  ;;  %v4130_v39 = vrot.slane %v4129_v59, 1  ;;  %v4769_v58 = vld [vmem:[%s9768_s3 + $0x38] sm:$0xff]  ;;  %v4133_v51 = vrot.slane %v4132_v24, 4  ;;  %v3828_v25 = vadd.f32 %v3827_v46, %v3826_v52  ;;  %vm4416_vm10 = vmor %vm4414_vm6, %vm4415_vm7 }
 0x3eb   : > { %3749 = vmatmul.f32.gmra.mxu3 %v10171_v21  ;;  %v4411_v26 = vmul.f32 0.5, %v4410_v29  ;;  %v8629_v56 = vand.u32 4294901760, %v4769_v58  ;;  %v4001_v57 = vmul.f32 %v3825_v48, %v6300_v37  ;;  %v3530_v7 = vadd.f32 %v3529_v44, %v8397_v10 }
 0x3ec   : > { %v4732_v49 = vmax.f32 %v4700_v20, 0.0  ;;  %3596 = vmatmul.f32.gmra.mxu2 %v10170_v3  ;;  %v4131_v60 = vadd.f32 %v4130_v39, %v4129_v59  ;;  %v4134_v13 = vadd.f32 %v4133_v51, %v4132_v24  ;;  %vm4424_vm9 = vweird.f32 %v8604_v8 }
 0x3ed   : > { %v4412_v45 = vsub.f32 1.5, %v4411_v26  ;;  %4886 = vmatpush.msrb.mxu0 %v8629_v56  ;;  %v8643_v47 = vsub.f32 %v4769_v58, %v8629_v56  ;;  %5069 = vmatpush.msrb.mxu3 %v8629_v56  ;;  %v8653_v1 = vsub.f32 %v8571_v19, %v4001_v57  ;;  %v3829_v20 = vrot.slane %v3828_v25, 2  ;;  %v10172_v26 = vld [vmem:[#allocation29_spill] sm:$0xff] }
 0x3ee   : > { %v8632_v16 = vpop.f32.mrf.mxu3  ;;  %v8634_v23 = vpop.eup %5722  ;;  %v4809_v12 = vrot.slane %v4732_v49, 6  ;;  %v4319_v10 = vmul.f32 %v4131_v60, %v6300_v37  ;;  %v4135_v44 = vrot.slane %v4134_v13, 2  ;;  %v8663_v52 = vadd.f32 %v8575_v6, %v3530_v7  ;;  %v4768_v6 = vld [vmem:[%s9768_s3 + $0x30] sm:$0xff] }
 0x3ef   : > { %v4413_v62 = vmul.f32 %v8602_v33, %v4412_v45  ;;  %v4419_v3 = vmul.f32 %v8634_v23, %v8604_v8  ;;  %v3533_v28 = vpop.f32.mrf.mxu2  ;;  %v9878_v22 = vand.u32 4294901760, %v8643_v47  ;;  %5017 = vmatpush.msrb.mxu2 %v8643_v47  ;;  %v4065_v24 = vmul.f32 %v8653_v1, %v8653_v1 }
 0x3f0   : > { %v4811_v36 = vsel %vm4810_vm5, %v4809_v12, %v4808_v5  ;;  %v8660_v59 = vadd.f32 1e-05, %v4319_v10  ;;  %v4136_v38 = vadd.f32 %v4135_v44, %v4134_v13  ;;  %v3830_v48 = vadd.f32 %v3829_v20, %v3828_v25 }
 0x3f1   : > { %v4417_v29 = vsel %vm4416_vm10, %v8602_v33, %v4413_v62  ;;  %v4420_v31 = vmul.f32 %v8634_v23, %v4419_v3  ;;  %v4945_v33 = vsub.f32 %v8643_v47, %v9878_v22  ;;  %vm4425_vm11 = vweird.f32 %v8634_v23 }
 0x3f2   : > { %v4701_v5 = vmul.f32 %v4417_v29, %v8470_v17  ;;  %5724 = vrsqrt.f32 %v8660_v59  ;;  %v4137_v17 = vrot.slane %v4136_v38, 1  ;;  %v4139_v58 = vsel %vm3769_vm2, %v4065_v24, 0.0  ;;  %vm4426_vm12 = vmor %vm4424_vm9, %vm4425_vm11 }
 0x3f3   : > { %3753 = vmatmul.f32.gmra.mxu3 %v10172_v26  ;;  %v4421_v19 = vmul.f32 0.5, %v4420_v31  ;;  %v4946_v39 = vand.u32 4294901760, %v4945_v33  ;;  %v3831_v51 = vrot.slane %v3830_v48, 1  ;;  %v4140_v12 = vrot.slane %v4139_v58, 4 }
 0x3f4   : > { %v4733_v46 = vmax.f32 %v4701_v5, 0.0  ;;  %3600 = vmatmul.f32.gmra.mxu2 %v10171_v21  ;;  %v4138_v25 = vadd.f32 %v4137_v17, %v4136_v38  ;;  %v3833_v60 = vsel %vm3769_vm2, %v8663_v52, 0.0  ;;  %v8683_v3 = vand.u32 4294901760, %v4768_v6 }
 0x3f5   : > { %v4422_v49 = vsub.f32 1.5, %v4421_v19  ;;  %4947 = vmatpush.msrb.mxu1 %v4946_v39  ;;  %v3832_v7 = vadd.f32 %v3831_v51, %v3830_v48  ;;  %v3834_v62 = vrot.slane %v3833_v60, 4  ;;  %v4141_v29 = vadd.f32 %v4140_v12, %v4139_v58 }
 0x3f6   : > { %v8678_v45 = vpop.f32.mrf.mxu3  ;;  %v4812_v57 = vrot.slane %v4733_v46, 5  ;;  %v4320_v44 = vmul.f32 %v4138_v25, %v6300_v37  ;;  %v3534_v31 = vadd.f32 %v3533_v28, %v8407_v0  ;;  %4888 = vmatpush.msrb.mxu0 %v8683_v3  ;;  %v8696_v19 = vsub.f32 %v4768_v6, %v8683_v3  ;;  %v10173_v0 = vld [vmem:[#allocation31_spill] sm:$0xff]  ;;  %5071 = vmatpush.msrb.mxu3 %v8683_v3 }
 0x3f7   : > { %v4423_v13 = vmul.f32 %v8634_v23, %v4422_v49  ;;  %v3537_v21 = vpop.f32.mrf.mxu2  ;;  %v4002_v5 = vmul.f32 %v3832_v7, %v6300_v37  ;;  %v3835_v38 = vadd.f32 %v3834_v62, %v3833_v60  ;;  %v4142_v24 = vrot.slane %v4141_v29, 2 }
 0x3f8   : > { %v4814_v10 = vsel %vm4813_vm8, %v4812_v57, %v4811_v36  ;;  %v5725_v36 = vpop.eup %5724  ;;  %v8699_v8 = vadd.f32 1e-05, %v4320_v44  ;;  %v8702_v48 = vadd.f32 %v8600_v32, %v3534_v31  ;;  %vm4816_vm13 = vcmask 1044484   ;;  %5020 = vmatpush.msrb.mxu2 %v8696_v19 }
 0x3f9   : > { %v4427_v20 = vsel %vm4426_vm12, %v8634_v23, %v4423_v13  ;;  %v4429_v23 = vmul.f32 %v5725_v36, %v8660_v59  ;;  %v8707_v28 = vsub.f32 %v8598_v15, %v4002_v5  ;;  %v3836_v46 = vrot.slane %v3835_v38, 2 }
 0x3fa   : > { %v4702_v33 = vmul.f32 %v4427_v20, %v8521_v34  ;;  %vm4434_vm14 = vweird.f32 %v8660_v59  ;;  %5726 = vrsqrt.f32 %v8699_v8  ;;  %v4143_v32 = vadd.f32 %v4142_v24, %v4141_v29 }
 0x3fb   : > { %3757 = vmatmul.f32.gmra.mxu3 %v10173_v0  ;;  %v4430_v17 = vmul.f32 %v5725_v36, %v4429_v23  ;;  %vm4435_vm15 = vweird.f32 %v5725_v36  ;;  %v4066_v6 = vmul.f32 %v8707_v28, %v8707_v28  ;;  %v3837_v15 = vadd.f32 %v3836_v46, %v3835_v38 }
 0x3fc   : > { %v4734_v34 = vmax.f32 %v4702_v33, 0.0  ;;  %3604 = vmatmul.f32.gmra.mxu2 %v10172_v26  ;;  %v4144_v39 = vrot.slane %v4143_v32, 1  ;;  %v9876_v58 = vand.u32 4294901760, %v8696_v19  ;;  %v3840_v51 = vsel %vm3769_vm2, %v8702_v48, 0.0  ;;  %vm4436_vm4 = vmor %vm4434_vm14, %vm4435_vm15 }
 0x3fd   : > { %v4431_v25 = vmul.f32 0.5, %v4430_v17  ;;  %v4146_v12 = vsel %vm3769_vm2, %v4066_v6, 0.0  ;;  %v3838_v60 = vrot.slane %v3837_v15, 1  ;;  %v3841_v26 = vrot.slane %v3840_v51, 4 }
 0x3fe   : > { %v4815_v49 = vrot.slane %v4734_v34, 4  ;;  %v8719_v57 = vpop.f32.mrf.mxu3  ;;  %v4145_v62 = vadd.f32 %v4144_v39, %v4143_v32  ;;  %v4147_v44 = vrot.slane %v4146_v12, 4  ;;  %v4951_v29 = vsub.f32 %v8696_v19, %v9876_v58 }
 0x3ff   : > { %v3541_v13 = vpop.f32.mrf.mxu2  ;;  %v4432_v31 = vsub.f32 1.5, %v4431_v25  ;;  %vm4819_vm1 = vcmask 1045509   ;;  %v3839_v20 = vadd.f32 %v3838_v60, %v3837_v15  ;;  %v3842_v5 = vadd.f32 %v3841_v26, %v3840_v51 }
 0x400   : > { %v4817_v7 = vsel %vm4816_vm13, %v4815_v49, %v4814_v10  ;;  %v3538_v38 = vadd.f32 %v3537_v21, %v8410_v9  ;;  %v5727_v33 = vpop.eup %5726  ;;  %v4321_v24 = vmul.f32 %v4145_v62, %v6300_v37  ;;  %v4148_v23 = vadd.f32 %v4147_v44, %v4146_v12  ;;  %v10174_v10 = vld [vmem:[#allocation3_spill] sm:$0xff] }
 0x401   : > { %v4952_v46 = vand.u32 4294901760, %v4951_v29  ;;  %v3542_v34 = vadd.f32 %v3541_v13, %v8420_v63  ;;  %v4433_v32 = vmul.f32 %v5725_v36, %v4432_v31  ;;  %v4439_v17 = vmul.f32 %v5727_v33, %v8699_v8 }
 0x402   : > { %vm4444_vm3 = vweird.f32 %v8699_v8  ;;  %v4003_v6 = vmul.f32 %v3839_v20, %v6300_v37  ;;  %v8736_v9 = vadd.f32 1e-05, %v4321_v24  ;;  %v4149_v21 = vrot.slane %v4148_v23, 2 }
 0x403   : > { %3761 = vmatmul.f32.gmra.mxu3 %v10174_v10  ;;  %4953 = vmatpush.msrb.mxu1 %v4952_v46  ;;  %v3843_v15 = vrot.slane %v3842_v5, 2  ;;  %v8739_v63 = vadd.f32 %v8632_v16, %v3538_v38  ;;  %v4437_v49 = vsel %vm4436_vm4, %v5725_v36, %v4433_v32  ;;  %v4440_v39 = vmul.f32 %v5727_v33, %v4439_v17  ;;  %v10175_v46 = vld [vmem:[#allocation33_spill] sm:$0xff] }
 0x404   : > { %3608 = vmatmul.f32.gmra.mxu2 %v10173_v0  ;;  %v8743_v51 = vsub.f32 %v8663_v52, %v4003_v6  ;;  %v8746_v25 = vadd.f32 %v8678_v45, %v3542_v34  ;;  %v4703_v59 = vmul.f32 %v4437_v49, %v8585_v14  ;;  %vm4445_vm6 = vweird.f32 %v5727_v33 }
 0x405   : > { %5728 = vrsqrt.f32 %v8736_v9  ;;  %v4150_v12 = vadd.f32 %v4149_v21, %v4148_v23  ;;  %v4441_v60 = vmul.f32 0.5, %v4440_v39  ;;  %v3844_v26 = vadd.f32 %v3843_v15, %v3842_v5  ;;  %vm4446_vm9 = vmor %vm4444_vm3, %vm4445_vm6 }
 0x406   : > { %v4067_v16 = vmul.f32 %v8743_v51, %v8743_v51  ;;  %v3847_v36 = vsel %vm3769_vm2, %v8739_v63, 0.0  ;;  %v4735_v0 = vmax.f32 %v4703_v59, 0.0  ;;  %v3854_v45 = vsel %vm3769_vm2, %v8746_v25, 0.0  ;;  %v8756_v14 = vpop.f32.mrf.mxu3 }
 0x407   : > { %v4151_v52 = vrot.slane %v4150_v12, 1  ;;  %v3848_v13 = vrot.slane %v3847_v36, 4  ;;  %v3545_v62 = vpop.f32.mrf.mxu2  ;;  %v4442_v44 = vsub.f32 1.5, %v4441_v60  ;;  %vm4822_vm7 = vcmask 1046534  }
 0x408   : > { %v4153_v29 = vsel %vm3769_vm2, %v4067_v16, 0.0  ;;  %v3845_v31 = vrot.slane %v3844_v26, 1  ;;  %v3855_v20 = vrot.slane %v3854_v45, 4  ;;  %v4818_v38 = vrot.slane %v4735_v0, 3 }
 0x409   : > { %v4152_v5 = vadd.f32 %v4151_v52, %v4150_v12  ;;  %v4154_v24 = vrot.slane %v4153_v29, 4  ;;  %v3849_v23 = vadd.f32 %v3848_v13, %v3847_v36  ;;  %v4443_v34 = vmul.f32 %v5727_v33, %v4442_v44 }
 0x40a   : > { %v3846_v32 = vadd.f32 %v3845_v31, %v3844_v26  ;;  %v3856_v17 = vadd.f32 %v3855_v20, %v3854_v45  ;;  %v3546_v6 = vadd.f32 %v3545_v62, %v8434_v30  ;;  %v4820_v15 = vsel %vm4819_vm1, %v4818_v38, %v4817_v7 }
 0x40b   : > { %3765 = vmatmul.f32.gmra.mxu3 %v10175_v46  ;;  %v5729_v21 = vpop.eup %5728  ;;  %v4322_v49 = vmul.f32 %v4152_v5, %v6300_v37  ;;  %v4155_v39 = vadd.f32 %v4154_v24, %v4153_v29  ;;  %v3850_v59 = vrot.slane %v3849_v23, 2  ;;  %v4447_v12 = vsel %vm4446_vm9, %v5727_v33, %v4443_v34  ;;  %v4767_v33 = vld [vmem:[%s9768_s3 + $0x28] sm:$0xff]  ;;  %v3232_v24 = vpop.f32.mrf.mxu0 }
 0x40c   : > { %3612 = vmatmul.f32.gmra.mxu2 %v10174_v10  ;;  %v4449_v60 = vmul.f32 %v5729_v21, %v8736_v9  ;;  %vm4454_vm10 = vweird.f32 %v8736_v9  ;;  %v4004_v30 = vmul.f32 %v3846_v32, %v6300_v37  ;;  %v4704_v16 = vmul.f32 %v4447_v12, %v8607_v54 }
 0x40d   : > { %v8771_v7 = vadd.f32 1e-05, %v4322_v49  ;;  %v4156_v26 = vrot.slane %v4155_v39, 2  ;;  %v3851_v8 = vadd.f32 %v3850_v59, %v3849_v23  ;;  %v3857_v52 = vrot.slane %v3856_v17, 2 }
 0x40e   : > { %v4450_v36 = vmul.f32 %v5729_v21, %v4449_v60  ;;  %v8774_v0 = vsub.f32 %v8702_v48, %v4004_v30  ;;  %v8777_v10 = vadd.f32 %v8719_v57, %v3546_v6  ;;  %v4736_v13 = vmax.f32 %v4704_v16, 0.0  ;;  %v8789_v5 = vpop.f32.mrf.mxu3 }
 0x40f   : > { %vm4455_vm11 = vweird.f32 %v5729_v21  ;;  %5730 = vrsqrt.f32 %v8771_v7  ;;  %v4157_v54 = vadd.f32 %v4156_v26, %v4155_v39  ;;  %v3852_v44 = vrot.slane %v3851_v8, 1  ;;  %v3549_v38 = vpop.f32.mrf.mxu2 }
 0x410   : > { %v4451_v45 = vmul.f32 0.5, %v4450_v36  ;;  %v4068_v62 = vmul.f32 %v8774_v0, %v8774_v0  ;;  %v3858_v48 = vadd.f32 %v3857_v52, %v3856_v17  ;;  %v4821_v29 = vrot.slane %v4736_v13, 2  ;;  %vm4456_vm12 = vmor %vm4454_vm10, %vm4455_vm11 }
 0x411   : > { %v4158_v31 = vrot.slane %v4157_v54, 1  ;;  %v3861_v57 = vsel %vm3769_vm2, %v8777_v10, 0.0  ;;  %v8787_v20 = vand.u32 4294901760, %v4767_v33  ;;  %v3853_v32 = vadd.f32 %v3852_v44, %v3851_v8  ;;  %v10176_v8 = vld [vmem:[#allocation14_spill] sm:$0xff] }
 0x412   : > { %v4452_v23 = vsub.f32 1.5, %v4451_v45  ;;  %v4160_v34 = vsel %vm3769_vm2, %v4068_v62, 0.0  ;;  %v3859_v6 = vrot.slane %v3858_v48, 1  ;;  %v4823_v49 = vsel %vm4822_vm7, %v4821_v29, %v4820_v15 }
 0x413   : > { %v4159_v39 = vadd.f32 %v4158_v31, %v4157_v54  ;;  %v4161_v17 = vrot.slane %v4160_v34, 4  ;;  %v3862_v59 = vrot.slane %v3861_v57, 4  ;;  %4890 = vmatpush.msrb.mxu0 %v8787_v20  ;;  %v4005_v60 = vmul.f32 %v3853_v32, %v6300_v37  ;;  %5073 = vmatpush.msrb.mxu3 %v8787_v20 }
 0x414   : > { %3616 = vmatmul.f32.gmra.mxu2 %v10175_v46  ;;  %v4453_v12 = vmul.f32 %v5729_v21, %v4452_v23  ;;  %v3860_v30 = vadd.f32 %v3859_v6, %v3858_v48  ;;  %v8797_v16 = vsub.f32 %v4767_v33, %v8787_v20  ;;  %v8803_v15 = vadd.f32 %v3232_v24, %v10176_v8 }
 0x415   : > { %v8800_v26 = vpop.eup %5730  ;;  %v4323_v46 = vmul.f32 %v4159_v39, %v6300_v37  ;;  %v4162_v36 = vadd.f32 %v4161_v17, %v4160_v34  ;;  %v3863_v52 = vadd.f32 %v3862_v59, %v3861_v57  ;;  %v8812_v54 = vsub.f32 %v8739_v63, %v4005_v60 }
 0x416   : > { %10177 = vst [vmem:[#allocation38_spill] sm:$0xff] %v8803_v15  ;;  %v4457_v13 = vsel %vm4456_vm12, %v5729_v21, %v4453_v12  ;;  %v4459_v33 = vmul.f32 %v8800_v26, %v8771_v7  ;;  %v3550_v45 = vadd.f32 %v3549_v38, %v8453_v4  ;;  %5023 = vmatpush.msrb.mxu2 %v8797_v16  ;;  %v9874_v63 = vand.u32 4294901760, %v8797_v16  ;;  %v3424_v38 = vpop.f32.mrf.mxu1  ;;  %v8832_v12 = vpop.f32.mrf.mxu3 }
 0x417   : > { %v4705_v62 = vmul.f32 %v4457_v13, %v8653_v1  ;;  %v8817_v44 = vadd.f32 1e-05, %v4323_v46  ;;  %v4163_v9 = vrot.slane %v4162_v36, 2  ;;  %v4006_v48 = vmul.f32 %v3860_v30, %v6300_v37  ;;  %v3553_v59 = vpop.f32.mrf.mxu2  ;;  %v3237_v46 = vpop.f32.mrf.mxu0 }
 0x418   : > { %v4460_v29 = vmul.f32 %v8800_v26, %v4459_v33  ;;  %v4069_v21 = vmul.f32 %v8812_v54, %v8812_v54  ;;  %v3864_v31 = vrot.slane %v3863_v52, 2  ;;  %vm9879_vm14 = vcmask 1047559  }
 0x419   : > { %v4737_v57 = vmax.f32 %v4705_v62, 0.0  ;;  %5732 = vrsqrt.f32 %v8817_v44  ;;  %v4164_v4 = vadd.f32 %v4163_v9, %v4162_v36  ;;  %v8827_v23 = vsub.f32 %v8746_v25, %v4006_v48 }
 0x41a   : > { %v4461_v1 = vmul.f32 0.5, %v4460_v29  ;;  %v4167_v24 = vsel %vm3769_vm2, %v4069_v21, 0.0  ;;  %v3865_v34 = vadd.f32 %v3864_v31, %v3863_v52  ;;  %v4957_v17 = vsub.f32 %v8797_v16, %v9874_v63 }
 0x41b   : > { %v4824_v32 = vrot.slane %v4737_v57, 1  ;;  %v4165_v6 = vrot.slane %v4164_v4, 1  ;;  %v4168_v39 = vrot.slane %v4167_v24, 4  ;;  %v4070_v60 = vmul.f32 %v8827_v23, %v8827_v23  ;;  %v10179_v57 = vld [vmem:[#allocation16_spill] sm:$0xff] }
 0x41c   : > { %v3866_v30 = vrot.slane %v3865_v34, 1  ;;  %v8837_v8 = vadd.f32 %v8756_v14, %v3550_v45  ;;  %v8840_v25 = vadd.f32 %v3424_v38, %v8514_v2  ;;  %v4958_v33 = vand.u32 4294901760, %v4957_v17 }
 0x41d   : > { %v8843_v36 = vsel %vm9879_vm14, %v4824_v32, %v4823_v49  ;;  %v4166_v52 = vadd.f32 %v4165_v6, %v4164_v4  ;;  %v4169_v13 = vadd.f32 %v4168_v39, %v4167_v24  ;;  %v4462_v62 = vsub.f32 1.5, %v4461_v1  ;;  %v4766_v49 = vld [vmem:[%s9768_s3 + $0x20] sm:$0xff] }
 0x41e   : > { %10178 = vst [vmem:[#allocation49_spill] sm:$0xff] %v8840_v25  ;;  %v4174_v9 = vsel %vm3769_vm2, %v4070_v60, 0.0  ;;  %v3867_v48 = vadd.f32 %v3866_v30, %v3865_v34  ;;  %v3868_v29 = vsel %vm3769_vm2, %v8837_v8, 0.0  ;;  %4959 = vmatpush.msrb.mxu1 %v4958_v33  ;;  %v8855_v4 = vadd.f32 %v3237_v46, %v10179_v57  ;;  %v4765_v30 = vld [vmem:[%s9768_s3 + $0x18] sm:$0xff] }
 0x41f   : > { %v8848_v21 = vpop.eup %5732  ;;  %v4324_v14 = vmul.f32 %v4166_v52, %v6300_v37  ;;  %v4170_v2 = vrot.slane %v4169_v13, 2  ;;  %v4175_v45 = vrot.slane %v4174_v9, 4  ;;  %v3869_v31 = vrot.slane %v3868_v29, 4 }
 0x420   : > { %10180 = vst [vmem:[#allocation6_spill] sm:$0xff] %v8855_v4  ;;  %vm4465_vm15 = vweird.f32 %v8800_v26  ;;  %v4469_v38 = vmul.f32 %v8848_v21, %v8817_v44  ;;  %v4007_v1 = vmul.f32 %v3867_v48, %v6300_v37  ;;  %vm4464_vm3 = vweird.f32 %v8771_v7 }
 0x421   : > { %vm4474_vm4 = vweird.f32 %v8817_v44  ;;  %v8863_v24 = vadd.f32 1e-05, %v4324_v14  ;;  %v4171_v34 = vadd.f32 %v4170_v2, %v4169_v13  ;;  %v4176_v32 = vadd.f32 %v4175_v45, %v4174_v9  ;;  %v8889_v2 = vpop.f32.mrf.mxu2  ;;  %v8891_v45 = vpop.f32.mrf.mxu3  ;;  %vm8927_vm10 = vmor %vm4464_vm3, %vm4465_vm15 }
 0x422   : > { %v4470_v6 = vmul.f32 %v8848_v21, %v4469_v38  ;;  %v8867_v39 = vsub.f32 %v8777_v10, %v4007_v1  ;;  %v3870_v17 = vadd.f32 %v3869_v31, %v3868_v29  ;;  %v8869_v60 = vand.u32 4294901760, %v4766_v49 }
 0x423   : > { %v8875_v46 = vmul.f32 %v8800_v26, %v4462_v62  ;;  %vm4475_vm6 = vweird.f32 %v8848_v21  ;;  %5734 = vrsqrt.f32 %v8863_v24  ;;  %v4172_v52 = vrot.slane %v4171_v34, 1 }
 0x424   : > { %v4471_v13 = vmul.f32 0.5, %v4470_v6  ;;  %v4177_v33 = vrot.slane %v4176_v32, 2  ;;  %v4071_v10 = vmul.f32 %v8867_v39, %v8867_v39  ;;  %v3871_v9 = vrot.slane %v3870_v17, 2  ;;  %5075 = vmatpush.msrb.mxu3 %v8869_v60  ;;  %4892 = vmatpush.msrb.mxu0 %v8869_v60  ;;  %vm8912_vm9 = vmor %vm4474_vm4, %vm4475_vm6 }
 0x425   : > { %v4173_v48 = vadd.f32 %v4172_v52, %v4171_v34  ;;  %v8884_v29 = vsub.f32 %v4766_v49, %v8869_v60  ;;  %v8886_v62 = vand.u32 4294901760, %v4765_v30  ;;  %v3554_v14 = vadd.f32 %v3553_v59, %v8459_v61  ;;  %v3242_v61 = vpop.f32.mrf.mxu0 }
 0x426   : > { %v4472_v31 = vsub.f32 1.5, %v4471_v13  ;;  %v4178_v57 = vadd.f32 %v4177_v33, %v4176_v32  ;;  %v4181_v38 = vsel %vm3769_vm2, %v4071_v10, 0.0  ;;  %v3872_v1 = vadd.f32 %v3871_v9, %v3870_v17  ;;  %v3430_v33 = vpop.f32.mrf.mxu1 }
 0x427   : > { %v4325_v6 = vmul.f32 %v4173_v48, %v6300_v37  ;;  %v4182_v63 = vrot.slane %v4181_v38, 4  ;;  %v9875_v34 = vand.u32 4294901760, %v8884_v29  ;;  %v8897_v49 = vsub.f32 %v4765_v30, %v8886_v62  ;;  %5026 = vmatpush.msrb.mxu2 %v8884_v29  ;;  %5077 = vmatpush.msrb.mxu3 %v8886_v62 }
 0x428   : > { %v4473_v59 = vmul.f32 %v8848_v21, %v4472_v31  ;;  %v4179_v52 = vrot.slane %v4178_v57, 1  ;;  %v3873_v32 = vrot.slane %v3872_v1, 1  ;;  %v8903_v13 = vadd.f32 %v8789_v5, %v3554_v14  ;;  %4894 = vmatpush.msrb.mxu0 %v8886_v62 }
 0x429   : > { %v8906_v17 = vpop.eup %5734  ;;  %v8916_v10 = vadd.f32 1e-05, %v4325_v6  ;;  %v4183_v9 = vadd.f32 %v4182_v63, %v4181_v38  ;;  %v4963_v5 = vsub.f32 %v8884_v29, %v9875_v34  ;;  %v9877_v48 = vand.u32 4294901760, %v8897_v49  ;;  %5029 = vmatpush.msrb.mxu2 %v8897_v49  ;;  %v10186_v6 = vld [vmem:[#allocation41_spill] sm:$0xff]  ;;  %v8960_v44 = vpop.f32.mrf.mxu3 }
 0x42a   : > { %v4477_v63 = vsel %vm8912_vm9, %v8848_v21, %v4473_v59  ;;  %v4479_v14 = vmul.f32 %v8906_v17, %v8863_v24  ;;  %v4180_v31 = vadd.f32 %v4179_v52, %v4178_v57  ;;  %v8937_v38 = vadd.f32 %v3430_v33, %v8541_v42  ;;  %v4764_v42 = vld [vmem:[%s9768_s3 + $0x10] sm:$0xff]  ;;  %v8958_v33 = vpop.f32.mrf.mxu2 }
 0x42b   : > { %v8940_v34 = vadd.f32 %v3242_v61, %v10186_v6  ;;  %v4467_v7 = vsel %vm8927_vm10, %v8800_v26, %v8875_v46  ;;  %5736 = vrsqrt.f32 %v8916_v10  ;;  %v4184_v58 = vrot.slane %v4183_v9, 2 }
 0x42c   : > { %10185 = vst [vmem:[#allocation20_spill] sm:$0xff] %v8937_v38  ;;  %v4480_v21 = vmul.f32 %v8906_v17, %v4479_v14  ;;  %v4326_v59 = vmul.f32 %v4180_v31, %v6300_v37  ;;  %v3874_v30 = vadd.f32 %v3873_v32, %v3872_v1  ;;  %v4964_v57 = vand.u32 4294901760, %v4963_v5 }
 0x42d   : > { %10187 = vst [vmem:[#allocation19_spill] sm:$0xff] %v8940_v34  ;;  %v4707_v61 = vmul.f32 %v4477_v63, %v8743_v51  ;;  %v4185_v52 = vadd.f32 %v4184_v58, %v4183_v9  ;;  %v4969_v26 = vsub.f32 %v8897_v49, %v9877_v48  ;;  %v3875_v46 = vsel %vm3769_vm2, %v8903_v13, 0.0 }
 0x42e   : > { %v4481_v1 = vmul.f32 0.5, %v4480_v21  ;;  %v8962_v32 = vadd.f32 1e-05, %v4326_v59  ;;  %v4008_v5 = vmul.f32 %v3874_v30, %v6300_v37  ;;  %4965 = vmatpush.msrb.mxu1 %v4964_v57  ;;  %v3876_v14 = vrot.slane %v3875_v46, 4  ;;  %v4763_v21 = vld [vmem:[%s9768_s3 + $0x8] sm:$0xff]  ;;  %v4762_v57 = vld [vmem:[%s9768_s3] sm:$0xff] }
 0x42f   : > { %v8966_v58 = vmul.f32 %v4467_v7, %v8707_v28  ;;  %v4186_v51 = vrot.slane %v4185_v52, 1  ;;  %v4970_v9 = vand.u32 4294901760, %v4969_v26  ;;  %v8968_v63 = vand.u32 4294901760, %v4764_v42 }
 0x430   : > { %v4482_v31 = vsub.f32 1.5, %v4481_v1  ;;  %vm4484_vm11 = vweird.f32 %v8863_v24  ;;  %5738 = vrsqrt.f32 %v8962_v32  ;;  %v8973_v6 = vsub.f32 %v8837_v8, %v4008_v5 }
 0x431   : > { %v8978_v59 = vpop.eup %5736  ;;  %vm4485_vm12 = vweird.f32 %v8906_v17  ;;  %v4187_v28 = vadd.f32 %v4186_v51, %v4185_v52  ;;  %4971 = vmatpush.msrb.mxu1 %v4970_v9  ;;  %v3877_v7 = vadd.f32 %v3876_v14, %v3875_v46  ;;  %v8982_v30 = vsub.f32 %v4764_v42, %v8968_v63  ;;  %5079 = vmatpush.msrb.mxu3 %v8968_v63  ;;  %v9021_v34 = vpop.f32.mrf.mxu3 }
 0x432   : > { %v4739_v8 = vmax.f32 %v4707_v61, 0.0  ;;  %v4483_v26 = vmul.f32 %v8906_v17, %v4482_v31  ;;  %v4489_v1 = vmul.f32 %v8978_v59, %v8916_v10  ;;  %v4072_v5 = vmul.f32 %v8973_v6, %v8973_v6  ;;  %4896 = vmatpush.msrb.mxu0 %v8968_v63  ;;  %vm9004_vm15 = vmor %vm4484_vm11, %vm4485_vm12  ;;  %v9019_v24 = vpop.f32.mrf.mxu2 }
 0x433   : > { %v4327_v42 = vmul.f32 %v4187_v28, %v6300_v37  ;;  %v3878_v52 = vrot.slane %v3877_v7, 2  ;;  %v8996_v14 = vand.u32 4294901760, %v4763_v21  ;;  %5032 = vmatpush.msrb.mxu2 %v8982_v30  ;;  %v9010_v28 = vand.u32 4294901760, %v4762_v57 }
 0x434   : > { %v4490_v9 = vmul.f32 %v8978_v59, %v4489_v1  ;;  %v4188_v31 = vsel %vm3769_vm2, %v4072_v5, 0.0  ;;  %v4487_v48 = vsel %vm9004_vm15, %v8906_v17, %v4483_v26  ;;  %v10190_v38 = vand.u32 4294901760, %v8982_v30 }
 0x435   : > { %v9015_v22 = vadd.f32 1e-05, %v4327_v42  ;;  %v4189_v61 = vrot.slane %v4188_v31, 4  ;;  %v3879_v46 = vadd.f32 %v3878_v52, %v3877_v7  ;;  %5081 = vmatpush.msrb.mxu3 %v8996_v14  ;;  %4898 = vmatpush.msrb.mxu0 %v8996_v14  ;;  %v9029_v17 = vsub.f32 %v4763_v21, %v8996_v14 }
 0x436   : > { %v9023_v1 = vpop.eup %5738  ;;  %v4491_v5 = vmul.f32 0.5, %v4490_v9  ;;  %v4975_v51 = vsub.f32 %v8982_v30, %v10190_v38  ;;  %v9032_v7 = vsub.f32 %v4762_v57, %v9010_v28  ;;  %v9034_v26 = vrot.slane %v4739_v8, 7 }
 0x437   : > { %vm4494_vm3 = vweird.f32 %v8916_v10  ;;  %v4499_v42 = vmul.f32 %v9023_v1, %v8962_v32  ;;  %5740 = vrsqrt.f32 %v9015_v22  ;;  %5083 = vmatpush.msrb.mxu3 %v9010_v28  ;;  %4900 = vmatpush.msrb.mxu0 %v9010_v28  ;;  %vm4495_vm4 = vweird.f32 %v8978_v59 }
 0x438   : > { %v4492_v38 = vsub.f32 1.5, %v4491_v5  ;;  %v4190_v21 = vadd.f32 %v4189_v61, %v4188_v31  ;;  %v3880_v52 = vrot.slane %v3879_v46, 1  ;;  %5035 = vmatpush.msrb.mxu2 %v9029_v17  ;;  %v10191_v57 = vand.u32 4294901760, %v8643_v47  ;;  %vm4496_vm6 = vmor %vm4494_vm3, %vm4495_vm4 }
 0x439   : > { %v4708_v8 = vmul.f32 %v4487_v48, %v8774_v0  ;;  %v4500_v9 = vmul.f32 %v9023_v1, %v4499_v42  ;;  %v4976_v25 = vand.u32 4294901760, %v4975_v51  ;;  %v4980_v4 = vand.u32 4294901760, %v9029_v17 }
 0x43a   : > { %5120 = vmatpush.msra.mxu0 %v10191_v57  ;;  %v4493_v41 = vmul.f32 %v8978_v59, %v4492_v38  ;;  %v4191_v15 = vrot.slane %v4190_v21, 2  ;;  %v3881_v5 = vadd.f32 %v3880_v52, %v3879_v46  ;;  %v4986_v35 = vand.u32 4294901760, %v9032_v7  ;;  %5038 = vmatpush.msrb.mxu2 %v9032_v7 }
 0x43b   : > { %v10192_v61 = vand.u32 4294901760, %v8696_v19  ;;  %v4501_v47 = vmul.f32 0.5, %v4500_v9  ;;  %vm4505_vm9 = vweird.f32 %v9023_v1  ;;  %4977 = vmatpush.msrb.mxu1 %v4976_v25  ;;  %v4981_v0 = vsub.f32 %v9029_v17, %v4980_v4 }
 0x43c   : > { %v4869_v48 = vsel %vm3769_vm2, %v8843_v36, 0  ;;  %v4497_v46 = vsel %vm4496_vm6, %v8978_v59, %v4493_v41  ;;  %v4192_v19 = vadd.f32 %v4191_v15, %v4190_v21  ;;  %v4009_v31 = vmul.f32 %v3881_v5, %v6300_v37  ;;  %v3569_v36 = vpop.f32.mrf.mxu2  ;;  %v9076_v41 = vpop.f32.mrf.mxu3 }
 0x43d   : > { %5124 = vmatpush.msra.mxu0 %v10192_v61  ;;  %v4987_v10 = vsub.f32 %v9032_v7, %v4986_v35  ;;  %v10193_v51 = vand.u32 4294901760, %v8797_v16  ;;  %v9071_v25 = vpop.eup %5740  ;;  %v4709_v42 = vmul.f32 %v4497_v46, %v8812_v54  ;;  %v4502_v38 = vsub.f32 1.5, %v4501_v47 }
 0x43e   : > { %v4982_v52 = vand.u32 4294901760, %v4981_v0  ;;  %v9074_v57 = vand.u32 4294901760, %v4869_v48  ;;  %vm4504_vm10 = vweird.f32 %v8962_v32  ;;  %v4509_v15 = vmul.f32 %v9071_v25, %v9015_v22 }
 0x43f   : > { %5128 = vmatpush.msra.mxu0 %v10193_v51  ;;  %v4193_v59 = vrot.slane %v4192_v19, 1  ;;  %v9082_v16 = vsub.f32 %v8903_v13, %v4009_v31  ;;  %v10194_v21 = vand.u32 4294901760, %v8884_v29  ;;  %v4740_v54 = vmax.f32 %v4708_v8, 0.0  ;;  %vm4506_vm11 = vmor %vm4504_vm10, %vm4505_vm9 }
 0x440   : > { %v4503_v9 = vmul.f32 %v9023_v1, %v4502_v38  ;;  %4983 = vmatpush.msrb.mxu1 %v4982_v52  ;;  %v4988_v5 = vand.u32 4294901760, %v4987_v10  ;;  %v4902_v61 = vsub.f32 %v4869_v48, %v9074_v57  ;;  %v4510_v32 = vmul.f32 %v9071_v25, %v4509_v15 }
 0x441   : > { %5132 = vmatpush.msra.mxu0 %v10194_v21  ;;  %v4194_v47 = vadd.f32 %v4193_v59, %v4192_v19  ;;  %v4073_v13 = vmul.f32 %v9082_v16, %v9082_v16  ;;  %v3558_v29 = vadd.f32 %v8889_v2, %v8476_v40  ;;  %v10195_v8 = vand.u32 4294901760, %v8897_v49 }
 0x442   : > { %v4741_v0 = vmax.f32 %v4709_v42, 0.0  ;;  %v4507_v46 = vsel %vm4506_vm11, %v9023_v1, %v4503_v9  ;;  %4989 = vmatpush.msrb.mxu1 %v4988_v5  ;;  %5041 = vmatmul.f32.vlgmr.msrb.gmra.mxu2 %v4902_v61  ;;  %v4903_v48 = vand.u32 4294901760, %v4902_v61  ;;  %v3562_v31 = vadd.f32 %v8958_v33, %v8483_v43 }
 0x443   : > { %5136 = vmatpush.msra.mxu0 %v10195_v8  ;;  %v4710_v19 = vmul.f32 %v4507_v46, %v8827_v23  ;;  %v4511_v10 = vmul.f32 0.5, %v4510_v32  ;;  %v4328_v51 = vmul.f32 %v4194_v47, %v6300_v37  ;;  %v4195_v38 = vsel %vm3769_vm2, %v4073_v13, 0.0  ;;  %4991 = vmatmul.f32.vlgmr.msrb.gmra.mxu1 %v9074_v57 }
 0x444   : > { %v10196_v40 = vand.u32 4294901760, %v8982_v30  ;;  %v10197_v2 = vmax.f32 %v8966_v58, 0.0  ;;  %v4196_v1 = vrot.slane %v4195_v38, 4  ;;  %v9111_v43 = vadd.f32 %v8832_v12, %v3558_v29  ;;  %5087 = vmatmul.f32.vlgmr.msrb.gmra.mxu3 %v4903_v48  ;;  %5175 = vmatpush.msra.mxu1 %v8629_v56  ;;  %v3573_v59 = vpop.f32.mrf.mxu2  ;;  %v9125_v56 = vpop.f32.mrf.mxu3 }
 0x445   : > { %v4904_v23 = vsub.f32 %v4902_v61, %v4903_v48  ;;  %v4829_v33 = vrot.slane %v4740_v54, 6  ;;  %v4742_v42 = vmax.f32 %v4710_v19, 0.0  ;;  %v9114_v52 = vadd.f32 1e-05, %v4328_v51 }
 0x446   : > { %5140 = vmatpush.msra.mxu0 %v10196_v40  ;;  %v4828_v49 = vsel %vm4807_vm0, %v9034_v26, %v10197_v2  ;;  %v9117_v30 = vadd.f32 %v8891_v45, %v3562_v31  ;;  %v4197_v58 = vadd.f32 %v4196_v1, %v4195_v38  ;;  %v3882_v26 = vsel %vm3769_vm2, %v9111_v43, 0.0  ;;  %5177 = vmatpush.msra.mxu1 %v8683_v3 }
 0x447   : > { %v4905_v12 = vand.u32 4294901760, %v4904_v23  ;;  %v3566_v15 = vadd.f32 %v9019_v24, %v8498_v50  ;;  %v4831_v21 = vrot.slane %v4741_v0, 5  ;;  %v4512_v54 = vsub.f32 1.5, %v4511_v10 }
 0x448   : > { %5144 = vmatpush.msra.mxu0 %v4980_v4  ;;  %vm4514_vm12 = vweird.f32 %v9015_v22  ;;  %5742 = vrsqrt.f32 %v9114_v52  ;;  %v4198_v4 = vrot.slane %v4197_v58, 2  ;;  %v3883_v45 = vrot.slane %v3882_v26, 4  ;;  %5179 = vmatpush.msra.mxu1 %v8787_v20 }
 0x449   : > { %4906 = vmatmul.f32.vlgmr.msrb.gmra.mxu0 %v4905_v12  ;;  %v3889_v50 = vsel %vm3769_vm2, %v9117_v30, 0.0  ;;  %v9135_v24 = vadd.f32 %v8960_v44, %v3566_v15  ;;  %v4830_v3 = vsel %vm4810_vm5, %v4829_v33, %v4828_v49  ;;  %vm4515_vm15 = vweird.f32 %v9071_v25 }
 0x44a   : > { %5148 = vmatpush.msra.mxu0 %v4986_v35  ;;  %v3890_v17 = vrot.slane %v3889_v50, 4  ;;  %v3570_v9 = vadd.f32 %v3569_v36, %v8507_v18  ;;  %v4833_v7 = vrot.slane %v4742_v42, 4  ;;  %v4199_v35 = vadd.f32 %v4198_v4, %v4197_v58  ;;  %5181 = vmatpush.msra.mxu1 %v8869_v60  ;;  %vm9166_vm4 = vmor %vm4514_vm12, %vm4515_vm15 }
 0x44b   : > { %v3884_v5 = vadd.f32 %v3883_v45, %v3882_v26  ;;  %v3896_v61 = vsel %vm3769_vm2, %v9135_v24, 0.0  ;;  %v3574_v20 = vadd.f32 %v3573_v59, %v8518_v53  ;;  %v4832_v13 = vsel %vm4813_vm8, %v4831_v21, %v4830_v3 }
 0x44c   : > { %v3891_v32 = vadd.f32 %v3890_v17, %v3889_v50  ;;  %v3897_v44 = vrot.slane %v3896_v61, 4  ;;  %v9145_v47 = vadd.f32 %v9021_v34, %v3570_v9  ;;  %v4513_v29 = vmul.f32 %v9071_v25, %v4512_v54  ;;  %5183 = vmatpush.msra.mxu1 %v8886_v62  ;;  %v3577_v19 = vpop.f32.mrf.mxu2  ;;  %v3730_v40 = vpop.f32.mrf.mxu3 }
 0x44d   : > { %v4200_v18 = vrot.slane %v4199_v35, 1  ;;  %v3885_v36 = vrot.slane %v3884_v5, 2  ;;  %v9154_v48 = vadd.f32 %v9076_v41, %v3574_v20  ;;  %v9157_v34 = vsel %vm4816_vm13, %v4833_v7, %v4832_v13 }
 0x44e   : > { %v5743_v8 = vpop.eup %5742  ;;  %v3892_v0 = vrot.slane %v3891_v32, 2  ;;  %v3898_v46 = vadd.f32 %v3897_v44, %v3896_v61  ;;  %v3903_v60 = vsel %vm3769_vm2, %v9145_v47, 0.0  ;;  %vm4524_vm3 = vweird.f32 %v9114_v52  ;;  %5185 = vmatpush.msra.mxu1 %v8968_v63 }
 0x44f   : > { %v4519_v53 = vmul.f32 %v5743_v8, %v9114_v52  ;;  %v4201_v31 = vadd.f32 %v4200_v18, %v4199_v35  ;;  %v3886_v41 = vadd.f32 %v3885_v36, %v3884_v5  ;;  %v3904_v38 = vrot.slane %v3903_v60, 4 }
 0x450   : > { %v3893_v10 = vadd.f32 %v3892_v0, %v3891_v32  ;;  %v3899_v51 = vrot.slane %v3898_v46, 2  ;;  %v4517_v2 = vsel %vm9166_vm4, %v9071_v25, %v4513_v29  ;;  %v3910_v1 = vsel %vm3769_vm2, %v9154_v48, 0.0  ;;  %5187 = vmatpush.msra.mxu1 %v8996_v14 }
 0x451   : > { %v4520_v49 = vmul.f32 %v5743_v8, %v4519_v53  ;;  %v4329_v63 = vmul.f32 %v4201_v31, %v6300_v37  ;;  %v3887_v22 = vrot.slane %v3886_v41, 1  ;;  %v3905_v42 = vadd.f32 %v3904_v38, %v3903_v60 }
 0x452   : > { %v3894_v23 = vrot.slane %v3893_v10, 1  ;;  %v3900_v33 = vadd.f32 %v3899_v51, %v3898_v46  ;;  %v3911_v12 = vrot.slane %v3910_v1, 4  ;;  %v3578_v15 = vadd.f32 %v3577_v19, %v8529_v27  ;;  %5189 = vmatpush.msra.mxu1 %v9010_v28 }
 0x453   : > { %v4521_v58 = vmul.f32 0.5, %v4520_v49  ;;  %v9177_v26 = vadd.f32 1e-05, %v4329_v63  ;;  %v3888_v25 = vadd.f32 %v3887_v22, %v3886_v41  ;;  %v3906_v54 = vrot.slane %v3905_v42, 2 }
 0x454   : > { %v3895_v59 = vadd.f32 %v3894_v23, %v3893_v10  ;;  %v3901_v21 = vrot.slane %v3900_v33, 1  ;;  %vm4525_vm6 = vweird.f32 %v5743_v8  ;;  %v3912_v14 = vadd.f32 %v3911_v12, %v3910_v1  ;;  %v3581_v35 = vpop.f32.mrf.mxu2  ;;  %v9212_v18 = vpop.f32.mrf.mxu3 }
 0x455   : > { %v4522_v4 = vsub.f32 1.5, %v4521_v58  ;;  %5744 = vrsqrt.f32 %v9177_v26  ;;  %v4010_v45 = vmul.f32 %v3888_v25, %v6300_v37  ;;  %v3907_v17 = vadd.f32 %v3906_v54, %v3905_v42  ;;  %vm4526_vm9 = vmor %vm4524_vm3, %vm4525_vm6 }
 0x456   : > { %v4011_v50 = vmul.f32 %v3895_v59, %v6300_v37  ;;  %v3902_v3 = vadd.f32 %v3901_v21, %v3900_v33  ;;  %v9185_v9 = vmul.f32 %v4517_v2, %v8867_v39  ;;  %v3913_v28 = vrot.slane %v3912_v14, 2 }
 0x457   : > { %v4523_v27 = vmul.f32 %v5743_v8, %v4522_v4  ;;  %v9188_v7 = vadd.f32 %v9125_v56, %v3578_v15  ;;  %v9193_v5 = vsub.f32 %v9111_v43, %v4010_v45  ;;  %v3908_v44 = vrot.slane %v3907_v17, 1 }
 0x458   : > { %v9196_v61 = vsub.f32 %v9117_v30, %v4011_v50  ;;  %v4012_v32 = vmul.f32 %v3902_v3, %v6300_v37  ;;  %v3914_v20 = vadd.f32 %v3913_v28, %v3912_v14  ;;  %v3582_v56 = vadd.f32 %v3581_v35, %v8532_v11 }
 0x459   : > { %v4527_v39 = vsel %vm4526_vm9, %v5743_v8, %v4523_v27  ;;  %v3917_v13 = vsel %vm3769_vm2, %v9188_v7, 0.0  ;;  %v4074_v43 = vmul.f32 %v9193_v5, %v9193_v5  ;;  %v4743_v8 = vmax.f32 %v9185_v9, 0.0 }
 0x45a   : > { %v9203_v29 = vmul.f32 %v4527_v39, %v8973_v6  ;;  %v4075_v52 = vmul.f32 %v9196_v61, %v9196_v61  ;;  %v9210_v30 = vsub.f32 %v9135_v24, %v4012_v32  ;;  %v3909_v0 = vadd.f32 %v3908_v44, %v3907_v17 }
 0x45b   : > { %v5745_v36 = vpop.eup %5744  ;;  %v3915_v46 = vrot.slane %v3914_v20, 1  ;;  %v3918_v11 = vrot.slane %v3917_v13, 4  ;;  %vm4534_vm10 = vweird.f32 %v9177_v26  ;;  %v4202_v53 = vsel %vm3769_vm2, %v4074_v43, 0.0 }
 0x45c   : > { %v4744_v6 = vmax.f32 %v9203_v29, 0.0  ;;  %v4529_v60 = vmul.f32 %v5745_v36, %v9177_v26  ;;  %v9219_v31 = vadd.f32 %v3730_v40, %v3582_v56  ;;  %v4203_v24 = vrot.slane %v4202_v53, 4  ;;  %v9229_v1 = vpop.f32.mrf.mxu2  ;;  %v9240_v35 = vpop.f32.mrf.mxu3 }
 0x45d   : > { %v4209_v19 = vsel %vm3769_vm2, %v4075_v52, 0.0  ;;  %v4076_v62 = vmul.f32 %v9210_v30, %v9210_v30  ;;  %v4013_v41 = vmul.f32 %v3909_v0, %v6300_v37  ;;  %vm4535_vm11 = vweird.f32 %v5745_v36 }
 0x45e   : > { %v4530_v10 = vmul.f32 %v5745_v36, %v4529_v60  ;;  %v4210_v51 = vrot.slane %v4209_v19, 4  ;;  %v3916_v38 = vadd.f32 %v3915_v46, %v3914_v20  ;;  %v4204_v2 = vadd.f32 %v4203_v24, %v4202_v53  ;;  %vm4536_vm12 = vmor %vm4534_vm10, %vm4535_vm11 }
 0x45f   : > { %v4216_v49 = vsel %vm3769_vm2, %v4076_v62, 0.0  ;;  %v9227_v63 = vsub.f32 %v9145_v47, %v4013_v41  ;;  %v3919_v40 = vadd.f32 %v3918_v11, %v3917_v13  ;;  %v3924_v25 = vsel %vm3769_vm2, %v9219_v31, 0.0  ;;  %v3436_v62 = vpop.f32.mrf.mxu1 }
 0x460   : > { %v4531_v22 = vmul.f32 0.5, %v4530_v10  ;;  %v4211_v23 = vadd.f32 %v4210_v51, %v4209_v19  ;;  %v4217_v33 = vrot.slane %v4216_v49, 4  ;;  %v4014_v42 = vmul.f32 %v3916_v38, %v6300_v37 }
 0x461   : > { %v4205_v58 = vrot.slane %v4204_v2, 2  ;;  %v4077_v12 = vmul.f32 %v9227_v63, %v9227_v63  ;;  %v3920_v15 = vrot.slane %v3919_v40, 2  ;;  %v3925_v50 = vrot.slane %v3924_v25, 4 }
 0x462   : > { %v4532_v59 = vsub.f32 1.5, %v4531_v22  ;;  %v4212_v21 = vrot.slane %v4211_v23, 2  ;;  %v4218_v47 = vadd.f32 %v4217_v33, %v4216_v49  ;;  %v9237_v54 = vsub.f32 %v9154_v48, %v4014_v42 }
 0x463   : > { %v4206_v4 = vadd.f32 %v4205_v58, %v4204_v2  ;;  %v4223_v14 = vsel %vm3769_vm2, %v4077_v12, 0.0  ;;  %v3921_v45 = vadd.f32 %v3920_v15, %v3919_v40  ;;  %v3926_v39 = vadd.f32 %v3925_v50, %v3924_v25 }
 0x464   : > { %v4533_v3 = vmul.f32 %v5745_v36, %v4532_v59  ;;  %v4213_v17 = vadd.f32 %v4212_v21, %v4211_v23  ;;  %v4219_v27 = vrot.slane %v4218_v47, 2  ;;  %v4224_v28 = vrot.slane %v4223_v14, 4  ;;  %v9249_v60 = vpop.f32.mrf.mxu2 }
 0x465   : > { %v4207_v32 = vrot.slane %v4206_v4, 1  ;;  %v4078_v48 = vmul.f32 %v9237_v54, %v9237_v54  ;;  %v3922_v44 = vrot.slane %v3921_v45, 1  ;;  %v3927_v51 = vrot.slane %v3926_v39, 2 }
 0x466   : > { %v4537_v20 = vsel %vm4536_vm12, %v5745_v36, %v4533_v3  ;;  %v4214_v13 = vrot.slane %v4213_v17, 1  ;;  %v4220_v56 = vadd.f32 %v4219_v27, %v4218_v47  ;;  %v4225_v43 = vadd.f32 %v4224_v28, %v4223_v14  ;;  %v9272_v47 = vpop.f32.mrf.mxu3 }
 0x467   : > { %v4713_v52 = vmul.f32 %v4537_v20, %v9082_v16  ;;  %v4208_v0 = vadd.f32 %v4207_v32, %v4206_v4  ;;  %v4230_v46 = vsel %vm3769_vm2, %v4078_v48, 0.0  ;;  %v3923_v11 = vadd.f32 %v3922_v44, %v3921_v45 }
 0x468   : > { %v4215_v26 = vadd.f32 %v4214_v13, %v4213_v17  ;;  %v4221_v53 = vrot.slane %v4220_v56, 1  ;;  %v4226_v24 = vrot.slane %v4225_v43, 2  ;;  %v4231_v19 = vrot.slane %v4230_v46, 4  ;;  %v3442_v13 = vpop.f32.mrf.mxu1 }
 0x469   : > { %v4745_v41 = vmax.f32 %v4713_v52, 0.0  ;;  %v4330_v10 = vmul.f32 %v4208_v0, %v6300_v37  ;;  %v4015_v36 = vmul.f32 %v3923_v11, %v6300_v37  ;;  %v4835_v40 = vrot.slane %v4743_v8, 3  ;;  %v10201_v11 = vld [vmem:[#allocation38_spill] sm:$0xff] }
 0x46a   : > { %v4331_v38 = vmul.f32 %v4215_v26, %v6300_v37  ;;  %v4222_v16 = vadd.f32 %v4221_v53, %v4220_v56  ;;  %v4227_v2 = vadd.f32 %v4226_v24, %v4225_v43  ;;  %v4232_v49 = vadd.f32 %v4231_v19, %v4230_v46  ;;  %v10202_v19 = vld [vmem:[#allocation4_spill] sm:$0xff] }
 0x46b   : > { %v9256_v22 = vadd.f32 1e-05, %v4330_v10  ;;  %v9259_v23 = vsub.f32 %v9188_v7, %v4015_v36  ;;  %v3928_v33 = vadd.f32 %v3927_v51, %v3926_v39  ;;  %v4837_v25 = vrot.slane %v4744_v6, 2  ;;  %v10200_v39 = vld [vmem:[#allocation35_spill] sm:$0xff] }
 0x46c   : > { %v9261_v42 = vadd.f32 1e-05, %v4331_v38  ;;  %v4332_v58 = vmul.f32 %v4222_v16, %v6300_v37  ;;  %v4228_v12 = vrot.slane %v4227_v2, 1  ;;  %v4233_v15 = vrot.slane %v4232_v49, 2  ;;  %v9277_v6 = vpop.f32.mrf.mxu2 }
 0x46d   : > { %5746 = vrsqrt.f32 %v9256_v22  ;;  %v4079_v9 = vmul.f32 %v9259_v23, %v9259_v23  ;;  %v3929_v8 = vrot.slane %v3928_v33, 1  ;;  %v4839_v59 = vrot.slane %v4745_v41, 1 }
 0x46e   : > { %5748 = vrsqrt.f32 %v9261_v42  ;;  %v9270_v7 = vadd.f32 1e-05, %v4332_v58  ;;  %v4229_v21 = vadd.f32 %v4228_v12, %v4227_v2  ;;  %v4234_v4 = vadd.f32 %v4233_v15, %v4232_v49  ;;  %v9337_v15 = vpop.f32.mrf.mxu3 }
 0x46f   : > { %v4237_v14 = vsel %vm3769_vm2, %v4079_v9, 0.0  ;;  %v3930_v45 = vadd.f32 %v3929_v8, %v3928_v33  ;;  %v3586_v29 = vadd.f32 %v9229_v1, %v8548_v55  ;;  %v4836_v50 = vsel %vm4819_vm1, %v4835_v40, %v9157_v34 }
 0x470   : > { %5750 = vrsqrt.f32 %v9270_v7  ;;  %v4333_v3 = vmul.f32 %v4229_v21, %v6300_v37  ;;  %v4238_v17 = vrot.slane %v4237_v14, 4  ;;  %v4235_v27 = vrot.slane %v4234_v4, 1 }
 0x471   : > { %v4016_v28 = vmul.f32 %v3930_v45, %v6300_v37  ;;  %v9285_v32 = vadd.f32 %v9212_v18, %v3586_v29  ;;  %v4838_v48 = vsel %vm4822_vm7, %v4837_v25, %v4836_v50  ;;  %v9292_v34 = vadd.f32 %v3436_v62, %v10200_v39 }
 0x472   : > { %v9288_v44 = vadd.f32 1e-05, %v4333_v3  ;;  %v4239_v55 = vadd.f32 %v4238_v17, %v4237_v14  ;;  %v4840_v1 = vsel %vm9879_vm14, %v4839_v59, %v4838_v48  ;;  %v4236_v56 = vadd.f32 %v4235_v27, %v4234_v4 }
 0x473   : > { %v9294_v20 = vpop.eup %5746  ;;  %v9297_v43 = vsub.f32 %v9219_v31, %v4016_v28  ;;  %v3931_v18 = vsel %vm3769_vm2, %v9285_v32, 0.0  ;;  %v4871_v52 = vsel %vm3769_vm2, %v4840_v1, 0  ;;  %vm4544_vm15 = vweird.f32 %v9256_v22 }
 0x474   : > { %v9302_v0 = vpop.eup %5748  ;;  %v4539_v46 = vmul.f32 %v9294_v20, %v9256_v22  ;;  %5752 = vrsqrt.f32 %v9288_v44  ;;  %v9309_v26 = vadd.f32 %v3442_v13, %v10201_v11  ;;  %vm4554_vm3 = vweird.f32 %v9261_v42  ;;  %v9333_v49 = vpop.f32.mrf.mxu2 }
 0x475   : > { %v4549_v31 = vmul.f32 %v9302_v0, %v9261_v42  ;;  %v4334_v53 = vmul.f32 %v4236_v56, %v6300_v37  ;;  %v4240_v24 = vrot.slane %v4239_v55, 2  ;;  %v9317_v62 = vadd.f32 %v9249_v60, %v10202_v19 }
 0x476   : > { %v9319_v41 = vpop.eup %5750  ;;  %v4540_v10 = vmul.f32 %v9294_v20, %v4539_v46  ;;  %v4080_v36 = vmul.f32 %v9297_v43, %v9297_v43  ;;  %v3932_v51 = vrot.slane %v3931_v18, 4  ;;  %v9324_v38 = vand.u32 4294901760, %v4871_v52 }
 0x477   : > { %vm4545_vm4 = vweird.f32 %v9294_v20  ;;  %v4550_v16 = vmul.f32 %v9302_v0, %v4549_v31  ;;  %v4559_v2 = vmul.f32 %v9319_v41, %v9270_v7  ;;  %vm4564_vm6 = vweird.f32 %v9270_v7  ;;  %v9375_v7 = vpop.f32.mrf.mxu3 }
 0x478   : > { %v9331_v60 = vadd.f32 1e-05, %v4334_v53  ;;  %v4541_v40 = vmul.f32 0.5, %v4540_v10  ;;  %v4241_v33 = vadd.f32 %v4240_v24, %v4239_v55  ;;  %v4244_v58 = vsel %vm3769_vm2, %v4080_v36, 0.0  ;;  %4995 = vmatmul.f32.gmra.mxu1 %v9324_v38  ;;  %vm4546_vm12 = vmor %vm4544_vm15, %vm4545_vm4 }
 0x479   : > { %v3933_v12 = vadd.f32 %v3932_v51, %v3931_v18  ;;  %v4551_v25 = vmul.f32 0.5, %v4550_v16  ;;  %vm4555_vm9 = vweird.f32 %v9302_v0  ;;  %v4560_v9 = vmul.f32 %v9319_v41, %v4559_v2 }
 0x47a   : > { %5754 = vrsqrt.f32 %v9331_v60  ;;  %v5753_v8 = vpop.eup %5752  ;;  %v4542_v59 = vsub.f32 1.5, %v4541_v40  ;;  %v4242_v21 = vrot.slane %v4241_v33, 1  ;;  %v4245_v4 = vrot.slane %v4244_v58, 4  ;;  %vm4556_vm14 = vmor %vm4554_vm3, %vm4555_vm9 }
 0x47b   : > { %v3934_v14 = vrot.slane %v3933_v12, 2  ;;  %v4552_v45 = vsub.f32 1.5, %v4551_v25  ;;  %v4561_v29 = vmul.f32 0.5, %v4560_v9  ;;  %vm4565_vm10 = vweird.f32 %v9319_v41 }
 0x47c   : > { %v4569_v50 = vmul.f32 %v5753_v8, %v9288_v44  ;;  %vm4574_vm11 = vweird.f32 %v9288_v44  ;;  %v4543_v3 = vmul.f32 %v9294_v20, %v4542_v59  ;;  %v4243_v17 = vadd.f32 %v4242_v21, %v4241_v33  ;;  %vm4566_vm15 = vmor %vm4564_vm6, %vm4565_vm10 }
 0x47d   : > { %v4246_v27 = vadd.f32 %v4245_v4, %v4244_v58  ;;  %v3935_v28 = vadd.f32 %v3934_v14, %v3933_v12  ;;  %v4553_v48 = vmul.f32 %v9302_v0, %v4552_v45  ;;  %v4562_v55 = vsub.f32 1.5, %v4561_v29 }
 0x47e   : > { %v4570_v1 = vmul.f32 %v5753_v8, %v4569_v50  ;;  %v4910_v39 = vsub.f32 %v4871_v52, %v9324_v38  ;;  %v4547_v13 = vsel %vm4546_vm12, %v9294_v20, %v4543_v3  ;;  %v4335_v56 = vmul.f32 %v4243_v17, %v6300_v37  ;;  %v9361_v52 = vpop.f32.mrf.mxu2  ;;  %v3448_v3 = vpop.f32.mrf.mxu1 }
 0x47f   : > { %v4247_v18 = vrot.slane %v4246_v27, 2  ;;  %v3936_v46 = vrot.slane %v3935_v28, 1  ;;  %v4714_v22 = vmul.f32 %v4547_v13, %v9193_v5  ;;  %v4557_v31 = vsel %vm4556_vm14, %v9302_v0, %v4553_v48 }
 0x480   : > { %v5755_v11 = vpop.eup %5754  ;;  %v4563_v53 = vmul.f32 %v9319_v41, %v4562_v55  ;;  %v4571_v24 = vmul.f32 0.5, %v4570_v1  ;;  %5046 = vmatmul.f32.gmra.mxu2 %v4910_v39  ;;  %v4715_v20 = vmul.f32 %v4557_v31, %v9196_v61  ;;  %vm4575_vm3 = vweird.f32 %v5753_v8 }
 0x481   : > { %v4579_v42 = vmul.f32 %v5755_v11, %v9331_v60  ;;  %vm4584_vm4 = vweird.f32 %v9331_v60  ;;  %v9370_v5 = vadd.f32 1e-05, %v4335_v56  ;;  %vm4585_vm14 = vweird.f32 %v5755_v11  ;;  %vm4576_vm6 = vmor %vm4574_vm11, %vm4575_vm3 }
 0x482   : > { %v4567_v0 = vsel %vm4566_vm15, %v9319_v41, %v4563_v53  ;;  %v4572_v19 = vsub.f32 1.5, %v4571_v24  ;;  %v4248_v10 = vadd.f32 %v4247_v18, %v4246_v27  ;;  %v4747_v36 = vmax.f32 %v4715_v20, 0.0  ;;  %vm4586_vm9 = vmor %vm4584_vm4, %vm4585_vm14 }
 0x483   : > { %v4716_v61 = vmul.f32 %v4567_v0, %v9210_v30  ;;  %v4580_v51 = vmul.f32 %v5755_v11, %v4579_v42  ;;  %5756 = vrsqrt.f32 %v9370_v5  ;;  %v4746_v16 = vmax.f32 %v4714_v22, 0.0  ;;  %v10204_v42 = vld [vmem:[#allocation49_spill] sm:$0xff] }
 0x484   : > { %v4573_v2 = vmul.f32 %v5753_v8, %v4572_v19  ;;  %v4249_v40 = vrot.slane %v4248_v10, 1  ;;  %v3937_v33 = vadd.f32 %v3936_v46, %v3935_v28  ;;  %v4841_v58 = vrot.slane %v4747_v36, 7  ;;  %v3754_v19 = vpop.f32.mrf.mxu3 }
 0x485   : > { %v4748_v12 = vmax.f32 %v4716_v61, 0.0  ;;  %v4581_v41 = vmul.f32 0.5, %v4580_v51  ;;  %v9382_v25 = vadd.f32 %v9240_v35, %v9317_v62  ;;  %v4911_v21 = vand.u32 4294901760, %v4910_v39  ;;  %v10205_v61 = vld [vmem:[#allocation20_spill] sm:$0xff] }
 0x486   : > { %v4577_v30 = vsel %vm4576_vm6, %v5753_v8, %v4573_v2  ;;  %v4250_v9 = vadd.f32 %v4249_v40, %v4248_v10  ;;  %v4017_v59 = vmul.f32 %v3937_v33, %v6300_v37  ;;  %v4842_v4 = vsel %vm4807_vm0, %v4841_v58, %v4746_v16  ;;  %v3605_v55 = vpop.f32.mrf.mxu2 }
 0x487   : > { %v4843_v14 = vrot.slane %v4748_v12, 6  ;;  %v4717_v45 = vmul.f32 %v4577_v30, %v9227_v63  ;;  %v4582_v29 = vsub.f32 1.5, %v4581_v41  ;;  %v3938_v35 = vsel %vm3769_vm2, %v9382_v25, 0.0  ;;  %5093 = vmatmul.f32.gmra.mxu3 %v4911_v21 }
 0x488   : > { %v4336_v50 = vmul.f32 %v4250_v9, %v6300_v37  ;;  %v9389_v44 = vsub.f32 %v9285_v32, %v4017_v59  ;;  %v4912_v62 = vsub.f32 %v4910_v39, %v4911_v21  ;;  %v3939_v48 = vrot.slane %v3938_v35, 4  ;;  %v10203_v39 = vld [vmem:[#allocation6_spill] sm:$0xff] }
 0x489   : > { %v5757_v8 = vpop.eup %5756  ;;  %v4844_v17 = vsel %vm4810_vm5, %v4843_v14, %v4842_v4  ;;  %v4749_v27 = vmax.f32 %v4717_v45, 0.0  ;;  %v4583_v28 = vmul.f32 %v5755_v11, %v4582_v29  ;;  %v9403_v13 = vadd.f32 %v3448_v3, %v10203_v39 }
 0x48a   : > { %v4589_v63 = vmul.f32 %v5757_v8, %v9370_v5  ;;  %v9398_v32 = vadd.f32 1e-05, %v4336_v50  ;;  %v4081_v1 = vmul.f32 %v9389_v44, %v9389_v44  ;;  %v3940_v46 = vadd.f32 %v3939_v48, %v3938_v35 }
 0x48b   : > { %v4845_v56 = vrot.slane %v4749_v27, 5  ;;  %v4587_v18 = vsel %vm4586_vm9, %v5755_v11, %v4583_v28  ;;  %v4913_v22 = vand.u32 4294901760, %v4912_v62  ;;  %vm4595_vm10 = vweird.f32 %v5757_v8 }
 0x48c   : > { %v4718_v31 = vmul.f32 %v4587_v18, %v9237_v54  ;;  %v4590_v53 = vmul.f32 %v5757_v8, %v4589_v63  ;;  %5758 = vrsqrt.f32 %v9398_v32  ;;  %v4251_v24 = vsel %vm3769_vm2, %v4081_v1, 0.0  ;;  %v3758_v39 = vpop.f32.mrf.mxu3 }
 0x48d   : > { %v4846_v60 = vsel %vm4813_vm8, %v4845_v56, %v4844_v17  ;;  %v3941_v20 = vrot.slane %v3940_v46, 2  ;;  %4914 = vmatmul.f32.gmra.mxu0 %v4913_v22  ;;  %v3594_v0 = vadd.f32 %v9277_v6, %v10204_v42  ;;  %v4252_v36 = vrot.slane %v4251_v24, 4 }
 0x48e   : > { %v4750_v10 = vmax.f32 %v4718_v31, 0.0  ;;  %v4591_v11 = vmul.f32 0.5, %v4590_v53  ;;  %v3598_v54 = vadd.f32 %v9333_v49, %v10205_v61  ;;  %v3602_v2 = vadd.f32 %v9361_v52, %v9292_v34 }
 0x48f   : > { %v3942_v51 = vadd.f32 %v3941_v20, %v3940_v46  ;;  %v9414_v16 = vadd.f32 %v9272_v47, %v3594_v0  ;;  %v3606_v40 = vadd.f32 %v3605_v55, %v9309_v26  ;;  %v4253_v12 = vadd.f32 %v4252_v36, %v4251_v24  ;;  %v3454_v55 = vpop.f32.mrf.mxu1  ;;  %v3247_v20 = vpop.f32.mrf.mxu0 }
 0x490   : > { %v4847_v33 = vrot.slane %v4750_v10, 4  ;;  %v4592_v58 = vsub.f32 1.5, %v4591_v11  ;;  %v9420_v6 = vadd.f32 %v9337_v15, %v3598_v54  ;;  %vm4594_vm11 = vweird.f32 %v9370_v5 }
 0x491   : > { %v3943_v41 = vrot.slane %v3942_v51, 1  ;;  %v3945_v49 = vsel %vm3769_vm2, %v9414_v16, 0.0  ;;  %v9426_v47 = vadd.f32 %v9375_v7, %v3602_v2  ;;  %v4254_v52 = vrot.slane %v4253_v12, 2  ;;  %vm4596_vm12 = vmor %vm4594_vm11, %vm4595_vm10  ;;  %v3609_v7 = vpop.f32.mrf.mxu2 }
 0x492   : > { %v9428_v30 = vpop.eup %5758  ;;  %v4848_v34 = vsel %vm4816_vm13, %v4847_v33, %v4846_v60  ;;  %v4593_v26 = vmul.f32 %v5757_v8, %v4592_v58  ;;  %v3946_v9 = vrot.slane %v3945_v49, 4  ;;  %v3952_v59 = vsel %vm3769_vm2, %v9420_v6, 0.0  ;;  %v10206_v33 = vld [vmem:[#allocation45_spill] sm:$0xff] }
 0x493   : > { %v4599_v15 = vmul.f32 %v9428_v30, %v9398_v32  ;;  %v3944_v5 = vadd.f32 %v3943_v41, %v3942_v51  ;;  %v9436_v21 = vadd.f32 %v3754_v19, %v3606_v40  ;;  %vm4605_vm15 = vweird.f32 %v9428_v30 }
 0x494   : > { %v4597_v4 = vsel %vm4596_vm12, %v5757_v8, %v4593_v26  ;;  %v4255_v14 = vadd.f32 %v4254_v52, %v4253_v12  ;;  %v3947_v45 = vadd.f32 %v3946_v9, %v3945_v49  ;;  %v3953_v29 = vrot.slane %v3952_v59, 4  ;;  %v10207_v52 = vld [vmem:[#allocation19_spill] sm:$0xff] }
 0x495   : > { %v4719_v50 = vmul.f32 %v4597_v4, %v9259_v23  ;;  %v4600_v35 = vmul.f32 %v9428_v30, %v4599_v15  ;;  %v4018_v62 = vmul.f32 %v3944_v5, %v6300_v37  ;;  %v3959_v3 = vsel %vm3769_vm2, %v9426_v47, 0.0 }
 0x496   : > { %v4256_v17 = vrot.slane %v4255_v14, 1  ;;  %v3948_v27 = vrot.slane %v3947_v45, 2  ;;  %v3954_v28 = vadd.f32 %v3953_v29, %v3952_v59  ;;  %v3960_v48 = vrot.slane %v3959_v3, 4 }
 0x497   : > { %v4751_v8 = vmax.f32 %v4719_v50, 0.0  ;;  %v4601_v63 = vmul.f32 0.5, %v4600_v35  ;;  %v9445_v1 = vsub.f32 %v9382_v25, %v4018_v62  ;;  %v3966_v23 = vsel %vm3769_vm2, %v9436_v21, 0.0  ;;  %v3460_v29 = vpop.f32.mrf.mxu1 }
 0x498   : > { %v4257_v56 = vadd.f32 %v4256_v17, %v4255_v14  ;;  %v3949_v18 = vadd.f32 %v3948_v27, %v3947_v45  ;;  %v3955_v46 = vrot.slane %v3954_v28, 2  ;;  %v3961_v22 = vadd.f32 %v3960_v48, %v3959_v3  ;;  %v3762_v17 = vpop.f32.mrf.mxu3 }
 0x499   : > { %v4849_v31 = vrot.slane %v4751_v8, 3  ;;  %v4602_v53 = vsub.f32 1.5, %v4601_v63  ;;  %v4082_v60 = vmul.f32 %v9445_v1, %v9445_v1  ;;  %v3967_v24 = vrot.slane %v3966_v23, 4  ;;  %v3613_v26 = vpop.f32.mrf.mxu2 }
 0x49a   : > { %v4337_v42 = vmul.f32 %v4257_v56, %v6300_v37  ;;  %v3950_v0 = vrot.slane %v3949_v18, 1  ;;  %v3956_v25 = vadd.f32 %v3955_v46, %v3954_v28  ;;  %v3962_v19 = vrot.slane %v3961_v22, 2 }
 0x49b   : > { %v9453_v10 = vsel %vm4819_vm1, %v4849_v31, %v4848_v34  ;;  %v4603_v11 = vmul.f32 %v9428_v30, %v4602_v53  ;;  %v4258_v36 = vsel %vm3769_vm2, %v4082_v60, 0.0  ;;  %v3968_v61 = vadd.f32 %v3967_v24, %v3966_v23 }
 0x49c   : > { %v9457_v54 = vadd.f32 1e-05, %v4337_v42  ;;  %v4259_v51 = vrot.slane %v4258_v36, 4  ;;  %v3951_v2 = vadd.f32 %v3950_v0, %v3949_v18  ;;  %v3957_v40 = vrot.slane %v3956_v25, 1 }
 0x49d   : > { %v3248_v58 = vadd.f32 %v3247_v20, %v10206_v33  ;;  %v3963_v12 = vadd.f32 %v3962_v19, %v3961_v22  ;;  %v3969_v41 = vrot.slane %v3968_v61, 2  ;;  %v3610_v49 = vadd.f32 %v3609_v7, %v9403_v13 }
 0x49e   : > { %vm4604_vm3 = vweird.f32 %v9398_v32  ;;  %5760 = vrsqrt.f32 %v9457_v54  ;;  %v4260_v34 = vadd.f32 %v4259_v51, %v4258_v36  ;;  %v3455_v9 = vadd.f32 %v3454_v55, %v10207_v52 }
 0x49f   : > { %vm9466_vm4 = vmor %vm4604_vm3, %vm4605_vm15  ;;  %v4019_v5 = vmul.f32 %v3951_v2, %v6300_v37  ;;  %v3958_v59 = vadd.f32 %v3957_v40, %v3956_v25  ;;  %v3964_v4 = vrot.slane %v3963_v12, 1  ;;  %v3970_v14 = vadd.f32 %v3969_v41, %v3968_v61 }
 0x4a0   : > { %v4607_v32 = vsel %vm9466_vm4, %v9428_v30, %v4603_v11  ;;  %v4261_v13 = vrot.slane %v4260_v34, 2  ;;  %v9474_v7 = vadd.f32 %v3758_v39, %v3610_v49  ;;  %v3614_v45 = vadd.f32 %v3613_v26, %v3455_v9 }
 0x4a1   : > { %v9477_v50 = vsub.f32 %v9414_v16, %v4019_v5  ;;  %v4020_v35 = vmul.f32 %v3958_v59, %v6300_v37  ;;  %v3965_v62 = vadd.f32 %v3964_v4, %v3963_v12  ;;  %v3971_v3 = vrot.slane %v3970_v14, 1  ;;  %v3617_v33 = vpop.f32.mrf.mxu2 }
 0x4a2   : > { %v4262_v27 = vadd.f32 %v4261_v13, %v4260_v34  ;;  %v3973_v28 = vsel %vm3769_vm2, %v9474_v7, 0.0  ;;  %v9482_v48 = vadd.f32 %v3762_v17, %v3614_v45  ;;  %v3461_v30 = vadd.f32 %v3460_v29, %v3248_v58 }
 0x4a3   : > { %v4083_v55 = vmul.f32 %v9477_v50, %v9477_v50  ;;  %v9487_v8 = vsub.f32 %v9420_v6, %v4020_v35  ;;  %v4021_v16 = vmul.f32 %v3965_v62, %v6300_v37  ;;  %v3972_v63 = vadd.f32 %v3971_v3, %v3970_v14 }
 0x4a4   : > { %v5761_v23 = vpop.eup %5760  ;;  %v9491_v39 = vmul.f32 %v4607_v32, %v9297_v43  ;;  %v4263_v56 = vrot.slane %v4262_v27, 1  ;;  %v3974_v18 = vrot.slane %v3973_v28, 4  ;;  %v3980_v46 = vsel %vm3769_vm2, %v9482_v48, 0.0 }
 0x4a5   : > { %v4609_v22 = vmul.f32 %v5761_v23, %v9457_v54  ;;  %vm4614_vm14 = vweird.f32 %v9457_v54  ;;  %vm4615_vm6 = vweird.f32 %v5761_v23  ;;  %v4265_v6 = vsel %vm3769_vm2, %v4083_v55, 0.0  ;;  %v3766_v54 = vpop.f32.mrf.mxu3 }
 0x4a6   : > { %v4084_v31 = vmul.f32 %v9487_v8, %v9487_v8  ;;  %v4264_v53 = vadd.f32 %v4263_v56, %v4262_v27  ;;  %v4266_v60 = vrot.slane %v4265_v6, 4  ;;  %v9501_v43 = vsub.f32 %v9426_v47, %v4021_v16  ;;  %vm4616_vm9 = vmor %vm4614_vm14, %vm4615_vm6 }
 0x4a7   : > { %v4022_v24 = vmul.f32 %v3972_v63, %v6300_v37  ;;  %v4610_v20 = vmul.f32 %v5761_v23, %v4609_v22  ;;  %v3975_v0 = vadd.f32 %v3974_v18, %v3973_v28  ;;  %v3981_v25 = vrot.slane %v3980_v46, 4 }
 0x4a8   : > { %v4272_v42 = vsel %vm3769_vm2, %v4084_v31, 0.0  ;;  %v4338_v19 = vmul.f32 %v4264_v53, %v6300_v37  ;;  %v4267_v11 = vadd.f32 %v4266_v60, %v4265_v6  ;;  %v4085_v61 = vmul.f32 %v9501_v43, %v9501_v43 }
 0x4a9   : > { %v4273_v36 = vrot.slane %v4272_v42, 4  ;;  %v4611_v51 = vmul.f32 0.5, %v4610_v20  ;;  %v9509_v2 = vsub.f32 %v9436_v21, %v4022_v24  ;;  %v3976_v47 = vrot.slane %v3975_v0, 2 }
 0x4aa   : > { %v3982_v40 = vadd.f32 %v3981_v25, %v3980_v46  ;;  %v9511_v58 = vadd.f32 1e-05, %v4338_v19  ;;  %v4268_v12 = vrot.slane %v4267_v11, 2  ;;  %v4279_v49 = vsel %vm3769_vm2, %v4085_v61, 0.0 }
 0x4ab   : > { %v4274_v41 = vadd.f32 %v4273_v36, %v4272_v42  ;;  %v4612_v26 = vsub.f32 1.5, %v4611_v51  ;;  %v4280_v34 = vrot.slane %v4279_v49, 4  ;;  %v4086_v52 = vmul.f32 %v9509_v2, %v9509_v2 }
 0x4ac   : > { %v3977_v9 = vadd.f32 %v3976_v47, %v3975_v0  ;;  %5762 = vrsqrt.f32 %v9511_v58  ;;  %v4269_v15 = vadd.f32 %v4268_v12, %v4267_v11  ;;  %v3618_v5 = vadd.f32 %v3617_v33, %v3461_v30 }
 0x4ad   : > { %v4275_v21 = vrot.slane %v4274_v41, 2  ;;  %v4613_v59 = vmul.f32 %v5761_v23, %v4612_v26  ;;  %v4281_v4 = vadd.f32 %v4280_v34, %v4279_v49  ;;  %v4286_v14 = vsel %vm3769_vm2, %v4086_v52, 0.0 }
 0x4ae   : > { %v3978_v32 = vrot.slane %v3977_v9, 1  ;;  %v4270_v13 = vrot.slane %v4269_v15, 1  ;;  %v4287_v29 = vrot.slane %v4286_v14, 4  ;;  %v3983_v35 = vrot.slane %v3982_v40, 2 }
 0x4af   : > { %v4276_v45 = vadd.f32 %v4275_v21, %v4274_v41  ;;  %v4752_v62 = vmax.f32 %v9491_v39, 0.0  ;;  %v4617_v3 = vsel %vm4616_vm9, %v5761_v23, %v4613_v59  ;;  %v4282_v17 = vrot.slane %v4281_v4, 2 }
 0x4b0   : > { %v3979_v27 = vadd.f32 %v3978_v32, %v3977_v9  ;;  %v4721_v28 = vmul.f32 %v4617_v3, %v9389_v44  ;;  %v4271_v30 = vadd.f32 %v4270_v13, %v4269_v15  ;;  %v4288_v16 = vadd.f32 %v4287_v29, %v4286_v14 }
 0x4b1   : > { %v4277_v55 = vrot.slane %v4276_v45, 1  ;;  %v4283_v63 = vadd.f32 %v4282_v17, %v4281_v4  ;;  %v3984_v18 = vadd.f32 %v3983_v35, %v3982_v40  ;;  %v9527_v39 = vadd.f32 %v3766_v54, %v3618_v5 }
 0x4b2   : > { %v4023_v56 = vmul.f32 %v3979_v27, %v6300_v37  ;;  %v9524_v46 = vpop.eup %5762  ;;  %v4339_v22 = vmul.f32 %v4271_v30, %v6300_v37  ;;  %v4289_v31 = vrot.slane %v4288_v16, 2  ;;  %v4851_v23 = vrot.slane %v4752_v62, 2 }
 0x4b3   : > { %v4278_v6 = vadd.f32 %v4277_v55, %v4276_v45  ;;  %v4619_v44 = vmul.f32 %v9524_v46, %v9511_v58  ;;  %v4284_v53 = vrot.slane %v4283_v63, 1  ;;  %v4753_v24 = vmax.f32 %v4721_v28, 0.0 }
 0x4b4   : > { %v9532_v60 = vsub.f32 %v9474_v7, %v4023_v56  ;;  %v9534_v20 = vadd.f32 1e-05, %v4339_v22  ;;  %v4290_v0 = vadd.f32 %v4289_v31, %v4288_v16  ;;  %v3985_v36 = vrot.slane %v3984_v18, 1 }
 0x4b5   : > { %v4340_v42 = vmul.f32 %v4278_v6, %v6300_v37  ;;  %v4620_v25 = vmul.f32 %v9524_v46, %v4619_v44  ;;  %v4285_v19 = vadd.f32 %v4284_v53, %v4283_v63  ;;  %v3987_v7 = vsel %vm3769_vm2, %v9527_v39, 0.0 }
 0x4b6   : > { %v4087_v11 = vmul.f32 %v9532_v60, %v9532_v60  ;;  %5764 = vrsqrt.f32 %v9534_v20  ;;  %v4291_v51 = vrot.slane %v4290_v0, 1  ;;  %v3986_v12 = vadd.f32 %v3985_v36, %v3984_v18 }
 0x4b7   : > { %v9541_v61 = vadd.f32 1e-05, %v4340_v42  ;;  %v4621_v47 = vmul.f32 0.5, %v4620_v25  ;;  %v4341_v40 = vmul.f32 %v4285_v19, %v6300_v37  ;;  %v4853_v41 = vrot.slane %v4753_v24, 1 }
 0x4b8   : > { %v4293_v33 = vsel %vm3769_vm2, %v4087_v11, 0.0  ;;  %v4292_v49 = vadd.f32 %v4291_v51, %v4290_v0  ;;  %v4024_v9 = vmul.f32 %v3986_v12, %v6300_v37  ;;  %v3988_v15 = vrot.slane %v3987_v7, 4 }
 0x4b9   : > { %5766 = vrsqrt.f32 %v9541_v61  ;;  %v4294_v26 = vrot.slane %v4293_v33, 4  ;;  %v4622_v34 = vsub.f32 1.5, %v4621_v47  ;;  %v9548_v52 = vadd.f32 1e-05, %v4341_v40 }
 0x4ba   : > { %vm4625_vm10 = vweird.f32 %v9524_v46  ;;  %v4342_v21 = vmul.f32 %v4292_v49, %v6300_v37  ;;  %v4852_v59 = vsel %vm4822_vm7, %v4851_v23, %v9453_v10  ;;  %vm4624_vm11 = vweird.f32 %v9511_v58 }
 0x4bb   : > { %v4295_v5 = vadd.f32 %v4294_v26, %v4293_v33  ;;  %v4623_v4 = vmul.f32 %v9524_v46, %v4622_v34  ;;  %5768 = vrsqrt.f32 %v9548_v52  ;;  %v9559_v14 = vsub.f32 %v9482_v48, %v4024_v9  ;;  %vm9564_vm15 = vmor %vm4624_vm11, %vm4625_vm10 }
 0x4bc   : > { %v5765_v32 = vpop.eup %5764  ;;  %v9561_v13 = vadd.f32 1e-05, %v4342_v21  ;;  %v3989_v29 = vadd.f32 %v3988_v15, %v3987_v7  ;;  %vm10210_vm12 = vcmask 1047559   ;;  %vm4634_vm3 = vweird.f32 %v9534_v20 }
 0x4bd   : > { %v4296_v45 = vrot.slane %v4295_v5, 2  ;;  %v4854_v35 = vsel %vm10210_vm12, %v4853_v41, %v4852_v59  ;;  %v4629_v10 = vmul.f32 %v5765_v32, %v9534_v20  ;;  %v4088_v58 = vmul.f32 %v9559_v14, %v9559_v14 }
 0x4be   : > { %v4627_v48 = vsel %vm9564_vm15, %v9524_v46, %v4623_v4  ;;  %5770 = vrsqrt.f32 %v9561_v13  ;;  %vm4644_vm4 = vweird.f32 %v9541_v61  ;;  %v3990_v63 = vrot.slane %v3989_v29, 2 }
 0x4bf   : > { %v5767_v3 = vpop.eup %5766  ;;  %v4297_v17 = vadd.f32 %v4296_v45, %v4295_v5  ;;  %v4630_v27 = vmul.f32 %v5765_v32, %v4629_v10  ;;  %v4300_v30 = vsel %vm3769_vm2, %v4088_v58, 0.0  ;;  %v9580_v18 = vmul.f32 %v4627_v48, %v9445_v1 }
 0x4c0   : > { %v4639_v28 = vmul.f32 %v5767_v3, %v9541_v61  ;;  %v4301_v16 = vrot.slane %v4300_v30, 4  ;;  %v4873_v22 = vsel %vm3769_vm2, %v4854_v35, 0  ;;  %vm4635_vm14 = vweird.f32 %v5765_v32 }
 0x4c1   : > { %v4298_v55 = vrot.slane %v4297_v17, 1  ;;  %v5769_v56 = vpop.eup %5768  ;;  %v4631_v54 = vmul.f32 0.5, %v4630_v27  ;;  %vm4654_vm6 = vweird.f32 %v9548_v52  ;;  %v3991_v24 = vadd.f32 %v3990_v63, %v3989_v29  ;;  %vm4636_vm11 = vmor %vm4634_vm3, %vm4635_vm14 }
 0x4c2   : > { %v4640_v46 = vmul.f32 %v5767_v3, %v4639_v28  ;;  %v4649_v6 = vmul.f32 %v5769_v56, %v9548_v52  ;;  %v4302_v23 = vadd.f32 %v4301_v16, %v4300_v30  ;;  %v9585_v42 = vand.u32 4294901760, %v4873_v22 }
 0x4c3   : > { %v4299_v31 = vadd.f32 %v4298_v55, %v4297_v17  ;;  %v4632_v44 = vsub.f32 1.5, %v4631_v54  ;;  %vm4645_vm9 = vweird.f32 %v5767_v3  ;;  %v4754_v11 = vmax.f32 %v9580_v18, 0.0 }
 0x4c4   : > { %v4641_v53 = vmul.f32 0.5, %v4640_v46  ;;  %v5771_v0 = vpop.eup %5770  ;;  %v4650_v1 = vmul.f32 %v5769_v56, %v4649_v6  ;;  %v4303_v19 = vrot.slane %v4302_v23, 2  ;;  %vm4664_vm10 = vweird.f32 %v9561_v13  ;;  %4999 = vmatmul.f32.gmra.mxu1 %v9585_v42  ;;  %vm4646_vm12 = vmor %vm4644_vm4, %vm4645_vm9 }
 0x4c5   : > { %v4343_v25 = vmul.f32 %v4299_v31, %v6300_v37  ;;  %v4633_v36 = vmul.f32 %v5765_v32, %v4632_v44  ;;  %v4659_v7 = vmul.f32 %v5771_v0, %v9561_v13  ;;  %v3992_v12 = vrot.slane %v3991_v24, 1 }
 0x4c6   : > { %v4642_v51 = vsub.f32 1.5, %v4641_v53  ;;  %v4651_v47 = vmul.f32 0.5, %v4650_v1  ;;  %v4304_v33 = vadd.f32 %v4303_v19, %v4302_v23  ;;  %v4918_v34 = vsub.f32 %v4873_v22, %v9585_v42 }
 0x4c7   : > { %v9595_v40 = vadd.f32 1e-05, %v4343_v25  ;;  %v4637_v41 = vsel %vm4636_vm11, %v5765_v32, %v4633_v36  ;;  %v4660_v26 = vmul.f32 %v5771_v0, %v4659_v7  ;;  %vm4655_vm15 = vweird.f32 %v5769_v56 }
 0x4c8   : > { %v4643_v49 = vmul.f32 %v5767_v3, %v4642_v51  ;;  %v4723_v9 = vmul.f32 %v4637_v41, %v9477_v50  ;;  %v4652_v15 = vsub.f32 1.5, %v4651_v47  ;;  %v4305_v5 = vrot.slane %v4304_v33, 1  ;;  %5051 = vmatmul.f32.gmra.mxu2 %v4918_v34  ;;  %vm4656_vm3 = vmor %vm4654_vm6, %vm4655_vm15 }
 0x4c9   : > { %5772 = vrsqrt.f32 %v9595_v40  ;;  %v4661_v21 = vmul.f32 0.5, %v4660_v26  ;;  %v3993_v59 = vadd.f32 %v3992_v12, %v3991_v24  ;;  %v4919_v29 = vand.u32 4294901760, %v4918_v34 }
 0x4ca   : > { %v4647_v20 = vsel %vm4646_vm12, %v5767_v3, %v4643_v49  ;;  %v4755_v4 = vmax.f32 %v4723_v9, 0.0  ;;  %v4653_v45 = vmul.f32 %v5769_v56, %v4652_v15  ;;  %vm4665_vm14 = vweird.f32 %v5771_v0 }
 0x4cb   : > { %v4724_v32 = vmul.f32 %v4647_v20, %v9487_v8  ;;  %v4662_v50 = vsub.f32 1.5, %v4661_v21  ;;  %v4306_v61 = vadd.f32 %v4305_v5, %v4304_v33  ;;  %v4025_v35 = vmul.f32 %v3993_v59, %v6300_v37  ;;  %5099 = vmatmul.f32.gmra.mxu3 %v4919_v29  ;;  %vm4666_vm4 = vmor %vm4664_vm10, %vm4665_vm14 }
 0x4cc   : > { %v4855_v62 = vrot.slane %v4755_v4, 7  ;;  %v4657_v58 = vsel %vm4656_vm3, %v5769_v56, %v4653_v45  ;;  %v4920_v3 = vsub.f32 %v4918_v34, %v4919_v29  ;;  %vm10213_vm12 = vcmask 1047559  }
 0x4cd   : > { %v4756_v10 = vmax.f32 %v4724_v32, 0.0  ;;  %v4725_v48 = vmul.f32 %v4657_v58, %v9501_v43  ;;  %v4663_v17 = vmul.f32 %v5771_v0, %v4662_v50  ;;  %v4344_v8 = vmul.f32 %v4306_v61, %v6300_v37 }
 0x4ce   : > { %v9610_v27 = vsub.f32 %v9527_v39, %v4025_v35  ;;  %v4856_v28 = vsel %vm4807_vm0, %v4855_v62, %v4754_v11  ;;  %v4921_v55 = vand.u32 4294901760, %v4920_v3 }
 0x4cf   : > { %v5773_v52 = vpop.eup %5772  ;;  %v4857_v30 = vrot.slane %v4756_v10, 6  ;;  %v4757_v16 = vmax.f32 %v4725_v48, 0.0  ;;  %v4667_v63 = vsel %vm4666_vm4, %v5771_v0, %v4663_v17  ;;  %v4376_v54 = vadd.f32 1e-05, %v4344_v8 }
 0x4d0   : > { %v4669_v56 = vmul.f32 %v5773_v52, %v9595_v40  ;;  %v4726_v18 = vmul.f32 %v4667_v63, %v9509_v2  ;;  %v4089_v39 = vmul.f32 %v9610_v27, %v9610_v27  ;;  %4922 = vmatmul.f32.gmra.mxu0 %v4921_v55  ;;  %vm4675_vm0 = vweird.f32 %v5773_v52 }
 0x4d1   : > { %v4858_v43 = vsel %vm4810_vm5, %v4857_v30, %v4856_v28  ;;  %v4859_v46 = vrot.slane %v4757_v16, 5  ;;  %5774 = vrsqrt.f32 %v4376_v54  ;;  %vm4674_vm5 = vweird.f32 %v9595_v40  ;;  %v5217_v30 = vld [vmem:[%s9770_s5 + $0x30] sm:$0xff] }
 0x4d2   : > { %v4670_v22 = vmul.f32 %v5773_v52, %v4669_v56  ;;  %v4758_v6 = vmax.f32 %v4726_v18, 0.0  ;;  %v4307_v13 = vsel %vm3769_vm2, %v4089_v39, 0.0  ;;  %vm4676_vm6 = vmor %vm4674_vm5, %vm4675_vm0  ;;  %v9661_v56 = vpop.f32.mrf.mxu1  ;;  %v5216_v18 = vld [vmem:[%s9770_s5 + $0x28] sm:$0xff] }
 0x4d3   : > { %v4860_v31 = vsel %vm4813_vm8, %v4859_v46, %v4858_v43  ;;  %v4308_v44 = vrot.slane %v4307_v13, 4  ;;  %v5215_v46 = vld [vmem:[%s9770_s5 + $0x20] sm:$0xff] }
 0x4d4   : > { %v4671_v23 = vmul.f32 0.5, %v4670_v22  ;;  %v4861_v53 = vrot.slane %v4758_v6, 4  ;;  %v9676_v22 = vpop.f32.mrf.mxu0 }
 0x4d5   : > { %v4309_v0 = vadd.f32 %v4308_v44, %v4307_v13  ;;  %v9682_v13 = vand.u32 4294901760, %v5215_v46 }
 0x4d6   : > { %v4672_v24 = vsub.f32 1.5, %v4671_v23  ;;  %v4862_v2 = vsel %vm4816_vm13, %v4861_v53, %v4860_v31  ;;  %vm4684_vm13 = vweird.f32 %v4376_v54  ;;  %v5214_v23 = vld [vmem:[%s9770_s5 + $0x18] sm:$0xff] }
 0x4d7   : > { %v4310_v25 = vrot.slane %v4309_v0, 2  ;;  %v5775_v19 = vpop.eup %5774 }
 0x4d8   : > { %v4673_v1 = vmul.f32 %v5773_v52, %v4672_v24  ;;  %v4679_v36 = vmul.f32 %v5775_v19, %v4376_v54  ;;  %vm4685_vm8 = vweird.f32 %v5775_v19  ;;  %v9669_v54 = vand.u32 4294901760, %v5216_v18 }
 0x4d9   : > { %v4311_v51 = vadd.f32 %v4310_v25, %v4309_v0  ;;  %vm4686_vm9 = vmor %vm4684_vm13, %vm4685_vm8  ;;  %v5319_v24 = vsub.f32 %v5215_v46, %v9682_v13  ;;  %v9697_v0 = vand.u32 4294901760, %v5214_v23 }
 0x4da   : > { %v4677_v11 = vsel %vm4676_vm6, %v5773_v52, %v4673_v1  ;;  %v4680_v47 = vmul.f32 %v5775_v19, %v4679_v36  ;;  %v9680_v6 = vsub.f32 %v5216_v18, %v9669_v54  ;;  %v5213_v1 = vld [vmem:[%s9770_s5 + $0x10] sm:$0xff] }
 0x4db   : > { %v4727_v7 = vmul.f32 %v4677_v11, %v9532_v60  ;;  %v4312_v33 = vrot.slane %v4311_v51, 1  ;;  %v5325_v11 = vsub.f32 %v5214_v23, %v9697_v0  ;;  %v9706_v36 = vand.u32 4294901760, %v5213_v1 }
 0x4dc   : > { %v4681_v41 = vmul.f32 0.5, %v4680_v47  ;;  %v5314_v53 = vand.u32 4294901760, %v9680_v6 }
 0x4dd   : > { %v4759_v12 = vmax.f32 %v4727_v7, 0.0  ;;  %v4313_v49 = vadd.f32 %v4312_v33, %v4311_v51  ;;  %v5212_v51 = vld [vmem:[%s9770_s5 + $0x8] sm:$0xff]  ;;  %v5326_v33 = vand.u32 4294901760, %v5325_v11 }
 0x4de   : > { %v4682_v34 = vsub.f32 1.5, %v4681_v41  ;;  %v5315_v25 = vsub.f32 %v9680_v6, %v5314_v53  ;;  %v5255_v41 = vand.u32 4294901760, %v5212_v51 }
 0x4df   : > { %v4863_v26 = vrot.slane %v4759_v12, 3  ;;  %v4345_v9 = vmul.f32 %v4313_v49, %v6300_v37  ;;  %v5331_v12 = vsub.f32 %v5213_v1, %v9706_v36  ;;  %v5211_v49 = vld [vmem:[%s9770_s5] sm:$0xff] }
 0x4e0   : > { %v4683_v15 = vmul.f32 %v5775_v19, %v4682_v34  ;;  %v5316_v7 = vand.u32 4294901760, %v5315_v25 }
 0x4e1   : > { %v4864_v40 = vsel %vm4819_vm1, %v4863_v26, %v4862_v2  ;;  %v4377_v20 = vadd.f32 1e-05, %v4345_v9  ;;  %v5327_v9 = vsub.f32 %v5325_v11, %v5326_v33 }
 0x4e2   : > { %v4687_v21 = vsel %vm4686_vm9, %v5775_v19, %v4683_v15  ;;  %v5320_v19 = vand.u32 4294901760, %v5319_v24  ;;  %v5257_v15 = vand.u32 4294901760, %v5211_v49 }
 0x4e3   : > { %5776 = vrsqrt.f32 %v4377_v20  ;;  %v4728_v60 = vmul.f32 %v4687_v21, %v9559_v14  ;;  %vm4694_vm1 = vweird.f32 %v4377_v20 }
 0x4e4   : > { %v5321_v47 = vsub.f32 %v5319_v24, %v5320_v19 }
 0x4e5   : > { %v4760_v5 = vmax.f32 %v4728_v60, 0.0  ;;  %v5328_v60 = vand.u32 4294901760, %v5327_v9 }
 0x4e6   : > { %v5322_v34 = vand.u32 4294901760, %v5321_v47 }
 0x4e7   : > { %v4865_v59 = vrot.slane %v4760_v5, 2 }
 0x4e9   : > { %v5777_v4 = vpop.eup %5776  ;;  %v4866_v45 = vsel %vm4822_vm7, %v4865_v59, %v4864_v40  ;;  %v5332_v40 = vand.u32 4294901760, %v5331_v12  ;;  %v5343_v59 = vsub.f32 %v5211_v49, %v5257_v15 }
 0x4ea   : > { %v4689_v32 = vmul.f32 %v5777_v4, %v4377_v20  ;;  %vm4695_vm10 = vweird.f32 %v5777_v4  ;;  %v5337_v20 = vsub.f32 %v5212_v51, %v5255_v41 }
 0x4eb   : > { %vm4696_vm11 = vmor %vm4694_vm1, %vm4695_vm10  ;;  %v5333_v5 = vsub.f32 %v5331_v12, %v5332_v40 }
 0x4ec   : > { %v4690_v29 = vmul.f32 %v5777_v4, %v4689_v32 }
 0x4ed   : > { %v5334_v32 = vand.u32 4294901760, %v5333_v5 }
 0x4ee   : > { %v4691_v50 = vmul.f32 0.5, %v4690_v29 }
 0x4f0   : > { %v4692_v61 = vsub.f32 1.5, %v4691_v50 }
 0x4f2   : > { %v4693_v37 = vmul.f32 %v5777_v4, %v4692_v61  ;;  %v5646_v61 = vld [vmem:[%s9769_s4] ss:$0 sm:$0xff] }
 0x4f4   : > { %v4697_v35 = vsel %vm4696_vm11, %v5777_v4, %v4693_v37  ;;  %v5338_v4 = vand.u32 4294901760, %v5337_v20 }
 0x4f5   : > { %v4729_v62 = vmul.f32 %v4697_v35, %v9610_v27  ;;  %v5218_v27 = vld [vmem:[%s9770_s5 + $0x38] sm:$0xff]  ;;  %v9691_v44 = vpop.f32.mrf.mxu1 }
 0x4f6   : > { %v9645_v55 = vand.u32 4294901760, %v5218_v27  ;;  %v5339_v29 = vsub.f32 %v5337_v20, %v5338_v4 }
 0x4f7   : > { %v4761_v10 = vmax.f32 %v4729_v62, 0.0 }
 0x4f8   : > { %5244 = vmatpush.msra.mxu2 %v9645_v55  ;;  %5427 = vmatpush.msrb.mxu1 %v9645_v55  ;;  %v5340_v37 = vand.u32 4294901760, %v5339_v29 }
 0x4f9   : > { %v4867_v58 = vrot.slane %v4761_v10, 1 }
 0x4fb   : > { %v4868_v14 = vsel %vm10213_vm12, %v4867_v58, %v4866_v45  ;;  %v5344_v45 = vand.u32 4294901760, %v5343_v59  ;;  %v4908_v58 = vadd.f32 %v5646_v61, %v9676_v22 }
 0x4fc   : > { %v4875_v3 = vsel %vm3769_vm2, %v4868_v14, 0 }
 0x4fd   : > { %v4925_v48 = vand.u32 4294901760, %v4875_v3  ;;  %v5345_v50 = vsub.f32 %v5343_v59, %v5344_v45  ;;  %v4993_v14 = vadd.f32 %v9661_v56, %v4908_v58 }
 0x4ff   : > { %5003 = vmatmul.f32.gmra.mxu1 %v4925_v48  ;;  %v4926_v17 = vsub.f32 %v4875_v3, %v4925_v48  ;;  %v5346_v62 = vand.u32 4294901760, %v5345_v50 }
 0x501   : > { %5056 = vmatmul.f32.gmra.mxu2 %v4926_v17  ;;  %v4927_v8 = vand.u32 4294901760, %v4926_v17 }
 0x503   : > { %5105 = vmatmul.f32.gmra.mxu3 %v4927_v8  ;;  %v4928_v52 = vsub.f32 %v4926_v17, %v4927_v8 }
 0x505   : > { %v4929_v28 = vand.u32 4294901760, %v4928_v52 }
 0x507   : > { %4930 = vmatmul.f32.gmra.mxu0 %v4929_v28  ;;  %5191 = vmatmul.f32.vlgmr.msra.gmra.mxu1 %v9074_v57  ;;  %v5088_v28 = vpop.f32.mrf.mxu3 }
 0x50a   : > { %v4915_v26 = vpop.f32.mrf.mxu0 }
 0x50b   : > { %v4916_v8 = vadd.f32 %v5646_v61, %v4915_v26 }
 0x50f   : > { %5150 = vmatmul.f32.vlgmr.msra.gmra.mxu0 %v9074_v57  ;;  %5195 = vmatmul.f32.gmra.mxu1 %v9324_v38  ;;  %v9649_v57 = vsub.f32 %v5218_v27, %v9645_v55 }
 0x511   : > { %5375 = vmatpush.msrb.mxu0 %v9649_v57 }
 0x517   : > { %5154 = vmatmul.f32.gmra.mxu0 %v9324_v38  ;;  %5199 = vmatmul.f32.gmra.mxu1 %v9585_v42  ;;  %v9651_v38 = vand.u32 4294901760, %v5217_v30 }
 0x519   : > { %5246 = vmatpush.msra.mxu2 %v9651_v38  ;;  %5429 = vmatpush.msrb.mxu1 %v9651_v38  ;;  %v9664_v43 = vsub.f32 %v5217_v30, %v9651_v38  ;;  %v4997_v30 = vadd.f32 %v9691_v44, %v4916_v8 }
 0x51b   : > { %v5308_v39 = vand.u32 4294901760, %v9664_v43  ;;  %5378 = vmatpush.msrb.mxu0 %v9664_v43  ;;  %5248 = vmatpush.msra.mxu2 %v9669_v54 }
 0x51c   : > { %5431 = vmatpush.msrb.mxu1 %v9669_v54 }
 0x51d   : > { %v5309_v31 = vsub.f32 %v9664_v43, %v5308_v39  ;;  %5250 = vmatpush.msra.mxu2 %v9682_v13  ;;  %5381 = vmatpush.msrb.mxu0 %v9680_v6  ;;  %v5094_v43 = vpop.f32.mrf.mxu3 }
 0x51e   : > { %5433 = vmatpush.msrb.mxu1 %v9682_v13 }
 0x51f   : > { %5158 = vmatmul.f32.gmra.mxu0 %v9585_v42  ;;  %5203 = vmatmul.f32.gmra.mxu1 %v4925_v48  ;;  %v5302_v42 = vand.u32 4294901760, %v9649_v57  ;;  %v5310_v2 = vand.u32 4294901760, %v5309_v31 }
 0x520   : > { %5252 = vmatpush.msra.mxu2 %v9697_v0  ;;  %5384 = vmatpush.msrb.mxu0 %v5319_v24 }
 0x521   : > { %v5303_v16 = vsub.f32 %v9649_v57, %v5302_v42  ;;  %5435 = vmatpush.msrb.mxu1 %v9697_v0 }
 0x522   : > { %5387 = vmatpush.msrb.mxu0 %v5325_v11  ;;  %5254 = vmatpush.msra.mxu2 %v9706_v36 }
 0x523   : > { %v5304_v63 = vand.u32 4294901760, %v5303_v16  ;;  %5437 = vmatpush.msrb.mxu1 %v9706_v36 }
 0x524   : > { %5390 = vmatpush.msrb.mxu0 %v5331_v12  ;;  %5256 = vmatpush.msra.mxu2 %v5255_v41 }
 0x525   : > { %5305 = vmatpush.msra.mxu3 %v5304_v63  ;;  %5439 = vmatpush.msrb.mxu1 %v5255_v41 }
 0x526   : > { %5393 = vmatpush.msrb.mxu0 %v5337_v20  ;;  %5258 = vmatpush.msra.mxu2 %v5257_v15 }
 0x527   : > { %5162 = vmatmul.f32.gmra.mxu0 %v4925_v48  ;;  %5311 = vmatpush.msra.mxu3 %v5310_v2  ;;  %v5042_v48 = vpop.f32.mrf.mxu2 }
 0x528   : > { %5441 = vmatpush.msrb.mxu1 %v5257_v15  ;;  %5396 = vmatpush.msrb.mxu0 %v5343_v59  ;;  %v5043_v17 = vadd.f32 %v5042_v48, %v4993_v14 }
 0x529   : > { %5317 = vmatpush.msra.mxu3 %v5316_v7  ;;  %5478 = vmatpush.msrb.mxu2 %v5302_v42 }
 0x52a   : > { %v5089_v27 = vadd.f32 %v5088_v28, %v5043_v17 }
 0x52b   : > { %5323 = vmatpush.msra.mxu3 %v5322_v34  ;;  %5482 = vmatpush.msrb.mxu2 %v5308_v39 }
 0x52d   : > { %5329 = vmatpush.msra.mxu3 %v5328_v60  ;;  %5486 = vmatpush.msrb.mxu2 %v5314_v53 }
 0x52f   : > { %5335 = vmatpush.msra.mxu3 %v5334_v32  ;;  %5490 = vmatpush.msrb.mxu2 %v5320_v19 }
 0x531   : > { %5341 = vmatpush.msra.mxu3 %v5340_v37  ;;  %5494 = vmatpush.msrb.mxu2 %v5326_v33 }
 0x533   : > { %5347 = vmatpush.msra.mxu3 %v5346_v62  ;;  %5498 = vmatpush.msrb.mxu2 %v5332_v40 }
 0x535   : > { %5533 = vmatpush.msrb.mxu3 %v9645_v55  ;;  %5502 = vmatpush.msrb.mxu2 %v5338_v4 }
 0x537   : > { %5535 = vmatpush.msrb.mxu3 %v9651_v38  ;;  %5506 = vmatpush.msrb.mxu2 %v5344_v45  ;;  %v5047_v38 = vpop.f32.mrf.mxu2 }
 0x538   : > { %v5048_v42 = vadd.f32 %v5047_v38, %v4997_v30 }
 0x539   : > { %5537 = vmatpush.msrb.mxu3 %v9669_v54 }
 0x53a   : > { %v5095_v54 = vadd.f32 %v5094_v43, %v5048_v42 }
 0x53b   : > { %5539 = vmatpush.msrb.mxu3 %v9682_v13 }
 0x53d   : > { %5541 = vmatpush.msrb.mxu3 %v9697_v0 }
 0x53f   : > { %5543 = vmatpush.msrb.mxu3 %v9706_v36 }
 0x541   : > { %v5000_v21 = vpop.f32.mrf.mxu1  ;;  %5545 = vmatpush.msrb.mxu3 %v5255_v41 }
 0x543   : > { %5547 = vmatpush.msrb.mxu3 %v5257_v15 }
 0x54b   : > { %v5052_v31 = vpop.f32.mrf.mxu2 }
 0x54d   : > { %v4923_v35 = vpop.f32.mrf.mxu0 }
 0x54e   : > { %v4924_v16 = vadd.f32 %v5646_v61, %v4923_v35  ;;  %v5100_v1 = vpop.f32.mrf.mxu3 }
 0x550   : > { %v5001_v39 = vadd.f32 %v5000_v21, %v4924_v16 }
 0x552   : > { %v5053_v44 = vadd.f32 %v5052_v31, %v5001_v39 }
 0x554   : > { %v5101_v19 = vadd.f32 %v5100_v1, %v5053_v44 }
 0x57c   : > { %v5004_v10 = vpop.f32.mrf.mxu1 }
 0x584   : > { %v4931_v3 = vpop.f32.mrf.mxu0  ;;  %v5192_v52 = vpop.f32.mrf.mxu1 }
 0x585   : > { %v4932_v53 = vadd.f32 %v5646_v61, %v4931_v3  ;;  %v5057_v41 = vpop.f32.mrf.mxu2 }
 0x586   : > { %v5106_v15 = vpop.f32.mrf.mxu3 }
 0x587   : > { %v5005_v11 = vadd.f32 %v5004_v10, %v4932_v53 }
 0x589   : > { %v5058_v26 = vadd.f32 %v5057_v41, %v5005_v11 }
 0x58b   : > { %v5107_v21 = vadd.f32 %v5106_v15, %v5058_v26 }
 0x58c   : > { %v5151_v55 = vpop.f32.mrf.mxu0  ;;  %v5196_v18 = vpop.f32.mrf.mxu1 }
 0x58d   : > { %v5152_v57 = vadd.f32 %v5151_v55, %v5089_v27  ;;  %v5647_v55 = vld [vmem:[%s9771_s6] ss:$0 sm:$0xff] }
 0x58f   : > { %v5193_v63 = vadd.f32 %v5192_v52, %v5152_v57 }
 0x591   : > { %v5207_v56 = vmax.f32 %v5193_v63, 0.0 }
 0x593   : > { %v5224_v46 = vsel %vm3769_vm2, %v5207_v56, 0 }
 0x594   : > { %v9735_v22 = vand.u32 4294901760, %v5224_v46  ;;  %v5155_v6 = vpop.f32.mrf.mxu0  ;;  %v5200_v47 = vpop.f32.mrf.mxu1 }
 0x595   : > { %v5156_v13 = vadd.f32 %v5155_v6, %v5095_v54 }
 0x596   : > { %v5260_v23 = vsub.f32 %v5224_v46, %v9735_v22  ;;  %5349 = vmatmul.f32.vlgmr.msra.gmra.mxu3 %v9735_v22 }
 0x597   : > { %v5197_v24 = vadd.f32 %v5196_v18, %v5156_v13 }
 0x598   : > { %v5261_v0 = vand.u32 4294901760, %v5260_v23  ;;  %5399 = vmatmul.f32.vlgmr.msrb.gmra.mxu0 %v5260_v23 }
 0x599   : > { %v5208_v2 = vmax.f32 %v5197_v24, 0.0 }
 0x59a   : > { %v5262_v25 = vsub.f32 %v5260_v23, %v5261_v0  ;;  %5445 = vmatmul.f32.vlgmr.msrb.gmra.mxu1 %v5261_v0 }
 0x59b   : > { %v5227_v36 = vsel %vm3769_vm2, %v5208_v2, 0 }
 0x59c   : > { %v5263_v51 = vand.u32 4294901760, %v5262_v25  ;;  %v5267_v7 = vand.u32 4294901760, %v5227_v36  ;;  %v5159_v33 = vpop.f32.mrf.mxu0  ;;  %v5204_v45 = vpop.f32.mrf.mxu1 }
 0x59d   : > { %v5160_v12 = vadd.f32 %v5159_v33, %v5101_v19 }
 0x59e   : > { %5264 = vmatmul.f32.vlgmr.msra.gmra.mxu2 %v5263_v51  ;;  %5353 = vmatmul.f32.gmra.mxu3 %v5267_v7  ;;  %v5268_v49 = vsub.f32 %v5227_v36, %v5267_v7 }
 0x59f   : > { %v5201_v34 = vadd.f32 %v5200_v47, %v5160_v12 }
 0x5a0   : > { %5404 = vmatmul.f32.gmra.mxu0 %v5268_v49  ;;  %v5269_v9 = vand.u32 4294901760, %v5268_v49 }
 0x5a1   : > { %v5209_v40 = vmax.f32 %v5201_v34, 0.0 }
 0x5a2   : > { %5451 = vmatmul.f32.gmra.mxu1 %v5269_v9  ;;  %v5270_v20 = vsub.f32 %v5268_v49, %v5269_v9 }
 0x5a3   : > { %v5230_v60 = vsel %vm3769_vm2, %v5209_v40, 0 }
 0x5a4   : > { %v5275_v5 = vand.u32 4294901760, %v5230_v60  ;;  %v5163_v59 = vpop.f32.mrf.mxu0  ;;  %v5271_v4 = vand.u32 4294901760, %v5270_v20 }
 0x5a5   : > { %v5164_v32 = vadd.f32 %v5163_v59, %v5107_v21 }
 0x5a6   : > { %5272 = vmatmul.f32.gmra.mxu2 %v5271_v4  ;;  %5357 = vmatmul.f32.gmra.mxu3 %v5275_v5  ;;  %v5276_v29 = vsub.f32 %v5230_v60, %v5275_v5 }
 0x5a7   : > { %v5205_v50 = vadd.f32 %v5204_v45, %v5164_v32 }
 0x5a8   : > { %5409 = vmatmul.f32.gmra.mxu0 %v5276_v29  ;;  %v5277_v61 = vand.u32 4294901760, %v5276_v29 }
 0x5a9   : > { %v5210_v37 = vmax.f32 %v5205_v50, 0.0 }
 0x5aa   : > { %5457 = vmatmul.f32.gmra.mxu1 %v5277_v61  ;;  %v5278_v35 = vsub.f32 %v5276_v29, %v5277_v61 }
 0x5ab   : > { %v5233_v62 = vsel %vm3769_vm2, %v5210_v37, 0  ;;  %vm5565_vm2 = vcmask 23552  }
 0x5ac   : > { %v5283_v10 = vand.u32 4294901760, %v5233_v62  ;;  %v5279_v58 = vand.u32 4294901760, %v5278_v35 }
 0x5ae   : > { %5280 = vmatmul.f32.gmra.mxu2 %v5279_v58  ;;  %5361 = vmatmul.f32.gmra.mxu3 %v5283_v10  ;;  %v5284_v14 = vsub.f32 %v5233_v62, %v5283_v10 }
 0x5b0   : > { %5414 = vmatmul.f32.gmra.mxu0 %v5284_v14  ;;  %v5285_v3 = vand.u32 4294901760, %v5284_v14 }
 0x5b2   : > { %5463 = vmatmul.f32.gmra.mxu1 %v5285_v3  ;;  %v5286_v48 = vsub.f32 %v5284_v14, %v5285_v3 }
 0x5b4   : > { %v5287_v17 = vand.u32 4294901760, %v5286_v48 }
 0x5b6   : > { %5288 = vmatmul.f32.gmra.mxu2 %v5287_v17  ;;  %5549 = vmatmul.f32.vlgmr.msrb.gmra.mxu3 %v9735_v22 }
 0x5be   : > { %5508 = vmatmul.f32.vlgmr.msrb.gmra.mxu2 %v9735_v22  ;;  %5553 = vmatmul.f32.gmra.mxu3 %v5267_v7 }
 0x5c6   : > { %5512 = vmatmul.f32.gmra.mxu2 %v5267_v7  ;;  %5557 = vmatmul.f32.gmra.mxu3 %v5275_v5 }
 0x5ce   : > { %5516 = vmatmul.f32.gmra.mxu2 %v5275_v5  ;;  %5561 = vmatmul.f32.gmra.mxu3 %v5283_v10 }
 0x5d6   : > { %5520 = vmatmul.f32.gmra.mxu2 %v5283_v10 }
 0x615   : > { %v5400_v16 = vpop.f32.mrf.mxu0 }
 0x617   : > { %v5446_v56 = vpop.f32.mrf.mxu1 }
 0x619   : > { %v5350_v8 = vpop.f32.mrf.mxu3 }
 0x61d   : > { %v5405_v46 = vpop.f32.mrf.mxu0 }
 0x61f   : > { %v5452_v23 = vpop.f32.mrf.mxu1 }
 0x621   : > { %v5265_v52 = vpop.f32.mrf.mxu2  ;;  %v5354_v28 = vpop.f32.mrf.mxu3 }
 0x622   : > { %v5266_v42 = vadd.f32 %v5647_v55, %v5265_v52 }
 0x624   : > { %v5351_v63 = vadd.f32 %v5350_v8, %v5266_v42 }
 0x625   : > { %v5410_v25 = vpop.f32.mrf.mxu0 }
 0x626   : > { %v5401_v54 = vadd.f32 %v5400_v16, %v5351_v63 }
 0x627   : > { %v5458_v47 = vpop.f32.mrf.mxu1 }
 0x628   : > { %v5447_v6 = vadd.f32 %v5446_v56, %v5401_v54 }
 0x629   : > { %v5273_v27 = vpop.f32.mrf.mxu2  ;;  %v5358_v30 = vpop.f32.mrf.mxu3 }
 0x62a   : > { %v5274_v18 = vadd.f32 %v5647_v55, %v5273_v27 }
 0x62c   : > { %v5355_v22 = vadd.f32 %v5354_v28, %v5274_v18 }
 0x62d   : > { %v5415_v34 = vpop.f32.mrf.mxu0 }
 0x62e   : > { %v5406_v24 = vadd.f32 %v5405_v46, %v5355_v22 }
 0x62f   : > { %v5464_v15 = vpop.f32.mrf.mxu1 }
 0x630   : > { %v5453_v1 = vadd.f32 %v5452_v23, %v5406_v24 }
 0x631   : > { %v5281_v57 = vpop.f32.mrf.mxu2  ;;  %v5362_v38 = vpop.f32.mrf.mxu3 }
 0x632   : > { %v5282_v44 = vadd.f32 %v5647_v55, %v5281_v57 }
 0x634   : > { %v5359_v2 = vadd.f32 %v5358_v30, %v5282_v44 }
 0x636   : > { %v5411_v7 = vadd.f32 %v5410_v25, %v5359_v2 }
 0x638   : > { %v5459_v12 = vadd.f32 %v5458_v47, %v5411_v7 }
 0x639   : > { %v5289_v43 = vpop.f32.mrf.mxu2  ;;  %v5550_v39 = vpop.f32.mrf.mxu3 }
 0x63a   : > { %v5290_v36 = vadd.f32 %v5647_v55, %v5289_v43 }
 0x63c   : > { %v5363_v33 = vadd.f32 %v5362_v38, %v5290_v36 }
 0x63e   : > { %v5416_v40 = vadd.f32 %v5415_v34, %v5363_v33 }
 0x640   : > { %v5465_v20 = vadd.f32 %v5464_v15, %v5416_v40 }
 0x641   : > { %v5509_v13 = vpop.f32.mrf.mxu2  ;;  %v5554_v0 = vpop.f32.mrf.mxu3 }
 0x642   : > { %v5510_v31 = vadd.f32 %v5509_v13, %v5447_v6 }
 0x644   : > { %v5551_v53 = vadd.f32 %v5550_v39, %v5510_v31 }
 0x646   : > { %5566 = vst.msk [vmem:[%s9752_s16] sm:$0xff] %vm5565_vm2, %v5551_v53 }
 0x649   : > { %v5513_v19 = vpop.f32.mrf.mxu2  ;;  %v5558_v41 = vpop.f32.mrf.mxu3 }
 0x64a   : > { %v5514_v11 = vadd.f32 %v5513_v19, %v5453_v1 }
 0x64c   : > { %v5555_v51 = vadd.f32 %v5554_v0, %v5514_v11 }
 0x64e   : > { %5567 = vst.msk [vmem:[%s9752_s16 + $0x8] sm:$0xff] %vm5565_vm2, %v5555_v51 }
 0x651   : > { %v5517_v49 = vpop.f32.mrf.mxu2  ;;  %v5562_v5 = vpop.f32.mrf.mxu3 }
 0x652   : > { %v5518_v26 = vadd.f32 %v5517_v49, %v5459_v12 }
 0x654   : > { %v5559_v9 = vadd.f32 %v5558_v41, %v5518_v26 }
 0x656   : > { %5568 = vst.msk [vmem:[%s9752_s16 + $0x10] sm:$0xff] %vm5565_vm2, %v5559_v9 }
 0x659   : > { %v5521_v21 = vpop.f32.mrf.mxu2 }
 0x65a   : > { %v5522_v60 = vadd.f32 %v5521_v21, %v5465_v20 }
 0x65c   : > { %v5563_v59 = vadd.f32 %v5562_v5, %v5522_v60 }
 0x65e   : > { %5569 = vst.msk [vmem:[%s9752_s16 + $0x18] sm:$0xff] %vm5565_vm2, %v5563_v59 }
 0x65f PF: > { %s17_s24 = sadd.s32 1, %s5784_s24  }
 0x660   : > { %p14_p5 = scmp.ge.s32.totalorder %s17_s24, 4  }
 0x662   :  { %16 = sbr.rel (!%p14_p5) target bundleno = 1 (0x1), region = 78 }

</bundles_post_ra>
